<compile_context>
chip_gen: v7x
topology: tpu7x:2x2x1
jax: 0.10.0
libtpu: 0.0.40
codegen_flags: <defaults>
</compile_context>

<pallas_src>
import functools
import math

import jax
import jax.numpy as jnp
from jax.experimental import pallas as pl
from jax.experimental.pallas import tpu as pltpu


# ----------------------------------------------------------------------------
# Fused encoder kernel
# ----------------------------------------------------------------------------
def _mha_heads(Q, K, V, num_heads, head_dim):
    """Per-head scaled-dot-product attention (scale pre-folded into Q).

    Q: (Lq, E)   K, V: (Lk, E)   ->  (Lq, E)   with E = num_heads * head_dim.
    """
    outs = []
    for h in range(num_heads):
        c0 = h * head_dim
        qh = Q[:, c0:c0 + head_dim]
        kh = K[:, c0:c0 + head_dim]
        vh = V[:, c0:c0 + head_dim]
        s = jax.lax.dot_general(qh, kh, (((1,), (1,)), ((), ())),
                                preferred_element_type=jnp.float32)
        s = s - jnp.max(s, axis=-1, keepdims=True)
        p = jnp.exp(s)
        p = p * pl.reciprocal(jnp.sum(p, axis=-1, keepdims=True), approx=True)
        outs.append(jnp.dot(p, vh, preferred_element_type=jnp.float32))
    return jnp.concatenate(outs, axis=-1)


def _encoder_kernel(*refs, A, T, E, num_heads, head_dim):
    (feats_r, pos_r,
     w1_r, b1_r, w2_r, b2_r,
     wqkv_t_r, bqkv_t_r, wo_t_r, bo_t_r, s1_r, h1_r,
     f1a_w_r, f1a_b_r, f1b_w_r, f1b_b_r, s2_r, h2_r,
     wq_s_r, bq_s_r, wkv_s_r, bkv_s_r, wo_s_r, bo_s_r, s3_r, h3_r,
     f2a_w_r, f2a_b_r, f2b_w_r, f2b_b_r, s4_r, h4_r) = refs[:-1]
    out_r = refs[-1]

    # ---- proj MLP: Linear -> ReLU -> Linear ----------------------------------
    x = feats_r[0]                                               # (A*T, Dpad)
    hmid = jnp.dot(x, w1_r[...], preferred_element_type=jnp.float32) + b1_r[...]
    hmid = jnp.maximum(hmid, 0.0)
    x = jnp.dot(hmid, w2_r[...], preferred_element_type=jnp.float32) + b2_r[...]

    # ---- sinusoidal positional encoding (precomputed, tiled over agents) -----
    x = x + pos_r[...]                                           # (A*T, E)

    # ---- temporal self-attention (packed QKV, heads split in-kernel) ---------
    qkv = jnp.dot(x, wqkv_t_r[...],
                  preferred_element_type=jnp.float32) + bqkv_t_r[...]  # (A*T, 3E)
    rows = []
    for a in range(A):
        r0 = a * T
        Qa = qkv[r0:r0 + T, 0:E]
        Ka = qkv[r0:r0 + T, E:2 * E]
        Va = qkv[r0:r0 + T, 2 * E:3 * E]
        rows.append(_mha_heads(Qa, Ka, Va, num_heads, head_dim))
    O = jnp.concatenate(rows, axis=0)                            # (A*T, E)
    attn = jnp.dot(O, wo_t_r[...], preferred_element_type=jnp.float32) + bo_t_r[...]
    # residual + BatchNorm1d(T) (eval) fused into one FMA with lane-dense consts
    q = (x + attn) * s1_r[...] + h1_r[...]

    # ---- feed-forward 1 + residual + BN --------------------------------------
    ff = jnp.dot(q, f1a_w_r[...], preferred_element_type=jnp.float32) + f1a_b_r[...]
    ff = jnp.maximum(ff, 0.0)
    ff = jnp.dot(ff, f1b_w_r[...], preferred_element_type=jnp.float32) + f1b_b_r[...]
    q = (q + ff) * s2_r[...] + h2_r[...]

    # ---- social attention: ego (agent 0) attends over the other agents -------
    q_ego = q[0:T, :]                                            # (T, E)
    q_rest = q[T:, :]                                            # ((A-1)*T, E)
    Qe = jnp.dot(q_ego, wq_s_r[...], preferred_element_type=jnp.float32) + bq_s_r[...]
    kv = jnp.dot(q_rest, wkv_s_r[...],
                 preferred_element_type=jnp.float32) + bkv_s_r[...]       # (., 2E)
    Ks = kv[:, 0:E]
    Vs = kv[:, E:2 * E]
    Os = _mha_heads(Qe, Ks, Vs, num_heads, head_dim)
    attn = jnp.dot(Os, wo_s_r[...], preferred_element_type=jnp.float32) + bo_s_r[...]
    q2 = (q_ego + attn) * s3_r[...] + h3_r[...]

    # ---- feed-forward 2 + residual + BN --------------------------------------
    ff = jnp.dot(q2, f2a_w_r[...], preferred_element_type=jnp.float32) + f2a_b_r[...]
    ff = jnp.maximum(ff, 0.0)
    ff = jnp.dot(ff, f2b_w_r[...], preferred_element_type=jnp.float32) + f2b_b_r[...]
    out = (q2 + ff) * s4_r[...] + h4_r[...]                      # (T, E)

    out_r[0] = out.astype(out_r.dtype)


# ----------------------------------------------------------------------------
# Wrapper: constant folding / packing + single pallas_call
# ----------------------------------------------------------------------------
def pos_encodings(num_pos, dim):
    position = jnp.arange(num_pos, dtype=jnp.float32)[:, None]
    div_term = jnp.exp(
        jnp.arange(0, dim, 2, dtype=jnp.float32) * (-math.log(10000.0) / dim))
    enc = jnp.zeros((num_pos, dim), jnp.float32)
    enc = enc.at[:, 0::2].set(jnp.sin(position * div_term))
    enc = enc.at[:, 1::2].set(jnp.cos(position * div_term))
    return enc  # (T, E)


def _bn_consts(bn, T, E, tile_rows, eps=1e-5):
    """Eval-mode BN over the time channel -> lane-dense (rows, E) scale/shift."""
    scale = bn["gamma"] / jnp.sqrt(bn["var"] + eps)
    shift = bn["beta"] - bn["mean"] * scale
    s = jnp.broadcast_to(scale[:, None], (T, E)).astype(jnp.float32)
    h = jnp.broadcast_to(shift[:, None], (T, E)).astype(jnp.float32)
    if tile_rows > 1:
        s = jnp.tile(s, (tile_rows, 1))
        h = jnp.tile(h, (tile_rows, 1))
    return s, h


def encoder_forward(params, feats, *, embed_dim=128, num_heads=8):
    N, A, T, Din = feats.shape
    E = embed_dim
    assert E % num_heads == 0
    head_dim = E // num_heads
    # BatchNorm1d(num_heads) applied over the time axis is only shape-valid
    # when T == num_heads; make that explicit.
    for k in ("norm1", "norm2", "norm3", "norm4"):
        assert params[k]["gamma"].shape[0] == T, \
            "BatchNorm1d channel count must equal num_time"

    # ---- pad the input feature dim to a sublane-friendly multiple of 8 ------
    Dpad = max(8, -(-Din // 8) * 8)
    feats_p = jnp.pad(feats.reshape(N, A * T, Din).astype(jnp.float32),
                      ((0, 0), (0, 0), (0, Dpad - Din)))
    w1_p = jnp.pad(params["proj"]["w1"], ((0, Dpad - Din), (0, 0)))
    hidden = w1_p.shape[1]
    ff_dim = params["ff1"]["w1"].shape[1]

    # ---- precomputed constants -----------------------------------------------
    pos_tiled = jnp.tile(pos_encodings(T, E), (A, 1))            # (A*T, E)

    inv = 1.0 / math.sqrt(head_dim)                              # fold attn scale
    tp = params["temporal"]
    wqkv_t = jnp.concatenate([tp["wq"] * inv, tp["wk"], tp["wv"]], axis=1)
    bqkv_t = jnp.concatenate([tp["bq"] * inv, tp["bk"], tp["bv"]]).reshape(1, 3 * E)
    sp = params["social"]
    wq_s = sp["wq"] * inv
    bq_s = (sp["bq"] * inv).reshape(1, E)
    wkv_s = jnp.concatenate([sp["wk"], sp["wv"]], axis=1)
    bkv_s = jnp.concatenate([sp["bk"], sp["bv"]]).reshape(1, 2 * E)

    s1, h1 = _bn_consts(params["norm1"], T, E, A)
    s2, h2 = _bn_consts(params["norm2"], T, E, A)
    s3, h3 = _bn_consts(params["norm3"], T, E, 1)
    s4, h4 = _bn_consts(params["norm4"], T, E, 1)

    operands = [
        feats_p, pos_tiled,
        w1_p, params["proj"]["b1"].reshape(1, hidden),
        params["proj"]["w2"], params["proj"]["b2"].reshape(1, E),
        wqkv_t, bqkv_t, tp["wo"], tp["bo"].reshape(1, E), s1, h1,
        params["ff1"]["w1"], params["ff1"]["b1"].reshape(1, ff_dim),
        params["ff1"]["w2"], params["ff1"]["b2"].reshape(1, E), s2, h2,
        wq_s, bq_s, wkv_s, bkv_s, sp["wo"], sp["bo"].reshape(1, E), s3, h3,
        params["ff2"]["w1"], params["ff2"]["b1"].reshape(1, ff_dim),
        params["ff2"]["w2"], params["ff2"]["b2"].reshape(1, E), s4, h4,
    ]

    def _const_spec(arr):
        nd = arr.ndim
        return pl.BlockSpec(arr.shape, lambda n, _nd=nd: (0,) * _nd)

    in_specs = [pl.BlockSpec((1, A * T, Dpad), lambda n: (n, 0, 0))]
    in_specs += [_const_spec(a) for a in operands[1:]]

    kernel = functools.partial(_encoder_kernel, A=A, T=T, E=E,
                               num_heads=num_heads, head_dim=head_dim)

    out3 = pl.pallas_call(
        kernel,
        out_shape=jax.ShapeDtypeStruct((N, T, E), jnp.float32),
        grid=(N,),
        in_specs=in_specs,
        out_specs=pl.BlockSpec((1, T, E), lambda n: (n, 0, 0)),
        compiler_params=pltpu.CompilerParams(
            dimension_semantics=("parallel",)),
    )(*operands)

    # view(N, 1, T, E).flatten(1)
    return out3.reshape(N, T * E)


# ----------------------------------------------------------------------------
# Deterministic parameter initialization (same layout as before)
# ----------------------------------------------------------------------------
def _init_linear(key, din, dout):
    kw, kb = jax.random.split(key)
    w = jax.random.normal(kw, (din, dout), jnp.float32) / math.sqrt(din)
    b = 0.01 * jax.random.normal(kb, (dout,), jnp.float32)
    return w, b


def _init_mha(key, e):
    p = {}
    for name, k in zip("qkvo", jax.random.split(key, 4)):
        w, b = _init_linear(k, e, e)
        p["w" + name] = w
        p["b" + name] = b
    return p


def _init_bn(key, c):
    k1, k2, k3, k4 = jax.random.split(key, 4)
    return dict(
        gamma=1.0 + 0.1 * jax.random.normal(k1, (c,), jnp.float32),
        beta=0.1 * jax.random.normal(k2, (c,), jnp.float32),
        mean=0.1 * jax.random.normal(k3, (c,), jnp.float32),
        var=1.0 + 0.1 * jax.random.uniform(k4, (c,), jnp.float32),
    )


def init_params(key, input_dim=13, hidden_dim=512, embed_dim=128,
                ff_dim=256, num_heads=8):
    keys = jax.random.split(key, 12)
    pw1, pb1 = _init_linear(keys[0], input_dim, hidden_dim)
    pw2, pb2 = _init_linear(keys[1], hidden_dim, embed_dim)
    f1w1, f1b1 = _init_linear(keys[2], embed_dim, ff_dim)
    f1w2, f1b2 = _init_linear(keys[3], ff_dim, embed_dim)
    f2w1, f2b1 = _init_linear(keys[4], embed_dim, ff_dim)
    f2w2, f2b2 = _init_linear(keys[5], ff_dim, embed_dim)
    return dict(
        proj=dict(w1=pw1, b1=pb1, w2=pw2, b2=pb2),
        temporal=_init_mha(keys[6], embed_dim),
        social=_init_mha(keys[7], embed_dim),
        ff1=dict(w1=f1w1, b1=f1b1, w2=f1w2, b2=f1b2),
        ff2=dict(w1=f2w1, b1=f2b1, w2=f2w2, b2=f2b2),
        norm1=_init_bn(keys[8], num_heads),
        norm2=_init_bn(keys[9], num_heads),
        norm3=_init_bn(keys[10], num_heads),
        norm4=_init_bn(keys[11], num_heads),
    )


# ----------------------------------------------------------------------------
if __name__ == "__main__":
    key = jax.random.PRNGKey(0)
    kp, kx = jax.random.split(key)

    # Small shapes consistent with the module: num_time must equal num_heads
    # (=8) for BatchNorm1d(num_heads) to be applicable, num_agent >= 2.
    N, A, T, Din = 2, 3, 8, 13
    params = init_params(kp, input_dim=Din)
    feats = jax.random.normal(kx, (N, A, T, Din), jnp.float32)

    fwd = jax.jit(encoder_forward)
    out = fwd(params, feats)              # (N, T * embed_dim) = (2, 1024)
    jax.block_until_ready(out)
    assert out.shape == (N, T * 128) and out.dtype == jnp.float32
    assert bool(jnp.all(jnp.isfinite(out)))
    print("KERNEL_OK")
</pallas_src>

<mosaic_0001>
module attributes {stable_mosaic.version = 11 : i64} {
  func.func @_encoder_kernel(%arg0: i32, %arg1: memref<1x24x16xf32, #tpu.memory_space<vmem>>, %arg2: memref<24x128xf32, #tpu.memory_space<vmem>>, %arg3: memref<16x512xf32, #tpu.memory_space<vmem>>, %arg4: memref<1x512xf32, #tpu.memory_space<vmem>>, %arg5: memref<512x128xf32, #tpu.memory_space<vmem>>, %arg6: memref<1x128xf32, #tpu.memory_space<vmem>>, %arg7: memref<128x384xf32, #tpu.memory_space<vmem>>, %arg8: memref<1x384xf32, #tpu.memory_space<vmem>>, %arg9: memref<128x128xf32, #tpu.memory_space<vmem>>, %arg10: memref<1x128xf32, #tpu.memory_space<vmem>>, %arg11: memref<24x128xf32, #tpu.memory_space<vmem>>, %arg12: memref<24x128xf32, #tpu.memory_space<vmem>>, %arg13: memref<128x256xf32, #tpu.memory_space<vmem>>, %arg14: memref<1x256xf32, #tpu.memory_space<vmem>>, %arg15: memref<256x128xf32, #tpu.memory_space<vmem>>, %arg16: memref<1x128xf32, #tpu.memory_space<vmem>>, %arg17: memref<24x128xf32, #tpu.memory_space<vmem>>, %arg18: memref<24x128xf32, #tpu.memory_space<vmem>>, %arg19: memref<128x128xf32, #tpu.memory_space<vmem>>, %arg20: memref<1x128xf32, #tpu.memory_space<vmem>>, %arg21: memref<128x256xf32, #tpu.memory_space<vmem>>, %arg22: memref<1x256xf32, #tpu.memory_space<vmem>>, %arg23: memref<128x128xf32, #tpu.memory_space<vmem>>, %arg24: memref<1x128xf32, #tpu.memory_space<vmem>>, %arg25: memref<8x128xf32, #tpu.memory_space<vmem>>, %arg26: memref<8x128xf32, #tpu.memory_space<vmem>>, %arg27: memref<128x256xf32, #tpu.memory_space<vmem>>, %arg28: memref<1x256xf32, #tpu.memory_space<vmem>>, %arg29: memref<256x128xf32, #tpu.memory_space<vmem>>, %arg30: memref<1x128xf32, #tpu.memory_space<vmem>>, %arg31: memref<8x128xf32, #tpu.memory_space<vmem>>, %arg32: memref<8x128xf32, #tpu.memory_space<vmem>>, %arg33: memref<1x8x128xf32, #tpu.memory_space<vmem>>) attributes {dimension_semantics = [#tpu.dimension_semantics<parallel>], iteration_bounds = array<i64: 2>, scalar_prefetch = 0 : i64, scratch_operands = 0 : i64, tpu.core_type = #tpu.core_type<tc>, window_params = [{transform_indices = @transform_0, window_bounds = array<i64: 1, 24, 16>}, {pipeline_mode = #tpu.pipeline_mode<synchronous>, transform_indices = @transform_1, window_bounds = array<i64: 24, 128>}, {pipeline_mode = #tpu.pipeline_mode<synchronous>, transform_indices = @transform_2, window_bounds = array<i64: 16, 512>}, {pipeline_mode = #tpu.pipeline_mode<synchronous>, transform_indices = @transform_3, window_bounds = array<i64: 1, 512>}, {pipeline_mode = #tpu.pipeline_mode<synchronous>, transform_indices = @transform_4, window_bounds = array<i64: 512, 128>}, {pipeline_mode = #tpu.pipeline_mode<synchronous>, transform_indices = @transform_5, window_bounds = array<i64: 1, 128>}, {pipeline_mode = #tpu.pipeline_mode<synchronous>, transform_indices = @transform_6, window_bounds = array<i64: 128, 384>}, {pipeline_mode = #tpu.pipeline_mode<synchronous>, transform_indices = @transform_7, window_bounds = array<i64: 1, 384>}, {pipeline_mode = #tpu.pipeline_mode<synchronous>, transform_indices = @transform_8, window_bounds = array<i64: 128, 128>}, {pipeline_mode = #tpu.pipeline_mode<synchronous>, transform_indices = @transform_9, window_bounds = array<i64: 1, 128>}, {pipeline_mode = #tpu.pipeline_mode<synchronous>, transform_indices = @transform_10, window_bounds = array<i64: 24, 128>}, {pipeline_mode = #tpu.pipeline_mode<synchronous>, transform_indices = @transform_11, window_bounds = array<i64: 24, 128>}, {pipeline_mode = #tpu.pipeline_mode<synchronous>, transform_indices = @transform_12, window_bounds = array<i64: 128, 256>}, {pipeline_mode = #tpu.pipeline_mode<synchronous>, transform_indices = @transform_13, window_bounds = array<i64: 1, 256>}, {pipeline_mode = #tpu.pipeline_mode<synchronous>, transform_indices = @transform_14, window_bounds = array<i64: 256, 128>}, {pipeline_mode = #tpu.pipeline_mode<synchronous>, transform_indices = @transform_15, window_bounds = array<i64: 1, 128>}, {pipeline_mode = #tpu.pipeline_mode<synchronous>, transform_indices = @transform_16, window_bounds = array<i64: 24, 128>}, {pipeline_mode = #tpu.pipeline_mode<synchronous>, transform_indices = @transform_17, window_bounds = array<i64: 24, 128>}, {pipeline_mode = #tpu.pipeline_mode<synchronous>, transform_indices = @transform_18, window_bounds = array<i64: 128, 128>}, {pipeline_mode = #tpu.pipeline_mode<synchronous>, transform_indices = @transform_19, window_bounds = array<i64: 1, 128>}, {pipeline_mode = #tpu.pipeline_mode<synchronous>, transform_indices = @transform_20, window_bounds = array<i64: 128, 256>}, {pipeline_mode = #tpu.pipeline_mode<synchronous>, transform_indices = @transform_21, window_bounds = array<i64: 1, 256>}, {pipeline_mode = #tpu.pipeline_mode<synchronous>, transform_indices = @transform_22, window_bounds = array<i64: 128, 128>}, {pipeline_mode = #tpu.pipeline_mode<synchronous>, transform_indices = @transform_23, window_bounds = array<i64: 1, 128>}, {pipeline_mode = #tpu.pipeline_mode<synchronous>, transform_indices = @transform_24, window_bounds = array<i64: 8, 128>}, {pipeline_mode = #tpu.pipeline_mode<synchronous>, transform_indices = @transform_25, window_bounds = array<i64: 8, 128>}, {pipeline_mode = #tpu.pipeline_mode<synchronous>, transform_indices = @transform_26, window_bounds = array<i64: 128, 256>}, {pipeline_mode = #tpu.pipeline_mode<synchronous>, transform_indices = @transform_27, window_bounds = array<i64: 1, 256>}, {pipeline_mode = #tpu.pipeline_mode<synchronous>, transform_indices = @transform_28, window_bounds = array<i64: 256, 128>}, {pipeline_mode = #tpu.pipeline_mode<synchronous>, transform_indices = @transform_29, window_bounds = array<i64: 1, 128>}, {pipeline_mode = #tpu.pipeline_mode<synchronous>, transform_indices = @transform_30, window_bounds = array<i64: 8, 128>}, {pipeline_mode = #tpu.pipeline_mode<synchronous>, transform_indices = @transform_31, window_bounds = array<i64: 8, 128>}, {transform_indices = @transform_32, window_bounds = array<i64: 1, 8, 128>}]} {
    %c0 = arith.constant 0 : index
    %c0_0 = arith.constant 0 : index
    %c0_1 = arith.constant 0 : index
    %0 = vector.load %arg1[%c0, %c0_0, %c0_1] : memref<1x24x16xf32, #tpu.memory_space<vmem>>, vector<1x24x16xf32>
    %1 = vector.shape_cast %0 : vector<1x24x16xf32> to vector<24x16xf32>
    %c0_2 = arith.constant 0 : index
    %c0_3 = arith.constant 0 : index
    %2 = vector.load %arg3[%c0_2, %c0_3] : memref<16x512xf32, #tpu.memory_space<vmem>>, vector<16x512xf32>
    %cst = arith.constant dense<0.000000e+00> : vector<24x512xf32>
    %3 = tpu.matmul %1, %2, %cst {dimension_numbers = #tpu.dot_dimension_numbers<[1], [0], [0], [1], [0, 0, 1, 1], [], []>} : vector<24x16xf32>, vector<16x512xf32>, vector<24x512xf32> -> vector<24x512xf32>
    %c0_4 = arith.constant 0 : index
    %c0_5 = arith.constant 0 : index
    %4 = vector.load %arg4[%c0_4, %c0_5] : memref<1x512xf32, #tpu.memory_space<vmem>>, vector<1x512xf32>
    %5 = vector.broadcast %4 : vector<1x512xf32> to vector<24x512xf32>
    %6 = arith.addf %3, %5 : vector<24x512xf32>
    %cst_6 = arith.constant 0.000000e+00 : f32
    %7 = vector.broadcast %cst_6 : f32 to vector<24x512xf32>
    %8 = arith.maximumf %6, %7 : vector<24x512xf32>
    %c0_7 = arith.constant 0 : index
    %c0_8 = arith.constant 0 : index
    %9 = vector.load %arg5[%c0_7, %c0_8] : memref<512x128xf32, #tpu.memory_space<vmem>>, vector<512x128xf32>
    %cst_9 = arith.constant dense<0.000000e+00> : vector<24x128xf32>
    %10 = tpu.matmul %8, %9, %cst_9 {dimension_numbers = #tpu.dot_dimension_numbers<[1], [0], [0], [1], [0, 0, 1, 1], [], []>} : vector<24x512xf32>, vector<512x128xf32>, vector<24x128xf32> -> vector<24x128xf32>
    %c0_10 = arith.constant 0 : index
    %c0_11 = arith.constant 0 : index
    %11 = vector.load %arg6[%c0_10, %c0_11] : memref<1x128xf32, #tpu.memory_space<vmem>>, vector<1x128xf32>
    %12 = vector.broadcast %11 : vector<1x128xf32> to vector<24x128xf32>
    %13 = arith.addf %10, %12 : vector<24x128xf32>
    %c0_12 = arith.constant 0 : index
    %c0_13 = arith.constant 0 : index
    %14 = vector.load %arg2[%c0_12, %c0_13] : memref<24x128xf32, #tpu.memory_space<vmem>>, vector<24x128xf32>
    %15 = arith.addf %13, %14 : vector<24x128xf32>
    %c0_14 = arith.constant 0 : index
    %c0_15 = arith.constant 0 : index
    %16 = vector.load %arg7[%c0_14, %c0_15] : memref<128x384xf32, #tpu.memory_space<vmem>>, vector<128x384xf32>
    %cst_16 = arith.constant dense<0.000000e+00> : vector<24x384xf32>
    %17 = tpu.matmul %15, %16, %cst_16 {dimension_numbers = #tpu.dot_dimension_numbers<[1], [0], [0], [1], [0, 0, 1, 1], [], []>} : vector<24x128xf32>, vector<128x384xf32>, vector<24x384xf32> -> vector<24x384xf32>
    %c0_17 = arith.constant 0 : index
    %c0_18 = arith.constant 0 : index
    %18 = vector.load %arg8[%c0_17, %c0_18] : memref<1x384xf32, #tpu.memory_space<vmem>>, vector<1x384xf32>
    %19 = vector.broadcast %18 : vector<1x384xf32> to vector<24x384xf32>
    %20 = arith.addf %17, %19 : vector<24x384xf32>
    %21 = vector.extract_strided_slice %20 {offsets = [0, 0], sizes = [8, 128], strides = [1, 1]} : vector<24x384xf32> to vector<8x128xf32>
    %22 = vector.extract_strided_slice %20 {offsets = [0, 128], sizes = [8, 128], strides = [1, 1]} : vector<24x384xf32> to vector<8x128xf32>
    %23 = vector.extract_strided_slice %20 {offsets = [0, 256], sizes = [8, 128], strides = [1, 1]} : vector<24x384xf32> to vector<8x128xf32>
    %24 = vector.extract_strided_slice %21 {offsets = [0, 0], sizes = [8, 16], strides = [1, 1]} : vector<8x128xf32> to vector<8x16xf32>
    %25 = vector.extract_strided_slice %22 {offsets = [0, 0], sizes = [8, 16], strides = [1, 1]} : vector<8x128xf32> to vector<8x16xf32>
    %26 = vector.extract_strided_slice %23 {offsets = [0, 0], sizes = [8, 16], strides = [1, 1]} : vector<8x128xf32> to vector<8x16xf32>
    %cst_19 = arith.constant dense<0.000000e+00> : vector<8x8xf32>
    %27 = tpu.matmul %24, %25, %cst_19 {dimension_numbers = #tpu.dot_dimension_numbers<[1], [1], [0], [0], [0, 0, 1, 0], [], []>} : vector<8x16xf32>, vector<8x16xf32>, vector<8x8xf32> -> vector<8x8xf32>
    %cst_20 = arith.constant dense<0xFF800000> : vector<8xf32>
    %28 = vector.multi_reduction <maximumf>, %27, %cst_20 [1] : vector<8x8xf32> to vector<8xf32>
    %29 = vector.shape_cast %28 : vector<8xf32> to vector<8x1xf32>
    %30 = vector.broadcast %29 : vector<8x1xf32> to vector<8x8xf32>
    %31 = arith.subf %27, %30 : vector<8x8xf32>
    %32 = math.exp %31 : vector<8x8xf32>
    %cst_21 = arith.constant dense<0.000000e+00> : vector<8xf32>
    %33 = vector.multi_reduction <add>, %32, %cst_21 [1] : vector<8x8xf32> to vector<8xf32>
    %34 = vector.shape_cast %33 : vector<8xf32> to vector<8x1xf32>
    %35 = tpu.reciprocal %34 {approx = true} : vector<8x1xf32> -> vector<8x1xf32>
    %36 = vector.broadcast %35 : vector<8x1xf32> to vector<8x8xf32>
    %37 = arith.mulf %32, %36 : vector<8x8xf32>
    %cst_22 = arith.constant dense<0.000000e+00> : vector<8x16xf32>
    %38 = tpu.matmul %37, %26, %cst_22 {dimension_numbers = #tpu.dot_dimension_numbers<[1], [0], [0], [1], [0, 0, 1, 1], [], []>} : vector<8x8xf32>, vector<8x16xf32>, vector<8x16xf32> -> vector<8x16xf32>
    %39 = vector.extract_strided_slice %21 {offsets = [0, 16], sizes = [8, 16], strides = [1, 1]} : vector<8x128xf32> to vector<8x16xf32>
    %40 = vector.extract_strided_slice %22 {offsets = [0, 16], sizes = [8, 16], strides = [1, 1]} : vector<8x128xf32> to vector<8x16xf32>
    %41 = vector.extract_strided_slice %23 {offsets = [0, 16], sizes = [8, 16], strides = [1, 1]} : vector<8x128xf32> to vector<8x16xf32>
    %cst_23 = arith.constant dense<0.000000e+00> : vector<8x8xf32>
    %42 = tpu.matmul %39, %40, %cst_23 {dimension_numbers = #tpu.dot_dimension_numbers<[1], [1], [0], [0], [0, 0, 1, 0], [], []>} : vector<8x16xf32>, vector<8x16xf32>, vector<8x8xf32> -> vector<8x8xf32>
    %cst_24 = arith.constant dense<0xFF800000> : vector<8xf32>
    %43 = vector.multi_reduction <maximumf>, %42, %cst_24 [1] : vector<8x8xf32> to vector<8xf32>
    %44 = vector.shape_cast %43 : vector<8xf32> to vector<8x1xf32>
    %45 = vector.broadcast %44 : vector<8x1xf32> to vector<8x8xf32>
    %46 = arith.subf %42, %45 : vector<8x8xf32>
    %47 = math.exp %46 : vector<8x8xf32>
    %cst_25 = arith.constant dense<0.000000e+00> : vector<8xf32>
    %48 = vector.multi_reduction <add>, %47, %cst_25 [1] : vector<8x8xf32> to vector<8xf32>
    %49 = vector.shape_cast %48 : vector<8xf32> to vector<8x1xf32>
    %50 = tpu.reciprocal %49 {approx = true} : vector<8x1xf32> -> vector<8x1xf32>
    %51 = vector.broadcast %50 : vector<8x1xf32> to vector<8x8xf32>
    %52 = arith.mulf %47, %51 : vector<8x8xf32>
    %cst_26 = arith.constant dense<0.000000e+00> : vector<8x16xf32>
    %53 = tpu.matmul %52, %41, %cst_26 {dimension_numbers = #tpu.dot_dimension_numbers<[1], [0], [0], [1], [0, 0, 1, 1], [], []>} : vector<8x8xf32>, vector<8x16xf32>, vector<8x16xf32> -> vector<8x16xf32>
    %54 = vector.extract_strided_slice %21 {offsets = [0, 32], sizes = [8, 16], strides = [1, 1]} : vector<8x128xf32> to vector<8x16xf32>
    %55 = vector.extract_strided_slice %22 {offsets = [0, 32], sizes = [8, 16], strides = [1, 1]} : vector<8x128xf32> to vector<8x16xf32>
    %56 = vector.extract_strided_slice %23 {offsets = [0, 32], sizes = [8, 16], strides = [1, 1]} : vector<8x128xf32> to vector<8x16xf32>
    %cst_27 = arith.constant dense<0.000000e+00> : vector<8x8xf32>
    %57 = tpu.matmul %54, %55, %cst_27 {dimension_numbers = #tpu.dot_dimension_numbers<[1], [1], [0], [0], [0, 0, 1, 0], [], []>} : vector<8x16xf32>, vector<8x16xf32>, vector<8x8xf32> -> vector<8x8xf32>
    %cst_28 = arith.constant dense<0xFF800000> : vector<8xf32>
    %58 = vector.multi_reduction <maximumf>, %57, %cst_28 [1] : vector<8x8xf32> to vector<8xf32>
    %59 = vector.shape_cast %58 : vector<8xf32> to vector<8x1xf32>
    %60 = vector.broadcast %59 : vector<8x1xf32> to vector<8x8xf32>
    %61 = arith.subf %57, %60 : vector<8x8xf32>
    %62 = math.exp %61 : vector<8x8xf32>
    %cst_29 = arith.constant dense<0.000000e+00> : vector<8xf32>
    %63 = vector.multi_reduction <add>, %62, %cst_29 [1] : vector<8x8xf32> to vector<8xf32>
    %64 = vector.shape_cast %63 : vector<8xf32> to vector<8x1xf32>
    %65 = tpu.reciprocal %64 {approx = true} : vector<8x1xf32> -> vector<8x1xf32>
    %66 = vector.broadcast %65 : vector<8x1xf32> to vector<8x8xf32>
    %67 = arith.mulf %62, %66 : vector<8x8xf32>
    %cst_30 = arith.constant dense<0.000000e+00> : vector<8x16xf32>
    %68 = tpu.matmul %67, %56, %cst_30 {dimension_numbers = #tpu.dot_dimension_numbers<[1], [0], [0], [1], [0, 0, 1, 1], [], []>} : vector<8x8xf32>, vector<8x16xf32>, vector<8x16xf32> -> vector<8x16xf32>
    %69 = vector.extract_strided_slice %21 {offsets = [0, 48], sizes = [8, 16], strides = [1, 1]} : vector<8x128xf32> to vector<8x16xf32>
    %70 = vector.extract_strided_slice %22 {offsets = [0, 48], sizes = [8, 16], strides = [1, 1]} : vector<8x128xf32> to vector<8x16xf32>
    %71 = vector.extract_strided_slice %23 {offsets = [0, 48], sizes = [8, 16], strides = [1, 1]} : vector<8x128xf32> to vector<8x16xf32>
    %cst_31 = arith.constant dense<0.000000e+00> : vector<8x8xf32>
    %72 = tpu.matmul %69, %70, %cst_31 {dimension_numbers = #tpu.dot_dimension_numbers<[1], [1], [0], [0], [0, 0, 1, 0], [], []>} : vector<8x16xf32>, vector<8x16xf32>, vector<8x8xf32> -> vector<8x8xf32>
    %cst_32 = arith.constant dense<0xFF800000> : vector<8xf32>
    %73 = vector.multi_reduction <maximumf>, %72, %cst_32 [1] : vector<8x8xf32> to vector<8xf32>
    %74 = vector.shape_cast %73 : vector<8xf32> to vector<8x1xf32>
    %75 = vector.broadcast %74 : vector<8x1xf32> to vector<8x8xf32>
    %76 = arith.subf %72, %75 : vector<8x8xf32>
    %77 = math.exp %76 : vector<8x8xf32>
    %cst_33 = arith.constant dense<0.000000e+00> : vector<8xf32>
    %78 = vector.multi_reduction <add>, %77, %cst_33 [1] : vector<8x8xf32> to vector<8xf32>
    %79 = vector.shape_cast %78 : vector<8xf32> to vector<8x1xf32>
    %80 = tpu.reciprocal %79 {approx = true} : vector<8x1xf32> -> vector<8x1xf32>
    %81 = vector.broadcast %80 : vector<8x1xf32> to vector<8x8xf32>
    %82 = arith.mulf %77, %81 : vector<8x8xf32>
    %cst_34 = arith.constant dense<0.000000e+00> : vector<8x16xf32>
    %83 = tpu.matmul %82, %71, %cst_34 {dimension_numbers = #tpu.dot_dimension_numbers<[1], [0], [0], [1], [0, 0, 1, 1], [], []>} : vector<8x8xf32>, vector<8x16xf32>, vector<8x16xf32> -> vector<8x16xf32>
    %84 = vector.extract_strided_slice %21 {offsets = [0, 64], sizes = [8, 16], strides = [1, 1]} : vector<8x128xf32> to vector<8x16xf32>
    %85 = vector.extract_strided_slice %22 {offsets = [0, 64], sizes = [8, 16], strides = [1, 1]} : vector<8x128xf32> to vector<8x16xf32>
    %86 = vector.extract_strided_slice %23 {offsets = [0, 64], sizes = [8, 16], strides = [1, 1]} : vector<8x128xf32> to vector<8x16xf32>
    %cst_35 = arith.constant dense<0.000000e+00> : vector<8x8xf32>
    %87 = tpu.matmul %84, %85, %cst_35 {dimension_numbers = #tpu.dot_dimension_numbers<[1], [1], [0], [0], [0, 0, 1, 0], [], []>} : vector<8x16xf32>, vector<8x16xf32>, vector<8x8xf32> -> vector<8x8xf32>
    %cst_36 = arith.constant dense<0xFF800000> : vector<8xf32>
    %88 = vector.multi_reduction <maximumf>, %87, %cst_36 [1] : vector<8x8xf32> to vector<8xf32>
    %89 = vector.shape_cast %88 : vector<8xf32> to vector<8x1xf32>
    %90 = vector.broadcast %89 : vector<8x1xf32> to vector<8x8xf32>
    %91 = arith.subf %87, %90 : vector<8x8xf32>
    %92 = math.exp %91 : vector<8x8xf32>
    %cst_37 = arith.constant dense<0.000000e+00> : vector<8xf32>
    %93 = vector.multi_reduction <add>, %92, %cst_37 [1] : vector<8x8xf32> to vector<8xf32>
    %94 = vector.shape_cast %93 : vector<8xf32> to vector<8x1xf32>
    %95 = tpu.reciprocal %94 {approx = true} : vector<8x1xf32> -> vector<8x1xf32>
    %96 = vector.broadcast %95 : vector<8x1xf32> to vector<8x8xf32>
    %97 = arith.mulf %92, %96 : vector<8x8xf32>
    %cst_38 = arith.constant dense<0.000000e+00> : vector<8x16xf32>
    %98 = tpu.matmul %97, %86, %cst_38 {dimension_numbers = #tpu.dot_dimension_numbers<[1], [0], [0], [1], [0, 0, 1, 1], [], []>} : vector<8x8xf32>, vector<8x16xf32>, vector<8x16xf32> -> vector<8x16xf32>
    %99 = vector.extract_strided_slice %21 {offsets = [0, 80], sizes = [8, 16], strides = [1, 1]} : vector<8x128xf32> to vector<8x16xf32>
    %100 = vector.extract_strided_slice %22 {offsets = [0, 80], sizes = [8, 16], strides = [1, 1]} : vector<8x128xf32> to vector<8x16xf32>
    %101 = vector.extract_strided_slice %23 {offsets = [0, 80], sizes = [8, 16], strides = [1, 1]} : vector<8x128xf32> to vector<8x16xf32>
    %cst_39 = arith.constant dense<0.000000e+00> : vector<8x8xf32>
    %102 = tpu.matmul %99, %100, %cst_39 {dimension_numbers = #tpu.dot_dimension_numbers<[1], [1], [0], [0], [0, 0, 1, 0], [], []>} : vector<8x16xf32>, vector<8x16xf32>, vector<8x8xf32> -> vector<8x8xf32>
    %cst_40 = arith.constant dense<0xFF800000> : vector<8xf32>
    %103 = vector.multi_reduction <maximumf>, %102, %cst_40 [1] : vector<8x8xf32> to vector<8xf32>
    %104 = vector.shape_cast %103 : vector<8xf32> to vector<8x1xf32>
    %105 = vector.broadcast %104 : vector<8x1xf32> to vector<8x8xf32>
    %106 = arith.subf %102, %105 : vector<8x8xf32>
    %107 = math.exp %106 : vector<8x8xf32>
    %cst_41 = arith.constant dense<0.000000e+00> : vector<8xf32>
    %108 = vector.multi_reduction <add>, %107, %cst_41 [1] : vector<8x8xf32> to vector<8xf32>
    %109 = vector.shape_cast %108 : vector<8xf32> to vector<8x1xf32>
    %110 = tpu.reciprocal %109 {approx = true} : vector<8x1xf32> -> vector<8x1xf32>
    %111 = vector.broadcast %110 : vector<8x1xf32> to vector<8x8xf32>
    %112 = arith.mulf %107, %111 : vector<8x8xf32>
    %cst_42 = arith.constant dense<0.000000e+00> : vector<8x16xf32>
    %113 = tpu.matmul %112, %101, %cst_42 {dimension_numbers = #tpu.dot_dimension_numbers<[1], [0], [0], [1], [0, 0, 1, 1], [], []>} : vector<8x8xf32>, vector<8x16xf32>, vector<8x16xf32> -> vector<8x16xf32>
    %114 = vector.extract_strided_slice %21 {offsets = [0, 96], sizes = [8, 16], strides = [1, 1]} : vector<8x128xf32> to vector<8x16xf32>
    %115 = vector.extract_strided_slice %22 {offsets = [0, 96], sizes = [8, 16], strides = [1, 1]} : vector<8x128xf32> to vector<8x16xf32>
    %116 = vector.extract_strided_slice %23 {offsets = [0, 96], sizes = [8, 16], strides = [1, 1]} : vector<8x128xf32> to vector<8x16xf32>
    %cst_43 = arith.constant dense<0.000000e+00> : vector<8x8xf32>
    %117 = tpu.matmul %114, %115, %cst_43 {dimension_numbers = #tpu.dot_dimension_numbers<[1], [1], [0], [0], [0, 0, 1, 0], [], []>} : vector<8x16xf32>, vector<8x16xf32>, vector<8x8xf32> -> vector<8x8xf32>
    %cst_44 = arith.constant dense<0xFF800000> : vector<8xf32>
    %118 = vector.multi_reduction <maximumf>, %117, %cst_44 [1] : vector<8x8xf32> to vector<8xf32>
    %119 = vector.shape_cast %118 : vector<8xf32> to vector<8x1xf32>
    %120 = vector.broadcast %119 : vector<8x1xf32> to vector<8x8xf32>
    %121 = arith.subf %117, %120 : vector<8x8xf32>
    %122 = math.exp %121 : vector<8x8xf32>
    %cst_45 = arith.constant dense<0.000000e+00> : vector<8xf32>
    %123 = vector.multi_reduction <add>, %122, %cst_45 [1] : vector<8x8xf32> to vector<8xf32>
    %124 = vector.shape_cast %123 : vector<8xf32> to vector<8x1xf32>
    %125 = tpu.reciprocal %124 {approx = true} : vector<8x1xf32> -> vector<8x1xf32>
    %126 = vector.broadcast %125 : vector<8x1xf32> to vector<8x8xf32>
    %127 = arith.mulf %122, %126 : vector<8x8xf32>
    %cst_46 = arith.constant dense<0.000000e+00> : vector<8x16xf32>
    %128 = tpu.matmul %127, %116, %cst_46 {dimension_numbers = #tpu.dot_dimension_numbers<[1], [0], [0], [1], [0, 0, 1, 1], [], []>} : vector<8x8xf32>, vector<8x16xf32>, vector<8x16xf32> -> vector<8x16xf32>
    %129 = vector.extract_strided_slice %21 {offsets = [0, 112], sizes = [8, 16], strides = [1, 1]} : vector<8x128xf32> to vector<8x16xf32>
    %130 = vector.extract_strided_slice %22 {offsets = [0, 112], sizes = [8, 16], strides = [1, 1]} : vector<8x128xf32> to vector<8x16xf32>
    %131 = vector.extract_strided_slice %23 {offsets = [0, 112], sizes = [8, 16], strides = [1, 1]} : vector<8x128xf32> to vector<8x16xf32>
    %cst_47 = arith.constant dense<0.000000e+00> : vector<8x8xf32>
    %132 = tpu.matmul %129, %130, %cst_47 {dimension_numbers = #tpu.dot_dimension_numbers<[1], [1], [0], [0], [0, 0, 1, 0], [], []>} : vector<8x16xf32>, vector<8x16xf32>, vector<8x8xf32> -> vector<8x8xf32>
    %cst_48 = arith.constant dense<0xFF800000> : vector<8xf32>
    %133 = vector.multi_reduction <maximumf>, %132, %cst_48 [1] : vector<8x8xf32> to vector<8xf32>
    %134 = vector.shape_cast %133 : vector<8xf32> to vector<8x1xf32>
    %135 = vector.broadcast %134 : vector<8x1xf32> to vector<8x8xf32>
    %136 = arith.subf %132, %135 : vector<8x8xf32>
    %137 = math.exp %136 : vector<8x8xf32>
    %cst_49 = arith.constant dense<0.000000e+00> : vector<8xf32>
    %138 = vector.multi_reduction <add>, %137, %cst_49 [1] : vector<8x8xf32> to vector<8xf32>
    %139 = vector.shape_cast %138 : vector<8xf32> to vector<8x1xf32>
    %140 = tpu.reciprocal %139 {approx = true} : vector<8x1xf32> -> vector<8x1xf32>
    %141 = vector.broadcast %140 : vector<8x1xf32> to vector<8x8xf32>
    %142 = arith.mulf %137, %141 : vector<8x8xf32>
    %cst_50 = arith.constant dense<0.000000e+00> : vector<8x16xf32>
    %143 = tpu.matmul %142, %131, %cst_50 {dimension_numbers = #tpu.dot_dimension_numbers<[1], [0], [0], [1], [0, 0, 1, 1], [], []>} : vector<8x8xf32>, vector<8x16xf32>, vector<8x16xf32> -> vector<8x16xf32>
    %144 = tpu.concatenate %38, %53, %68, %83, %98, %113, %128, %143 in 1 : vector<8x16xf32>, vector<8x16xf32>, vector<8x16xf32>, vector<8x16xf32>, vector<8x16xf32>, vector<8x16xf32>, vector<8x16xf32>, vector<8x16xf32> -> vector<8x128xf32>
    %145 = vector.extract_strided_slice %20 {offsets = [8, 0], sizes = [8, 128], strides = [1, 1]} : vector<24x384xf32> to vector<8x128xf32>
    %146 = vector.extract_strided_slice %20 {offsets = [8, 128], sizes = [8, 128], strides = [1, 1]} : vector<24x384xf32> to vector<8x128xf32>
    %147 = vector.extract_strided_slice %20 {offsets = [8, 256], sizes = [8, 128], strides = [1, 1]} : vector<24x384xf32> to vector<8x128xf32>
    %148 = vector.extract_strided_slice %145 {offsets = [0, 0], sizes = [8, 16], strides = [1, 1]} : vector<8x128xf32> to vector<8x16xf32>
    %149 = vector.extract_strided_slice %146 {offsets = [0, 0], sizes = [8, 16], strides = [1, 1]} : vector<8x128xf32> to vector<8x16xf32>
    %150 = vector.extract_strided_slice %147 {offsets = [0, 0], sizes = [8, 16], strides = [1, 1]} : vector<8x128xf32> to vector<8x16xf32>
    %cst_51 = arith.constant dense<0.000000e+00> : vector<8x8xf32>
    %151 = tpu.matmul %148, %149, %cst_51 {dimension_numbers = #tpu.dot_dimension_numbers<[1], [1], [0], [0], [0, 0, 1, 0], [], []>} : vector<8x16xf32>, vector<8x16xf32>, vector<8x8xf32> -> vector<8x8xf32>
    %cst_52 = arith.constant dense<0xFF800000> : vector<8xf32>
    %152 = vector.multi_reduction <maximumf>, %151, %cst_52 [1] : vector<8x8xf32> to vector<8xf32>
    %153 = vector.shape_cast %152 : vector<8xf32> to vector<8x1xf32>
    %154 = vector.broadcast %153 : vector<8x1xf32> to vector<8x8xf32>
    %155 = arith.subf %151, %154 : vector<8x8xf32>
    %156 = math.exp %155 : vector<8x8xf32>
    %cst_53 = arith.constant dense<0.000000e+00> : vector<8xf32>
    %157 = vector.multi_reduction <add>, %156, %cst_53 [1] : vector<8x8xf32> to vector<8xf32>
    %158 = vector.shape_cast %157 : vector<8xf32> to vector<8x1xf32>
    %159 = tpu.reciprocal %158 {approx = true} : vector<8x1xf32> -> vector<8x1xf32>
    %160 = vector.broadcast %159 : vector<8x1xf32> to vector<8x8xf32>
    %161 = arith.mulf %156, %160 : vector<8x8xf32>
    %cst_54 = arith.constant dense<0.000000e+00> : vector<8x16xf32>
    %162 = tpu.matmul %161, %150, %cst_54 {dimension_numbers = #tpu.dot_dimension_numbers<[1], [0], [0], [1], [0, 0, 1, 1], [], []>} : vector<8x8xf32>, vector<8x16xf32>, vector<8x16xf32> -> vector<8x16xf32>
    %163 = vector.extract_strided_slice %145 {offsets = [0, 16], sizes = [8, 16], strides = [1, 1]} : vector<8x128xf32> to vector<8x16xf32>
    %164 = vector.extract_strided_slice %146 {offsets = [0, 16], sizes = [8, 16], strides = [1, 1]} : vector<8x128xf32> to vector<8x16xf32>
    %165 = vector.extract_strided_slice %147 {offsets = [0, 16], sizes = [8, 16], strides = [1, 1]} : vector<8x128xf32> to vector<8x16xf32>
    %cst_55 = arith.constant dense<0.000000e+00> : vector<8x8xf32>
    %166 = tpu.matmul %163, %164, %cst_55 {dimension_numbers = #tpu.dot_dimension_numbers<[1], [1], [0], [0], [0, 0, 1, 0], [], []>} : vector<8x16xf32>, vector<8x16xf32>, vector<8x8xf32> -> vector<8x8xf32>
    %cst_56 = arith.constant dense<0xFF800000> : vector<8xf32>
    %167 = vector.multi_reduction <maximumf>, %166, %cst_56 [1] : vector<8x8xf32> to vector<8xf32>
    %168 = vector.shape_cast %167 : vector<8xf32> to vector<8x1xf32>
    %169 = vector.broadcast %168 : vector<8x1xf32> to vector<8x8xf32>
    %170 = arith.subf %166, %169 : vector<8x8xf32>
    %171 = math.exp %170 : vector<8x8xf32>
    %cst_57 = arith.constant dense<0.000000e+00> : vector<8xf32>
    %172 = vector.multi_reduction <add>, %171, %cst_57 [1] : vector<8x8xf32> to vector<8xf32>
    %173 = vector.shape_cast %172 : vector<8xf32> to vector<8x1xf32>
    %174 = tpu.reciprocal %173 {approx = true} : vector<8x1xf32> -> vector<8x1xf32>
    %175 = vector.broadcast %174 : vector<8x1xf32> to vector<8x8xf32>
    %176 = arith.mulf %171, %175 : vector<8x8xf32>
    %cst_58 = arith.constant dense<0.000000e+00> : vector<8x16xf32>
    %177 = tpu.matmul %176, %165, %cst_58 {dimension_numbers = #tpu.dot_dimension_numbers<[1], [0], [0], [1], [0, 0, 1, 1], [], []>} : vector<8x8xf32>, vector<8x16xf32>, vector<8x16xf32> -> vector<8x16xf32>
    %178 = vector.extract_strided_slice %145 {offsets = [0, 32], sizes = [8, 16], strides = [1, 1]} : vector<8x128xf32> to vector<8x16xf32>
    %179 = vector.extract_strided_slice %146 {offsets = [0, 32], sizes = [8, 16], strides = [1, 1]} : vector<8x128xf32> to vector<8x16xf32>
    %180 = vector.extract_strided_slice %147 {offsets = [0, 32], sizes = [8, 16], strides = [1, 1]} : vector<8x128xf32> to vector<8x16xf32>
    %cst_59 = arith.constant dense<0.000000e+00> : vector<8x8xf32>
    %181 = tpu.matmul %178, %179, %cst_59 {dimension_numbers = #tpu.dot_dimension_numbers<[1], [1], [0], [0], [0, 0, 1, 0], [], []>} : vector<8x16xf32>, vector<8x16xf32>, vector<8x8xf32> -> vector<8x8xf32>
    %cst_60 = arith.constant dense<0xFF800000> : vector<8xf32>
    %182 = vector.multi_reduction <maximumf>, %181, %cst_60 [1] : vector<8x8xf32> to vector<8xf32>
    %183 = vector.shape_cast %182 : vector<8xf32> to vector<8x1xf32>
    %184 = vector.broadcast %183 : vector<8x1xf32> to vector<8x8xf32>
    %185 = arith.subf %181, %184 : vector<8x8xf32>
    %186 = math.exp %185 : vector<8x8xf32>
    %cst_61 = arith.constant dense<0.000000e+00> : vector<8xf32>
    %187 = vector.multi_reduction <add>, %186, %cst_61 [1] : vector<8x8xf32> to vector<8xf32>
    %188 = vector.shape_cast %187 : vector<8xf32> to vector<8x1xf32>
    %189 = tpu.reciprocal %188 {approx = true} : vector<8x1xf32> -> vector<8x1xf32>
    %190 = vector.broadcast %189 : vector<8x1xf32> to vector<8x8xf32>
    %191 = arith.mulf %186, %190 : vector<8x8xf32>
    %cst_62 = arith.constant dense<0.000000e+00> : vector<8x16xf32>
    %192 = tpu.matmul %191, %180, %cst_62 {dimension_numbers = #tpu.dot_dimension_numbers<[1], [0], [0], [1], [0, 0, 1, 1], [], []>} : vector<8x8xf32>, vector<8x16xf32>, vector<8x16xf32> -> vector<8x16xf32>
    %193 = vector.extract_strided_slice %145 {offsets = [0, 48], sizes = [8, 16], strides = [1, 1]} : vector<8x128xf32> to vector<8x16xf32>
    %194 = vector.extract_strided_slice %146 {offsets = [0, 48], sizes = [8, 16], strides = [1, 1]} : vector<8x128xf32> to vector<8x16xf32>
    %195 = vector.extract_strided_slice %147 {offsets = [0, 48], sizes = [8, 16], strides = [1, 1]} : vector<8x128xf32> to vector<8x16xf32>
    %cst_63 = arith.constant dense<0.000000e+00> : vector<8x8xf32>
    %196 = tpu.matmul %193, %194, %cst_63 {dimension_numbers = #tpu.dot_dimension_numbers<[1], [1], [0], [0], [0, 0, 1, 0], [], []>} : vector<8x16xf32>, vector<8x16xf32>, vector<8x8xf32> -> vector<8x8xf32>
    %cst_64 = arith.constant dense<0xFF800000> : vector<8xf32>
    %197 = vector.multi_reduction <maximumf>, %196, %cst_64 [1] : vector<8x8xf32> to vector<8xf32>
    %198 = vector.shape_cast %197 : vector<8xf32> to vector<8x1xf32>
    %199 = vector.broadcast %198 : vector<8x1xf32> to vector<8x8xf32>
    %200 = arith.subf %196, %199 : vector<8x8xf32>
    %201 = math.exp %200 : vector<8x8xf32>
    %cst_65 = arith.constant dense<0.000000e+00> : vector<8xf32>
    %202 = vector.multi_reduction <add>, %201, %cst_65 [1] : vector<8x8xf32> to vector<8xf32>
    %203 = vector.shape_cast %202 : vector<8xf32> to vector<8x1xf32>
    %204 = tpu.reciprocal %203 {approx = true} : vector<8x1xf32> -> vector<8x1xf32>
    %205 = vector.broadcast %204 : vector<8x1xf32> to vector<8x8xf32>
    %206 = arith.mulf %201, %205 : vector<8x8xf32>
    %cst_66 = arith.constant dense<0.000000e+00> : vector<8x16xf32>
    %207 = tpu.matmul %206, %195, %cst_66 {dimension_numbers = #tpu.dot_dimension_numbers<[1], [0], [0], [1], [0, 0, 1, 1], [], []>} : vector<8x8xf32>, vector<8x16xf32>, vector<8x16xf32> -> vector<8x16xf32>
    %208 = vector.extract_strided_slice %145 {offsets = [0, 64], sizes = [8, 16], strides = [1, 1]} : vector<8x128xf32> to vector<8x16xf32>
    %209 = vector.extract_strided_slice %146 {offsets = [0, 64], sizes = [8, 16], strides = [1, 1]} : vector<8x128xf32> to vector<8x16xf32>
    %210 = vector.extract_strided_slice %147 {offsets = [0, 64], sizes = [8, 16], strides = [1, 1]} : vector<8x128xf32> to vector<8x16xf32>
    %cst_67 = arith.constant dense<0.000000e+00> : vector<8x8xf32>
    %211 = tpu.matmul %208, %209, %cst_67 {dimension_numbers = #tpu.dot_dimension_numbers<[1], [1], [0], [0], [0, 0, 1, 0], [], []>} : vector<8x16xf32>, vector<8x16xf32>, vector<8x8xf32> -> vector<8x8xf32>
    %cst_68 = arith.constant dense<0xFF800000> : vector<8xf32>
    %212 = vector.multi_reduction <maximumf>, %211, %cst_68 [1] : vector<8x8xf32> to vector<8xf32>
    %213 = vector.shape_cast %212 : vector<8xf32> to vector<8x1xf32>
    %214 = vector.broadcast %213 : vector<8x1xf32> to vector<8x8xf32>
    %215 = arith.subf %211, %214 : vector<8x8xf32>
    %216 = math.exp %215 : vector<8x8xf32>
    %cst_69 = arith.constant dense<0.000000e+00> : vector<8xf32>
    %217 = vector.multi_reduction <add>, %216, %cst_69 [1] : vector<8x8xf32> to vector<8xf32>
    %218 = vector.shape_cast %217 : vector<8xf32> to vector<8x1xf32>
    %219 = tpu.reciprocal %218 {approx = true} : vector<8x1xf32> -> vector<8x1xf32>
    %220 = vector.broadcast %219 : vector<8x1xf32> to vector<8x8xf32>
    %221 = arith.mulf %216, %220 : vector<8x8xf32>
    %cst_70 = arith.constant dense<0.000000e+00> : vector<8x16xf32>
    %222 = tpu.matmul %221, %210, %cst_70 {dimension_numbers = #tpu.dot_dimension_numbers<[1], [0], [0], [1], [0, 0, 1, 1], [], []>} : vector<8x8xf32>, vector<8x16xf32>, vector<8x16xf32> -> vector<8x16xf32>
    %223 = vector.extract_strided_slice %145 {offsets = [0, 80], sizes = [8, 16], strides = [1, 1]} : vector<8x128xf32> to vector<8x16xf32>
    %224 = vector.extract_strided_slice %146 {offsets = [0, 80], sizes = [8, 16], strides = [1, 1]} : vector<8x128xf32> to vector<8x16xf32>
    %225 = vector.extract_strided_slice %147 {offsets = [0, 80], sizes = [8, 16], strides = [1, 1]} : vector<8x128xf32> to vector<8x16xf32>
    %cst_71 = arith.constant dense<0.000000e+00> : vector<8x8xf32>
    %226 = tpu.matmul %223, %224, %cst_71 {dimension_numbers = #tpu.dot_dimension_numbers<[1], [1], [0], [0], [0, 0, 1, 0], [], []>} : vector<8x16xf32>, vector<8x16xf32>, vector<8x8xf32> -> vector<8x8xf32>
    %cst_72 = arith.constant dense<0xFF800000> : vector<8xf32>
    %227 = vector.multi_reduction <maximumf>, %226, %cst_72 [1] : vector<8x8xf32> to vector<8xf32>
    %228 = vector.shape_cast %227 : vector<8xf32> to vector<8x1xf32>
    %229 = vector.broadcast %228 : vector<8x1xf32> to vector<8x8xf32>
    %230 = arith.subf %226, %229 : vector<8x8xf32>
    %231 = math.exp %230 : vector<8x8xf32>
    %cst_73 = arith.constant dense<0.000000e+00> : vector<8xf32>
    %232 = vector.multi_reduction <add>, %231, %cst_73 [1] : vector<8x8xf32> to vector<8xf32>
    %233 = vector.shape_cast %232 : vector<8xf32> to vector<8x1xf32>
    %234 = tpu.reciprocal %233 {approx = true} : vector<8x1xf32> -> vector<8x1xf32>
    %235 = vector.broadcast %234 : vector<8x1xf32> to vector<8x8xf32>
    %236 = arith.mulf %231, %235 : vector<8x8xf32>
    %cst_74 = arith.constant dense<0.000000e+00> : vector<8x16xf32>
    %237 = tpu.matmul %236, %225, %cst_74 {dimension_numbers = #tpu.dot_dimension_numbers<[1], [0], [0], [1], [0, 0, 1, 1], [], []>} : vector<8x8xf32>, vector<8x16xf32>, vector<8x16xf32> -> vector<8x16xf32>
    %238 = vector.extract_strided_slice %145 {offsets = [0, 96], sizes = [8, 16], strides = [1, 1]} : vector<8x128xf32> to vector<8x16xf32>
    %239 = vector.extract_strided_slice %146 {offsets = [0, 96], sizes = [8, 16], strides = [1, 1]} : vector<8x128xf32> to vector<8x16xf32>
    %240 = vector.extract_strided_slice %147 {offsets = [0, 96], sizes = [8, 16], strides = [1, 1]} : vector<8x128xf32> to vector<8x16xf32>
    %cst_75 = arith.constant dense<0.000000e+00> : vector<8x8xf32>
    %241 = tpu.matmul %238, %239, %cst_75 {dimension_numbers = #tpu.dot_dimension_numbers<[1], [1], [0], [0], [0, 0, 1, 0], [], []>} : vector<8x16xf32>, vector<8x16xf32>, vector<8x8xf32> -> vector<8x8xf32>
    %cst_76 = arith.constant dense<0xFF800000> : vector<8xf32>
    %242 = vector.multi_reduction <maximumf>, %241, %cst_76 [1] : vector<8x8xf32> to vector<8xf32>
    %243 = vector.shape_cast %242 : vector<8xf32> to vector<8x1xf32>
    %244 = vector.broadcast %243 : vector<8x1xf32> to vector<8x8xf32>
    %245 = arith.subf %241, %244 : vector<8x8xf32>
    %246 = math.exp %245 : vector<8x8xf32>
    %cst_77 = arith.constant dense<0.000000e+00> : vector<8xf32>
    %247 = vector.multi_reduction <add>, %246, %cst_77 [1] : vector<8x8xf32> to vector<8xf32>
    %248 = vector.shape_cast %247 : vector<8xf32> to vector<8x1xf32>
    %249 = tpu.reciprocal %248 {approx = true} : vector<8x1xf32> -> vector<8x1xf32>
    %250 = vector.broadcast %249 : vector<8x1xf32> to vector<8x8xf32>
    %251 = arith.mulf %246, %250 : vector<8x8xf32>
    %cst_78 = arith.constant dense<0.000000e+00> : vector<8x16xf32>
    %252 = tpu.matmul %251, %240, %cst_78 {dimension_numbers = #tpu.dot_dimension_numbers<[1], [0], [0], [1], [0, 0, 1, 1], [], []>} : vector<8x8xf32>, vector<8x16xf32>, vector<8x16xf32> -> vector<8x16xf32>
    %253 = vector.extract_strided_slice %145 {offsets = [0, 112], sizes = [8, 16], strides = [1, 1]} : vector<8x128xf32> to vector<8x16xf32>
    %254 = vector.extract_strided_slice %146 {offsets = [0, 112], sizes = [8, 16], strides = [1, 1]} : vector<8x128xf32> to vector<8x16xf32>
    %255 = vector.extract_strided_slice %147 {offsets = [0, 112], sizes = [8, 16], strides = [1, 1]} : vector<8x128xf32> to vector<8x16xf32>
    %cst_79 = arith.constant dense<0.000000e+00> : vector<8x8xf32>
    %256 = tpu.matmul %253, %254, %cst_79 {dimension_numbers = #tpu.dot_dimension_numbers<[1], [1], [0], [0], [0, 0, 1, 0], [], []>} : vector<8x16xf32>, vector<8x16xf32>, vector<8x8xf32> -> vector<8x8xf32>
    %cst_80 = arith.constant dense<0xFF800000> : vector<8xf32>
    %257 = vector.multi_reduction <maximumf>, %256, %cst_80 [1] : vector<8x8xf32> to vector<8xf32>
    %258 = vector.shape_cast %257 : vector<8xf32> to vector<8x1xf32>
    %259 = vector.broadcast %258 : vector<8x1xf32> to vector<8x8xf32>
    %260 = arith.subf %256, %259 : vector<8x8xf32>
    %261 = math.exp %260 : vector<8x8xf32>
    %cst_81 = arith.constant dense<0.000000e+00> : vector<8xf32>
    %262 = vector.multi_reduction <add>, %261, %cst_81 [1] : vector<8x8xf32> to vector<8xf32>
    %263 = vector.shape_cast %262 : vector<8xf32> to vector<8x1xf32>
    %264 = tpu.reciprocal %263 {approx = true} : vector<8x1xf32> -> vector<8x1xf32>
    %265 = vector.broadcast %264 : vector<8x1xf32> to vector<8x8xf32>
    %266 = arith.mulf %261, %265 : vector<8x8xf32>
    %cst_82 = arith.constant dense<0.000000e+00> : vector<8x16xf32>
    %267 = tpu.matmul %266, %255, %cst_82 {dimension_numbers = #tpu.dot_dimension_numbers<[1], [0], [0], [1], [0, 0, 1, 1], [], []>} : vector<8x8xf32>, vector<8x16xf32>, vector<8x16xf32> -> vector<8x16xf32>
    %268 = tpu.concatenate %162, %177, %192, %207, %222, %237, %252, %267 in 1 : vector<8x16xf32>, vector<8x16xf32>, vector<8x16xf32>, vector<8x16xf32>, vector<8x16xf32>, vector<8x16xf32>, vector<8x16xf32>, vector<8x16xf32> -> vector<8x128xf32>
    %269 = vector.extract_strided_slice %20 {offsets = [16, 0], sizes = [8, 128], strides = [1, 1]} : vector<24x384xf32> to vector<8x128xf32>
    %270 = vector.extract_strided_slice %20 {offsets = [16, 128], sizes = [8, 128], strides = [1, 1]} : vector<24x384xf32> to vector<8x128xf32>
    %271 = vector.extract_strided_slice %20 {offsets = [16, 256], sizes = [8, 128], strides = [1, 1]} : vector<24x384xf32> to vector<8x128xf32>
    %272 = vector.extract_strided_slice %269 {offsets = [0, 0], sizes = [8, 16], strides = [1, 1]} : vector<8x128xf32> to vector<8x16xf32>
    %273 = vector.extract_strided_slice %270 {offsets = [0, 0], sizes = [8, 16], strides = [1, 1]} : vector<8x128xf32> to vector<8x16xf32>
    %274 = vector.extract_strided_slice %271 {offsets = [0, 0], sizes = [8, 16], strides = [1, 1]} : vector<8x128xf32> to vector<8x16xf32>
    %cst_83 = arith.constant dense<0.000000e+00> : vector<8x8xf32>
    %275 = tpu.matmul %272, %273, %cst_83 {dimension_numbers = #tpu.dot_dimension_numbers<[1], [1], [0], [0], [0, 0, 1, 0], [], []>} : vector<8x16xf32>, vector<8x16xf32>, vector<8x8xf32> -> vector<8x8xf32>
    %cst_84 = arith.constant dense<0xFF800000> : vector<8xf32>
    %276 = vector.multi_reduction <maximumf>, %275, %cst_84 [1] : vector<8x8xf32> to vector<8xf32>
    %277 = vector.shape_cast %276 : vector<8xf32> to vector<8x1xf32>
    %278 = vector.broadcast %277 : vector<8x1xf32> to vector<8x8xf32>
    %279 = arith.subf %275, %278 : vector<8x8xf32>
    %280 = math.exp %279 : vector<8x8xf32>
    %cst_85 = arith.constant dense<0.000000e+00> : vector<8xf32>
    %281 = vector.multi_reduction <add>, %280, %cst_85 [1] : vector<8x8xf32> to vector<8xf32>
    %282 = vector.shape_cast %281 : vector<8xf32> to vector<8x1xf32>
    %283 = tpu.reciprocal %282 {approx = true} : vector<8x1xf32> -> vector<8x1xf32>
    %284 = vector.broadcast %283 : vector<8x1xf32> to vector<8x8xf32>
    %285 = arith.mulf %280, %284 : vector<8x8xf32>
    %cst_86 = arith.constant dense<0.000000e+00> : vector<8x16xf32>
    %286 = tpu.matmul %285, %274, %cst_86 {dimension_numbers = #tpu.dot_dimension_numbers<[1], [0], [0], [1], [0, 0, 1, 1], [], []>} : vector<8x8xf32>, vector<8x16xf32>, vector<8x16xf32> -> vector<8x16xf32>
    %287 = vector.extract_strided_slice %269 {offsets = [0, 16], sizes = [8, 16], strides = [1, 1]} : vector<8x128xf32> to vector<8x16xf32>
    %288 = vector.extract_strided_slice %270 {offsets = [0, 16], sizes = [8, 16], strides = [1, 1]} : vector<8x128xf32> to vector<8x16xf32>
    %289 = vector.extract_strided_slice %271 {offsets = [0, 16], sizes = [8, 16], strides = [1, 1]} : vector<8x128xf32> to vector<8x16xf32>
    %cst_87 = arith.constant dense<0.000000e+00> : vector<8x8xf32>
    %290 = tpu.matmul %287, %288, %cst_87 {dimension_numbers = #tpu.dot_dimension_numbers<[1], [1], [0], [0], [0, 0, 1, 0], [], []>} : vector<8x16xf32>, vector<8x16xf32>, vector<8x8xf32> -> vector<8x8xf32>
    %cst_88 = arith.constant dense<0xFF800000> : vector<8xf32>
    %291 = vector.multi_reduction <maximumf>, %290, %cst_88 [1] : vector<8x8xf32> to vector<8xf32>
    %292 = vector.shape_cast %291 : vector<8xf32> to vector<8x1xf32>
    %293 = vector.broadcast %292 : vector<8x1xf32> to vector<8x8xf32>
    %294 = arith.subf %290, %293 : vector<8x8xf32>
    %295 = math.exp %294 : vector<8x8xf32>
    %cst_89 = arith.constant dense<0.000000e+00> : vector<8xf32>
    %296 = vector.multi_reduction <add>, %295, %cst_89 [1] : vector<8x8xf32> to vector<8xf32>
    %297 = vector.shape_cast %296 : vector<8xf32> to vector<8x1xf32>
    %298 = tpu.reciprocal %297 {approx = true} : vector<8x1xf32> -> vector<8x1xf32>
    %299 = vector.broadcast %298 : vector<8x1xf32> to vector<8x8xf32>
    %300 = arith.mulf %295, %299 : vector<8x8xf32>
    %cst_90 = arith.constant dense<0.000000e+00> : vector<8x16xf32>
    %301 = tpu.matmul %300, %289, %cst_90 {dimension_numbers = #tpu.dot_dimension_numbers<[1], [0], [0], [1], [0, 0, 1, 1], [], []>} : vector<8x8xf32>, vector<8x16xf32>, vector<8x16xf32> -> vector<8x16xf32>
    %302 = vector.extract_strided_slice %269 {offsets = [0, 32], sizes = [8, 16], strides = [1, 1]} : vector<8x128xf32> to vector<8x16xf32>
    %303 = vector.extract_strided_slice %270 {offsets = [0, 32], sizes = [8, 16], strides = [1, 1]} : vector<8x128xf32> to vector<8x16xf32>
    %304 = vector.extract_strided_slice %271 {offsets = [0, 32], sizes = [8, 16], strides = [1, 1]} : vector<8x128xf32> to vector<8x16xf32>
    %cst_91 = arith.constant dense<0.000000e+00> : vector<8x8xf32>
    %305 = tpu.matmul %302, %303, %cst_91 {dimension_numbers = #tpu.dot_dimension_numbers<[1], [1], [0], [0], [0, 0, 1, 0], [], []>} : vector<8x16xf32>, vector<8x16xf32>, vector<8x8xf32> -> vector<8x8xf32>
    %cst_92 = arith.constant dense<0xFF800000> : vector<8xf32>
    %306 = vector.multi_reduction <maximumf>, %305, %cst_92 [1] : vector<8x8xf32> to vector<8xf32>
    %307 = vector.shape_cast %306 : vector<8xf32> to vector<8x1xf32>
    %308 = vector.broadcast %307 : vector<8x1xf32> to vector<8x8xf32>
    %309 = arith.subf %305, %308 : vector<8x8xf32>
    %310 = math.exp %309 : vector<8x8xf32>
    %cst_93 = arith.constant dense<0.000000e+00> : vector<8xf32>
    %311 = vector.multi_reduction <add>, %310, %cst_93 [1] : vector<8x8xf32> to vector<8xf32>
    %312 = vector.shape_cast %311 : vector<8xf32> to vector<8x1xf32>
    %313 = tpu.reciprocal %312 {approx = true} : vector<8x1xf32> -> vector<8x1xf32>
    %314 = vector.broadcast %313 : vector<8x1xf32> to vector<8x8xf32>
    %315 = arith.mulf %310, %314 : vector<8x8xf32>
    %cst_94 = arith.constant dense<0.000000e+00> : vector<8x16xf32>
    %316 = tpu.matmul %315, %304, %cst_94 {dimension_numbers = #tpu.dot_dimension_numbers<[1], [0], [0], [1], [0, 0, 1, 1], [], []>} : vector<8x8xf32>, vector<8x16xf32>, vector<8x16xf32> -> vector<8x16xf32>
    %317 = vector.extract_strided_slice %269 {offsets = [0, 48], sizes = [8, 16], strides = [1, 1]} : vector<8x128xf32> to vector<8x16xf32>
    %318 = vector.extract_strided_slice %270 {offsets = [0, 48], sizes = [8, 16], strides = [1, 1]} : vector<8x128xf32> to vector<8x16xf32>
    %319 = vector.extract_strided_slice %271 {offsets = [0, 48], sizes = [8, 16], strides = [1, 1]} : vector<8x128xf32> to vector<8x16xf32>
    %cst_95 = arith.constant dense<0.000000e+00> : vector<8x8xf32>
    %320 = tpu.matmul %317, %318, %cst_95 {dimension_numbers = #tpu.dot_dimension_numbers<[1], [1], [0], [0], [0, 0, 1, 0], [], []>} : vector<8x16xf32>, vector<8x16xf32>, vector<8x8xf32> -> vector<8x8xf32>
    %cst_96 = arith.constant dense<0xFF800000> : vector<8xf32>
    %321 = vector.multi_reduction <maximumf>, %320, %cst_96 [1] : vector<8x8xf32> to vector<8xf32>
    %322 = vector.shape_cast %321 : vector<8xf32> to vector<8x1xf32>
    %323 = vector.broadcast %322 : vector<8x1xf32> to vector<8x8xf32>
    %324 = arith.subf %320, %323 : vector<8x8xf32>
    %325 = math.exp %324 : vector<8x8xf32>
    %cst_97 = arith.constant dense<0.000000e+00> : vector<8xf32>
    %326 = vector.multi_reduction <add>, %325, %cst_97 [1] : vector<8x8xf32> to vector<8xf32>
    %327 = vector.shape_cast %326 : vector<8xf32> to vector<8x1xf32>
    %328 = tpu.reciprocal %327 {approx = true} : vector<8x1xf32> -> vector<8x1xf32>
    %329 = vector.broadcast %328 : vector<8x1xf32> to vector<8x8xf32>
    %330 = arith.mulf %325, %329 : vector<8x8xf32>
    %cst_98 = arith.constant dense<0.000000e+00> : vector<8x16xf32>
    %331 = tpu.matmul %330, %319, %cst_98 {dimension_numbers = #tpu.dot_dimension_numbers<[1], [0], [0], [1], [0, 0, 1, 1], [], []>} : vector<8x8xf32>, vector<8x16xf32>, vector<8x16xf32> -> vector<8x16xf32>
    %332 = vector.extract_strided_slice %269 {offsets = [0, 64], sizes = [8, 16], strides = [1, 1]} : vector<8x128xf32> to vector<8x16xf32>
    %333 = vector.extract_strided_slice %270 {offsets = [0, 64], sizes = [8, 16], strides = [1, 1]} : vector<8x128xf32> to vector<8x16xf32>
    %334 = vector.extract_strided_slice %271 {offsets = [0, 64], sizes = [8, 16], strides = [1, 1]} : vector<8x128xf32> to vector<8x16xf32>
    %cst_99 = arith.constant dense<0.000000e+00> : vector<8x8xf32>
    %335 = tpu.matmul %332, %333, %cst_99 {dimension_numbers = #tpu.dot_dimension_numbers<[1], [1], [0], [0], [0, 0, 1, 0], [], []>} : vector<8x16xf32>, vector<8x16xf32>, vector<8x8xf32> -> vector<8x8xf32>
    %cst_100 = arith.constant dense<0xFF800000> : vector<8xf32>
    %336 = vector.multi_reduction <maximumf>, %335, %cst_100 [1] : vector<8x8xf32> to vector<8xf32>
    %337 = vector.shape_cast %336 : vector<8xf32> to vector<8x1xf32>
    %338 = vector.broadcast %337 : vector<8x1xf32> to vector<8x8xf32>
    %339 = arith.subf %335, %338 : vector<8x8xf32>
    %340 = math.exp %339 : vector<8x8xf32>
    %cst_101 = arith.constant dense<0.000000e+00> : vector<8xf32>
    %341 = vector.multi_reduction <add>, %340, %cst_101 [1] : vector<8x8xf32> to vector<8xf32>
    %342 = vector.shape_cast %341 : vector<8xf32> to vector<8x1xf32>
    %343 = tpu.reciprocal %342 {approx = true} : vector<8x1xf32> -> vector<8x1xf32>
    %344 = vector.broadcast %343 : vector<8x1xf32> to vector<8x8xf32>
    %345 = arith.mulf %340, %344 : vector<8x8xf32>
    %cst_102 = arith.constant dense<0.000000e+00> : vector<8x16xf32>
    %346 = tpu.matmul %345, %334, %cst_102 {dimension_numbers = #tpu.dot_dimension_numbers<[1], [0], [0], [1], [0, 0, 1, 1], [], []>} : vector<8x8xf32>, vector<8x16xf32>, vector<8x16xf32> -> vector<8x16xf32>
    %347 = vector.extract_strided_slice %269 {offsets = [0, 80], sizes = [8, 16], strides = [1, 1]} : vector<8x128xf32> to vector<8x16xf32>
    %348 = vector.extract_strided_slice %270 {offsets = [0, 80], sizes = [8, 16], strides = [1, 1]} : vector<8x128xf32> to vector<8x16xf32>
    %349 = vector.extract_strided_slice %271 {offsets = [0, 80], sizes = [8, 16], strides = [1, 1]} : vector<8x128xf32> to vector<8x16xf32>
    %cst_103 = arith.constant dense<0.000000e+00> : vector<8x8xf32>
    %350 = tpu.matmul %347, %348, %cst_103 {dimension_numbers = #tpu.dot_dimension_numbers<[1], [1], [0], [0], [0, 0, 1, 0], [], []>} : vector<8x16xf32>, vector<8x16xf32>, vector<8x8xf32> -> vector<8x8xf32>
    %cst_104 = arith.constant dense<0xFF800000> : vector<8xf32>
    %351 = vector.multi_reduction <maximumf>, %350, %cst_104 [1] : vector<8x8xf32> to vector<8xf32>
    %352 = vector.shape_cast %351 : vector<8xf32> to vector<8x1xf32>
    %353 = vector.broadcast %352 : vector<8x1xf32> to vector<8x8xf32>
    %354 = arith.subf %350, %353 : vector<8x8xf32>
    %355 = math.exp %354 : vector<8x8xf32>
    %cst_105 = arith.constant dense<0.000000e+00> : vector<8xf32>
    %356 = vector.multi_reduction <add>, %355, %cst_105 [1] : vector<8x8xf32> to vector<8xf32>
    %357 = vector.shape_cast %356 : vector<8xf32> to vector<8x1xf32>
    %358 = tpu.reciprocal %357 {approx = true} : vector<8x1xf32> -> vector<8x1xf32>
    %359 = vector.broadcast %358 : vector<8x1xf32> to vector<8x8xf32>
    %360 = arith.mulf %355, %359 : vector<8x8xf32>
    %cst_106 = arith.constant dense<0.000000e+00> : vector<8x16xf32>
    %361 = tpu.matmul %360, %349, %cst_106 {dimension_numbers = #tpu.dot_dimension_numbers<[1], [0], [0], [1], [0, 0, 1, 1], [], []>} : vector<8x8xf32>, vector<8x16xf32>, vector<8x16xf32> -> vector<8x16xf32>
    %362 = vector.extract_strided_slice %269 {offsets = [0, 96], sizes = [8, 16], strides = [1, 1]} : vector<8x128xf32> to vector<8x16xf32>
    %363 = vector.extract_strided_slice %270 {offsets = [0, 96], sizes = [8, 16], strides = [1, 1]} : vector<8x128xf32> to vector<8x16xf32>
    %364 = vector.extract_strided_slice %271 {offsets = [0, 96], sizes = [8, 16], strides = [1, 1]} : vector<8x128xf32> to vector<8x16xf32>
    %cst_107 = arith.constant dense<0.000000e+00> : vector<8x8xf32>
    %365 = tpu.matmul %362, %363, %cst_107 {dimension_numbers = #tpu.dot_dimension_numbers<[1], [1], [0], [0], [0, 0, 1, 0], [], []>} : vector<8x16xf32>, vector<8x16xf32>, vector<8x8xf32> -> vector<8x8xf32>
    %cst_108 = arith.constant dense<0xFF800000> : vector<8xf32>
    %366 = vector.multi_reduction <maximumf>, %365, %cst_108 [1] : vector<8x8xf32> to vector<8xf32>
    %367 = vector.shape_cast %366 : vector<8xf32> to vector<8x1xf32>
    %368 = vector.broadcast %367 : vector<8x1xf32> to vector<8x8xf32>
    %369 = arith.subf %365, %368 : vector<8x8xf32>
    %370 = math.exp %369 : vector<8x8xf32>
    %cst_109 = arith.constant dense<0.000000e+00> : vector<8xf32>
    %371 = vector.multi_reduction <add>, %370, %cst_109 [1] : vector<8x8xf32> to vector<8xf32>
    %372 = vector.shape_cast %371 : vector<8xf32> to vector<8x1xf32>
    %373 = tpu.reciprocal %372 {approx = true} : vector<8x1xf32> -> vector<8x1xf32>
    %374 = vector.broadcast %373 : vector<8x1xf32> to vector<8x8xf32>
    %375 = arith.mulf %370, %374 : vector<8x8xf32>
    %cst_110 = arith.constant dense<0.000000e+00> : vector<8x16xf32>
    %376 = tpu.matmul %375, %364, %cst_110 {dimension_numbers = #tpu.dot_dimension_numbers<[1], [0], [0], [1], [0, 0, 1, 1], [], []>} : vector<8x8xf32>, vector<8x16xf32>, vector<8x16xf32> -> vector<8x16xf32>
    %377 = vector.extract_strided_slice %269 {offsets = [0, 112], sizes = [8, 16], strides = [1, 1]} : vector<8x128xf32> to vector<8x16xf32>
    %378 = vector.extract_strided_slice %270 {offsets = [0, 112], sizes = [8, 16], strides = [1, 1]} : vector<8x128xf32> to vector<8x16xf32>
    %379 = vector.extract_strided_slice %271 {offsets = [0, 112], sizes = [8, 16], strides = [1, 1]} : vector<8x128xf32> to vector<8x16xf32>
    %cst_111 = arith.constant dense<0.000000e+00> : vector<8x8xf32>
    %380 = tpu.matmul %377, %378, %cst_111 {dimension_numbers = #tpu.dot_dimension_numbers<[1], [1], [0], [0], [0, 0, 1, 0], [], []>} : vector<8x16xf32>, vector<8x16xf32>, vector<8x8xf32> -> vector<8x8xf32>
    %cst_112 = arith.constant dense<0xFF800000> : vector<8xf32>
    %381 = vector.multi_reduction <maximumf>, %380, %cst_112 [1] : vector<8x8xf32> to vector<8xf32>
    %382 = vector.shape_cast %381 : vector<8xf32> to vector<8x1xf32>
    %383 = vector.broadcast %382 : vector<8x1xf32> to vector<8x8xf32>
    %384 = arith.subf %380, %383 : vector<8x8xf32>
    %385 = math.exp %384 : vector<8x8xf32>
    %cst_113 = arith.constant dense<0.000000e+00> : vector<8xf32>
    %386 = vector.multi_reduction <add>, %385, %cst_113 [1] : vector<8x8xf32> to vector<8xf32>
    %387 = vector.shape_cast %386 : vector<8xf32> to vector<8x1xf32>
    %388 = tpu.reciprocal %387 {approx = true} : vector<8x1xf32> -> vector<8x1xf32>
    %389 = vector.broadcast %388 : vector<8x1xf32> to vector<8x8xf32>
    %390 = arith.mulf %385, %389 : vector<8x8xf32>
    %cst_114 = arith.constant dense<0.000000e+00> : vector<8x16xf32>
    %391 = tpu.matmul %390, %379, %cst_114 {dimension_numbers = #tpu.dot_dimension_numbers<[1], [0], [0], [1], [0, 0, 1, 1], [], []>} : vector<8x8xf32>, vector<8x16xf32>, vector<8x16xf32> -> vector<8x16xf32>
    %392 = tpu.concatenate %286, %301, %316, %331, %346, %361, %376, %391 in 1 : vector<8x16xf32>, vector<8x16xf32>, vector<8x16xf32>, vector<8x16xf32>, vector<8x16xf32>, vector<8x16xf32>, vector<8x16xf32>, vector<8x16xf32> -> vector<8x128xf32>
    %393 = tpu.concatenate %144, %268, %392 in 0 : vector<8x128xf32>, vector<8x128xf32>, vector<8x128xf32> -> vector<24x128xf32>
    %c0_115 = arith.constant 0 : index
    %c0_116 = arith.constant 0 : index
    %394 = vector.load %arg9[%c0_115, %c0_116] : memref<128x128xf32, #tpu.memory_space<vmem>>, vector<128x128xf32>
    %cst_117 = arith.constant dense<0.000000e+00> : vector<24x128xf32>
    %395 = tpu.matmul %393, %394, %cst_117 {dimension_numbers = #tpu.dot_dimension_numbers<[1], [0], [0], [1], [0, 0, 1, 1], [], []>} : vector<24x128xf32>, vector<128x128xf32>, vector<24x128xf32> -> vector<24x128xf32>
    %c0_118 = arith.constant 0 : index
    %c0_119 = arith.constant 0 : index
    %396 = vector.load %arg10[%c0_118, %c0_119] : memref<1x128xf32, #tpu.memory_space<vmem>>, vector<1x128xf32>
    %397 = vector.broadcast %396 : vector<1x128xf32> to vector<24x128xf32>
    %398 = arith.addf %395, %397 : vector<24x128xf32>
    %399 = arith.addf %15, %398 : vector<24x128xf32>
    %c0_120 = arith.constant 0 : index
    %c0_121 = arith.constant 0 : index
    %400 = vector.load %arg11[%c0_120, %c0_121] : memref<24x128xf32, #tpu.memory_space<vmem>>, vector<24x128xf32>
    %401 = arith.mulf %399, %400 : vector<24x128xf32>
    %c0_122 = arith.constant 0 : index
    %c0_123 = arith.constant 0 : index
    %402 = vector.load %arg12[%c0_122, %c0_123] : memref<24x128xf32, #tpu.memory_space<vmem>>, vector<24x128xf32>
    %403 = arith.addf %401, %402 : vector<24x128xf32>
    %c0_124 = arith.constant 0 : index
    %c0_125 = arith.constant 0 : index
    %404 = vector.load %arg13[%c0_124, %c0_125] : memref<128x256xf32, #tpu.memory_space<vmem>>, vector<128x256xf32>
    %cst_126 = arith.constant dense<0.000000e+00> : vector<24x256xf32>
    %405 = tpu.matmul %403, %404, %cst_126 {dimension_numbers = #tpu.dot_dimension_numbers<[1], [0], [0], [1], [0, 0, 1, 1], [], []>} : vector<24x128xf32>, vector<128x256xf32>, vector<24x256xf32> -> vector<24x256xf32>
    %c0_127 = arith.constant 0 : index
    %c0_128 = arith.constant 0 : index
    %406 = vector.load %arg14[%c0_127, %c0_128] : memref<1x256xf32, #tpu.memory_space<vmem>>, vector<1x256xf32>
    %407 = vector.broadcast %406 : vector<1x256xf32> to vector<24x256xf32>
    %408 = arith.addf %405, %407 : vector<24x256xf32>
    %cst_129 = arith.constant 0.000000e+00 : f32
    %409 = vector.broadcast %cst_129 : f32 to vector<24x256xf32>
    %410 = arith.maximumf %408, %409 : vector<24x256xf32>
    %c0_130 = arith.constant 0 : index
    %c0_131 = arith.constant 0 : index
    %411 = vector.load %arg15[%c0_130, %c0_131] : memref<256x128xf32, #tpu.memory_space<vmem>>, vector<256x128xf32>
    %cst_132 = arith.constant dense<0.000000e+00> : vector<24x128xf32>
    %412 = tpu.matmul %410, %411, %cst_132 {dimension_numbers = #tpu.dot_dimension_numbers<[1], [0], [0], [1], [0, 0, 1, 1], [], []>} : vector<24x256xf32>, vector<256x128xf32>, vector<24x128xf32> -> vector<24x128xf32>
    %c0_133 = arith.constant 0 : index
    %c0_134 = arith.constant 0 : index
    %413 = vector.load %arg16[%c0_133, %c0_134] : memref<1x128xf32, #tpu.memory_space<vmem>>, vector<1x128xf32>
    %414 = vector.broadcast %413 : vector<1x128xf32> to vector<24x128xf32>
    %415 = arith.addf %412, %414 : vector<24x128xf32>
    %416 = arith.addf %403, %415 : vector<24x128xf32>
    %c0_135 = arith.constant 0 : index
    %c0_136 = arith.constant 0 : index
    %417 = vector.load %arg17[%c0_135, %c0_136] : memref<24x128xf32, #tpu.memory_space<vmem>>, vector<24x128xf32>
    %418 = arith.mulf %416, %417 : vector<24x128xf32>
    %c0_137 = arith.constant 0 : index
    %c0_138 = arith.constant 0 : index
    %419 = vector.load %arg18[%c0_137, %c0_138] : memref<24x128xf32, #tpu.memory_space<vmem>>, vector<24x128xf32>
    %420 = arith.addf %418, %419 : vector<24x128xf32>
    %421 = vector.extract_strided_slice %420 {offsets = [0, 0], sizes = [8, 128], strides = [1, 1]} : vector<24x128xf32> to vector<8x128xf32>
    %422 = vector.extract_strided_slice %420 {offsets = [8, 0], sizes = [16, 128], strides = [1, 1]} : vector<24x128xf32> to vector<16x128xf32>
    %c0_139 = arith.constant 0 : index
    %c0_140 = arith.constant 0 : index
    %423 = vector.load %arg19[%c0_139, %c0_140] : memref<128x128xf32, #tpu.memory_space<vmem>>, vector<128x128xf32>
    %cst_141 = arith.constant dense<0.000000e+00> : vector<8x128xf32>
    %424 = tpu.matmul %421, %423, %cst_141 {dimension_numbers = #tpu.dot_dimension_numbers<[1], [0], [0], [1], [0, 0, 1, 1], [], []>} : vector<8x128xf32>, vector<128x128xf32>, vector<8x128xf32> -> vector<8x128xf32>
    %c0_142 = arith.constant 0 : index
    %c0_143 = arith.constant 0 : index
    %425 = vector.load %arg20[%c0_142, %c0_143] : memref<1x128xf32, #tpu.memory_space<vmem>>, vector<1x128xf32>
    %426 = vector.broadcast %425 : vector<1x128xf32> to vector<8x128xf32>
    %427 = arith.addf %424, %426 : vector<8x128xf32>
    %c0_144 = arith.constant 0 : index
    %c0_145 = arith.constant 0 : index
    %428 = vector.load %arg21[%c0_144, %c0_145] : memref<128x256xf32, #tpu.memory_space<vmem>>, vector<128x256xf32>
    %cst_146 = arith.constant dense<0.000000e+00> : vector<16x256xf32>
    %429 = tpu.matmul %422, %428, %cst_146 {dimension_numbers = #tpu.dot_dimension_numbers<[1], [0], [0], [1], [0, 0, 1, 1], [], []>} : vector<16x128xf32>, vector<128x256xf32>, vector<16x256xf32> -> vector<16x256xf32>
    %c0_147 = arith.constant 0 : index
    %c0_148 = arith.constant 0 : index
    %430 = vector.load %arg22[%c0_147, %c0_148] : memref<1x256xf32, #tpu.memory_space<vmem>>, vector<1x256xf32>
    %431 = vector.broadcast %430 : vector<1x256xf32> to vector<16x256xf32>
    %432 = arith.addf %429, %431 : vector<16x256xf32>
    %433 = vector.extract_strided_slice %432 {offsets = [0, 0], sizes = [16, 128], strides = [1, 1]} : vector<16x256xf32> to vector<16x128xf32>
    %434 = vector.extract_strided_slice %432 {offsets = [0, 128], sizes = [16, 128], strides = [1, 1]} : vector<16x256xf32> to vector<16x128xf32>
    %435 = vector.extract_strided_slice %427 {offsets = [0, 0], sizes = [8, 16], strides = [1, 1]} : vector<8x128xf32> to vector<8x16xf32>
    %436 = vector.extract_strided_slice %433 {offsets = [0, 0], sizes = [16, 16], strides = [1, 1]} : vector<16x128xf32> to vector<16x16xf32>
    %437 = vector.extract_strided_slice %434 {offsets = [0, 0], sizes = [16, 16], strides = [1, 1]} : vector<16x128xf32> to vector<16x16xf32>
    %cst_149 = arith.constant dense<0.000000e+00> : vector<8x16xf32>
    %438 = tpu.matmul %435, %436, %cst_149 {dimension_numbers = #tpu.dot_dimension_numbers<[1], [1], [0], [0], [0, 0, 1, 0], [], []>} : vector<8x16xf32>, vector<16x16xf32>, vector<8x16xf32> -> vector<8x16xf32>
    %cst_150 = arith.constant dense<0xFF800000> : vector<8xf32>
    %439 = vector.multi_reduction <maximumf>, %438, %cst_150 [1] : vector<8x16xf32> to vector<8xf32>
    %440 = vector.shape_cast %439 : vector<8xf32> to vector<8x1xf32>
    %441 = vector.broadcast %440 : vector<8x1xf32> to vector<8x16xf32>
    %442 = arith.subf %438, %441 : vector<8x16xf32>
    %443 = math.exp %442 : vector<8x16xf32>
    %cst_151 = arith.constant dense<0.000000e+00> : vector<8xf32>
    %444 = vector.multi_reduction <add>, %443, %cst_151 [1] : vector<8x16xf32> to vector<8xf32>
    %445 = vector.shape_cast %444 : vector<8xf32> to vector<8x1xf32>
    %446 = tpu.reciprocal %445 {approx = true} : vector<8x1xf32> -> vector<8x1xf32>
    %447 = vector.broadcast %446 : vector<8x1xf32> to vector<8x16xf32>
    %448 = arith.mulf %443, %447 : vector<8x16xf32>
    %cst_152 = arith.constant dense<0.000000e+00> : vector<8x16xf32>
    %449 = tpu.matmul %448, %437, %cst_152 {dimension_numbers = #tpu.dot_dimension_numbers<[1], [0], [0], [1], [0, 0, 1, 1], [], []>} : vector<8x16xf32>, vector<16x16xf32>, vector<8x16xf32> -> vector<8x16xf32>
    %450 = vector.extract_strided_slice %427 {offsets = [0, 16], sizes = [8, 16], strides = [1, 1]} : vector<8x128xf32> to vector<8x16xf32>
    %451 = vector.extract_strided_slice %433 {offsets = [0, 16], sizes = [16, 16], strides = [1, 1]} : vector<16x128xf32> to vector<16x16xf32>
    %452 = vector.extract_strided_slice %434 {offsets = [0, 16], sizes = [16, 16], strides = [1, 1]} : vector<16x128xf32> to vector<16x16xf32>
    %cst_153 = arith.constant dense<0.000000e+00> : vector<8x16xf32>
    %453 = tpu.matmul %450, %451, %cst_153 {dimension_numbers = #tpu.dot_dimension_numbers<[1], [1], [0], [0], [0, 0, 1, 0], [], []>} : vector<8x16xf32>, vector<16x16xf32>, vector<8x16xf32> -> vector<8x16xf32>
    %cst_154 = arith.constant dense<0xFF800000> : vector<8xf32>
    %454 = vector.multi_reduction <maximumf>, %453, %cst_154 [1] : vector<8x16xf32> to vector<8xf32>
    %455 = vector.shape_cast %454 : vector<8xf32> to vector<8x1xf32>
    %456 = vector.broadcast %455 : vector<8x1xf32> to vector<8x16xf32>
    %457 = arith.subf %453, %456 : vector<8x16xf32>
    %458 = math.exp %457 : vector<8x16xf32>
    %cst_155 = arith.constant dense<0.000000e+00> : vector<8xf32>
    %459 = vector.multi_reduction <add>, %458, %cst_155 [1] : vector<8x16xf32> to vector<8xf32>
    %460 = vector.shape_cast %459 : vector<8xf32> to vector<8x1xf32>
    %461 = tpu.reciprocal %460 {approx = true} : vector<8x1xf32> -> vector<8x1xf32>
    %462 = vector.broadcast %461 : vector<8x1xf32> to vector<8x16xf32>
    %463 = arith.mulf %458, %462 : vector<8x16xf32>
    %cst_156 = arith.constant dense<0.000000e+00> : vector<8x16xf32>
    %464 = tpu.matmul %463, %452, %cst_156 {dimension_numbers = #tpu.dot_dimension_numbers<[1], [0], [0], [1], [0, 0, 1, 1], [], []>} : vector<8x16xf32>, vector<16x16xf32>, vector<8x16xf32> -> vector<8x16xf32>
    %465 = vector.extract_strided_slice %427 {offsets = [0, 32], sizes = [8, 16], strides = [1, 1]} : vector<8x128xf32> to vector<8x16xf32>
    %466 = vector.extract_strided_slice %433 {offsets = [0, 32], sizes = [16, 16], strides = [1, 1]} : vector<16x128xf32> to vector<16x16xf32>
    %467 = vector.extract_strided_slice %434 {offsets = [0, 32], sizes = [16, 16], strides = [1, 1]} : vector<16x128xf32> to vector<16x16xf32>
    %cst_157 = arith.constant dense<0.000000e+00> : vector<8x16xf32>
    %468 = tpu.matmul %465, %466, %cst_157 {dimension_numbers = #tpu.dot_dimension_numbers<[1], [1], [0], [0], [0, 0, 1, 0], [], []>} : vector<8x16xf32>, vector<16x16xf32>, vector<8x16xf32> -> vector<8x16xf32>
    %cst_158 = arith.constant dense<0xFF800000> : vector<8xf32>
    %469 = vector.multi_reduction <maximumf>, %468, %cst_158 [1] : vector<8x16xf32> to vector<8xf32>
    %470 = vector.shape_cast %469 : vector<8xf32> to vector<8x1xf32>
    %471 = vector.broadcast %470 : vector<8x1xf32> to vector<8x16xf32>
    %472 = arith.subf %468, %471 : vector<8x16xf32>
    %473 = math.exp %472 : vector<8x16xf32>
    %cst_159 = arith.constant dense<0.000000e+00> : vector<8xf32>
    %474 = vector.multi_reduction <add>, %473, %cst_159 [1] : vector<8x16xf32> to vector<8xf32>
    %475 = vector.shape_cast %474 : vector<8xf32> to vector<8x1xf32>
    %476 = tpu.reciprocal %475 {approx = true} : vector<8x1xf32> -> vector<8x1xf32>
    %477 = vector.broadcast %476 : vector<8x1xf32> to vector<8x16xf32>
    %478 = arith.mulf %473, %477 : vector<8x16xf32>
    %cst_160 = arith.constant dense<0.000000e+00> : vector<8x16xf32>
    %479 = tpu.matmul %478, %467, %cst_160 {dimension_numbers = #tpu.dot_dimension_numbers<[1], [0], [0], [1], [0, 0, 1, 1], [], []>} : vector<8x16xf32>, vector<16x16xf32>, vector<8x16xf32> -> vector<8x16xf32>
    %480 = vector.extract_strided_slice %427 {offsets = [0, 48], sizes = [8, 16], strides = [1, 1]} : vector<8x128xf32> to vector<8x16xf32>
    %481 = vector.extract_strided_slice %433 {offsets = [0, 48], sizes = [16, 16], strides = [1, 1]} : vector<16x128xf32> to vector<16x16xf32>
    %482 = vector.extract_strided_slice %434 {offsets = [0, 48], sizes = [16, 16], strides = [1, 1]} : vector<16x128xf32> to vector<16x16xf32>
    %cst_161 = arith.constant dense<0.000000e+00> : vector<8x16xf32>
    %483 = tpu.matmul %480, %481, %cst_161 {dimension_numbers = #tpu.dot_dimension_numbers<[1], [1], [0], [0], [0, 0, 1, 0], [], []>} : vector<8x16xf32>, vector<16x16xf32>, vector<8x16xf32> -> vector<8x16xf32>
    %cst_162 = arith.constant dense<0xFF800000> : vector<8xf32>
    %484 = vector.multi_reduction <maximumf>, %483, %cst_162 [1] : vector<8x16xf32> to vector<8xf32>
    %485 = vector.shape_cast %484 : vector<8xf32> to vector<8x1xf32>
    %486 = vector.broadcast %485 : vector<8x1xf32> to vector<8x16xf32>
    %487 = arith.subf %483, %486 : vector<8x16xf32>
    %488 = math.exp %487 : vector<8x16xf32>
    %cst_163 = arith.constant dense<0.000000e+00> : vector<8xf32>
    %489 = vector.multi_reduction <add>, %488, %cst_163 [1] : vector<8x16xf32> to vector<8xf32>
    %490 = vector.shape_cast %489 : vector<8xf32> to vector<8x1xf32>
    %491 = tpu.reciprocal %490 {approx = true} : vector<8x1xf32> -> vector<8x1xf32>
    %492 = vector.broadcast %491 : vector<8x1xf32> to vector<8x16xf32>
    %493 = arith.mulf %488, %492 : vector<8x16xf32>
    %cst_164 = arith.constant dense<0.000000e+00> : vector<8x16xf32>
    %494 = tpu.matmul %493, %482, %cst_164 {dimension_numbers = #tpu.dot_dimension_numbers<[1], [0], [0], [1], [0, 0, 1, 1], [], []>} : vector<8x16xf32>, vector<16x16xf32>, vector<8x16xf32> -> vector<8x16xf32>
    %495 = vector.extract_strided_slice %427 {offsets = [0, 64], sizes = [8, 16], strides = [1, 1]} : vector<8x128xf32> to vector<8x16xf32>
    %496 = vector.extract_strided_slice %433 {offsets = [0, 64], sizes = [16, 16], strides = [1, 1]} : vector<16x128xf32> to vector<16x16xf32>
    %497 = vector.extract_strided_slice %434 {offsets = [0, 64], sizes = [16, 16], strides = [1, 1]} : vector<16x128xf32> to vector<16x16xf32>
    %cst_165 = arith.constant dense<0.000000e+00> : vector<8x16xf32>
    %498 = tpu.matmul %495, %496, %cst_165 {dimension_numbers = #tpu.dot_dimension_numbers<[1], [1], [0], [0], [0, 0, 1, 0], [], []>} : vector<8x16xf32>, vector<16x16xf32>, vector<8x16xf32> -> vector<8x16xf32>
    %cst_166 = arith.constant dense<0xFF800000> : vector<8xf32>
    %499 = vector.multi_reduction <maximumf>, %498, %cst_166 [1] : vector<8x16xf32> to vector<8xf32>
    %500 = vector.shape_cast %499 : vector<8xf32> to vector<8x1xf32>
    %501 = vector.broadcast %500 : vector<8x1xf32> to vector<8x16xf32>
    %502 = arith.subf %498, %501 : vector<8x16xf32>
    %503 = math.exp %502 : vector<8x16xf32>
    %cst_167 = arith.constant dense<0.000000e+00> : vector<8xf32>
    %504 = vector.multi_reduction <add>, %503, %cst_167 [1] : vector<8x16xf32> to vector<8xf32>
    %505 = vector.shape_cast %504 : vector<8xf32> to vector<8x1xf32>
    %506 = tpu.reciprocal %505 {approx = true} : vector<8x1xf32> -> vector<8x1xf32>
    %507 = vector.broadcast %506 : vector<8x1xf32> to vector<8x16xf32>
    %508 = arith.mulf %503, %507 : vector<8x16xf32>
    %cst_168 = arith.constant dense<0.000000e+00> : vector<8x16xf32>
    %509 = tpu.matmul %508, %497, %cst_168 {dimension_numbers = #tpu.dot_dimension_numbers<[1], [0], [0], [1], [0, 0, 1, 1], [], []>} : vector<8x16xf32>, vector<16x16xf32>, vector<8x16xf32> -> vector<8x16xf32>
    %510 = vector.extract_strided_slice %427 {offsets = [0, 80], sizes = [8, 16], strides = [1, 1]} : vector<8x128xf32> to vector<8x16xf32>
    %511 = vector.extract_strided_slice %433 {offsets = [0, 80], sizes = [16, 16], strides = [1, 1]} : vector<16x128xf32> to vector<16x16xf32>
    %512 = vector.extract_strided_slice %434 {offsets = [0, 80], sizes = [16, 16], strides = [1, 1]} : vector<16x128xf32> to vector<16x16xf32>
    %cst_169 = arith.constant dense<0.000000e+00> : vector<8x16xf32>
    %513 = tpu.matmul %510, %511, %cst_169 {dimension_numbers = #tpu.dot_dimension_numbers<[1], [1], [0], [0], [0, 0, 1, 0], [], []>} : vector<8x16xf32>, vector<16x16xf32>, vector<8x16xf32> -> vector<8x16xf32>
    %cst_170 = arith.constant dense<0xFF800000> : vector<8xf32>
    %514 = vector.multi_reduction <maximumf>, %513, %cst_170 [1] : vector<8x16xf32> to vector<8xf32>
    %515 = vector.shape_cast %514 : vector<8xf32> to vector<8x1xf32>
    %516 = vector.broadcast %515 : vector<8x1xf32> to vector<8x16xf32>
    %517 = arith.subf %513, %516 : vector<8x16xf32>
    %518 = math.exp %517 : vector<8x16xf32>
    %cst_171 = arith.constant dense<0.000000e+00> : vector<8xf32>
    %519 = vector.multi_reduction <add>, %518, %cst_171 [1] : vector<8x16xf32> to vector<8xf32>
    %520 = vector.shape_cast %519 : vector<8xf32> to vector<8x1xf32>
    %521 = tpu.reciprocal %520 {approx = true} : vector<8x1xf32> -> vector<8x1xf32>
    %522 = vector.broadcast %521 : vector<8x1xf32> to vector<8x16xf32>
    %523 = arith.mulf %518, %522 : vector<8x16xf32>
    %cst_172 = arith.constant dense<0.000000e+00> : vector<8x16xf32>
    %524 = tpu.matmul %523, %512, %cst_172 {dimension_numbers = #tpu.dot_dimension_numbers<[1], [0], [0], [1], [0, 0, 1, 1], [], []>} : vector<8x16xf32>, vector<16x16xf32>, vector<8x16xf32> -> vector<8x16xf32>
    %525 = vector.extract_strided_slice %427 {offsets = [0, 96], sizes = [8, 16], strides = [1, 1]} : vector<8x128xf32> to vector<8x16xf32>
    %526 = vector.extract_strided_slice %433 {offsets = [0, 96], sizes = [16, 16], strides = [1, 1]} : vector<16x128xf32> to vector<16x16xf32>
    %527 = vector.extract_strided_slice %434 {offsets = [0, 96], sizes = [16, 16], strides = [1, 1]} : vector<16x128xf32> to vector<16x16xf32>
    %cst_173 = arith.constant dense<0.000000e+00> : vector<8x16xf32>
    %528 = tpu.matmul %525, %526, %cst_173 {dimension_numbers = #tpu.dot_dimension_numbers<[1], [1], [0], [0], [0, 0, 1, 0], [], []>} : vector<8x16xf32>, vector<16x16xf32>, vector<8x16xf32> -> vector<8x16xf32>
    %cst_174 = arith.constant dense<0xFF800000> : vector<8xf32>
    %529 = vector.multi_reduction <maximumf>, %528, %cst_174 [1] : vector<8x16xf32> to vector<8xf32>
    %530 = vector.shape_cast %529 : vector<8xf32> to vector<8x1xf32>
    %531 = vector.broadcast %530 : vector<8x1xf32> to vector<8x16xf32>
    %532 = arith.subf %528, %531 : vector<8x16xf32>
    %533 = math.exp %532 : vector<8x16xf32>
    %cst_175 = arith.constant dense<0.000000e+00> : vector<8xf32>
    %534 = vector.multi_reduction <add>, %533, %cst_175 [1] : vector<8x16xf32> to vector<8xf32>
    %535 = vector.shape_cast %534 : vector<8xf32> to vector<8x1xf32>
    %536 = tpu.reciprocal %535 {approx = true} : vector<8x1xf32> -> vector<8x1xf32>
    %537 = vector.broadcast %536 : vector<8x1xf32> to vector<8x16xf32>
    %538 = arith.mulf %533, %537 : vector<8x16xf32>
    %cst_176 = arith.constant dense<0.000000e+00> : vector<8x16xf32>
    %539 = tpu.matmul %538, %527, %cst_176 {dimension_numbers = #tpu.dot_dimension_numbers<[1], [0], [0], [1], [0, 0, 1, 1], [], []>} : vector<8x16xf32>, vector<16x16xf32>, vector<8x16xf32> -> vector<8x16xf32>
    %540 = vector.extract_strided_slice %427 {offsets = [0, 112], sizes = [8, 16], strides = [1, 1]} : vector<8x128xf32> to vector<8x16xf32>
    %541 = vector.extract_strided_slice %433 {offsets = [0, 112], sizes = [16, 16], strides = [1, 1]} : vector<16x128xf32> to vector<16x16xf32>
    %542 = vector.extract_strided_slice %434 {offsets = [0, 112], sizes = [16, 16], strides = [1, 1]} : vector<16x128xf32> to vector<16x16xf32>
    %cst_177 = arith.constant dense<0.000000e+00> : vector<8x16xf32>
    %543 = tpu.matmul %540, %541, %cst_177 {dimension_numbers = #tpu.dot_dimension_numbers<[1], [1], [0], [0], [0, 0, 1, 0], [], []>} : vector<8x16xf32>, vector<16x16xf32>, vector<8x16xf32> -> vector<8x16xf32>
    %cst_178 = arith.constant dense<0xFF800000> : vector<8xf32>
    %544 = vector.multi_reduction <maximumf>, %543, %cst_178 [1] : vector<8x16xf32> to vector<8xf32>
    %545 = vector.shape_cast %544 : vector<8xf32> to vector<8x1xf32>
    %546 = vector.broadcast %545 : vector<8x1xf32> to vector<8x16xf32>
    %547 = arith.subf %543, %546 : vector<8x16xf32>
    %548 = math.exp %547 : vector<8x16xf32>
    %cst_179 = arith.constant dense<0.000000e+00> : vector<8xf32>
    %549 = vector.multi_reduction <add>, %548, %cst_179 [1] : vector<8x16xf32> to vector<8xf32>
    %550 = vector.shape_cast %549 : vector<8xf32> to vector<8x1xf32>
    %551 = tpu.reciprocal %550 {approx = true} : vector<8x1xf32> -> vector<8x1xf32>
    %552 = vector.broadcast %551 : vector<8x1xf32> to vector<8x16xf32>
    %553 = arith.mulf %548, %552 : vector<8x16xf32>
    %cst_180 = arith.constant dense<0.000000e+00> : vector<8x16xf32>
    %554 = tpu.matmul %553, %542, %cst_180 {dimension_numbers = #tpu.dot_dimension_numbers<[1], [0], [0], [1], [0, 0, 1, 1], [], []>} : vector<8x16xf32>, vector<16x16xf32>, vector<8x16xf32> -> vector<8x16xf32>
    %555 = tpu.concatenate %449, %464, %479, %494, %509, %524, %539, %554 in 1 : vector<8x16xf32>, vector<8x16xf32>, vector<8x16xf32>, vector<8x16xf32>, vector<8x16xf32>, vector<8x16xf32>, vector<8x16xf32>, vector<8x16xf32> -> vector<8x128xf32>
    %c0_181 = arith.constant 0 : index
    %c0_182 = arith.constant 0 : index
    %556 = vector.load %arg23[%c0_181, %c0_182] : memref<128x128xf32, #tpu.memory_space<vmem>>, vector<128x128xf32>
    %cst_183 = arith.constant dense<0.000000e+00> : vector<8x128xf32>
    %557 = tpu.matmul %555, %556, %cst_183 {dimension_numbers = #tpu.dot_dimension_numbers<[1], [0], [0], [1], [0, 0, 1, 1], [], []>} : vector<8x128xf32>, vector<128x128xf32>, vector<8x128xf32> -> vector<8x128xf32>
    %c0_184 = arith.constant 0 : index
    %c0_185 = arith.constant 0 : index
    %558 = vector.load %arg24[%c0_184, %c0_185] : memref<1x128xf32, #tpu.memory_space<vmem>>, vector<1x128xf32>
    %559 = vector.broadcast %558 : vector<1x128xf32> to vector<8x128xf32>
    %560 = arith.addf %557, %559 : vector<8x128xf32>
    %561 = arith.addf %421, %560 : vector<8x128xf32>
    %c0_186 = arith.constant 0 : index
    %c0_187 = arith.constant 0 : index
    %562 = vector.load %arg25[%c0_186, %c0_187] : memref<8x128xf32, #tpu.memory_space<vmem>>, vector<8x128xf32>
    %563 = arith.mulf %561, %562 : vector<8x128xf32>
    %c0_188 = arith.constant 0 : index
    %c0_189 = arith.constant 0 : index
    %564 = vector.load %arg26[%c0_188, %c0_189] : memref<8x128xf32, #tpu.memory_space<vmem>>, vector<8x128xf32>
    %565 = arith.addf %563, %564 : vector<8x128xf32>
    %c0_190 = arith.constant 0 : index
    %c0_191 = arith.constant 0 : index
    %566 = vector.load %arg27[%c0_190, %c0_191] : memref<128x256xf32, #tpu.memory_space<vmem>>, vector<128x256xf32>
    %cst_192 = arith.constant dense<0.000000e+00> : vector<8x256xf32>
    %567 = tpu.matmul %565, %566, %cst_192 {dimension_numbers = #tpu.dot_dimension_numbers<[1], [0], [0], [1], [0, 0, 1, 1], [], []>} : vector<8x128xf32>, vector<128x256xf32>, vector<8x256xf32> -> vector<8x256xf32>
    %c0_193 = arith.constant 0 : index
    %c0_194 = arith.constant 0 : index
    %568 = vector.load %arg28[%c0_193, %c0_194] : memref<1x256xf32, #tpu.memory_space<vmem>>, vector<1x256xf32>
    %569 = vector.broadcast %568 : vector<1x256xf32> to vector<8x256xf32>
    %570 = arith.addf %567, %569 : vector<8x256xf32>
    %cst_195 = arith.constant 0.000000e+00 : f32
    %571 = vector.broadcast %cst_195 : f32 to vector<8x256xf32>
    %572 = arith.maximumf %570, %571 : vector<8x256xf32>
    %c0_196 = arith.constant 0 : index
    %c0_197 = arith.constant 0 : index
    %573 = vector.load %arg29[%c0_196, %c0_197] : memref<256x128xf32, #tpu.memory_space<vmem>>, vector<256x128xf32>
    %cst_198 = arith.constant dense<0.000000e+00> : vector<8x128xf32>
    %574 = tpu.matmul %572, %573, %cst_198 {dimension_numbers = #tpu.dot_dimension_numbers<[1], [0], [0], [1], [0, 0, 1, 1], [], []>} : vector<8x256xf32>, vector<256x128xf32>, vector<8x128xf32> -> vector<8x128xf32>
    %c0_199 = arith.constant 0 : index
    %c0_200 = arith.constant 0 : index
    %575 = vector.load %arg30[%c0_199, %c0_200] : memref<1x128xf32, #tpu.memory_space<vmem>>, vector<1x128xf32>
    %576 = vector.broadcast %575 : vector<1x128xf32> to vector<8x128xf32>
    %577 = arith.addf %574, %576 : vector<8x128xf32>
    %578 = arith.addf %565, %577 : vector<8x128xf32>
    %c0_201 = arith.constant 0 : index
    %c0_202 = arith.constant 0 : index
    %579 = vector.load %arg31[%c0_201, %c0_202] : memref<8x128xf32, #tpu.memory_space<vmem>>, vector<8x128xf32>
    %580 = arith.mulf %578, %579 : vector<8x128xf32>
    %c0_203 = arith.constant 0 : index
    %c0_204 = arith.constant 0 : index
    %581 = vector.load %arg32[%c0_203, %c0_204] : memref<8x128xf32, #tpu.memory_space<vmem>>, vector<8x128xf32>
    %582 = arith.addf %580, %581 : vector<8x128xf32>
    %c0_205 = arith.constant 0 : index
    %c0_206 = arith.constant 0 : index
    %c0_207 = arith.constant 0 : index
    %583 = vector.load %arg33[%c0_205, %c0_206, %c0_207] : memref<1x8x128xf32, #tpu.memory_space<vmem>>, vector<1x8x128xf32>
    %584 = vector.shape_cast %583 : vector<1x8x128xf32> to vector<8x128xf32>
    %585 = vector.shape_cast %582 : vector<8x128xf32> to vector<1x8x128xf32>
    tpu.vector_store %arg33[%c0_205, %c0_206, %c0_207], %585 {strides = array<i32>} : memref<1x8x128xf32, #tpu.memory_space<vmem>>, vector<1x8x128xf32>,
    return
  }
  func.func @transform_0(%arg0: i32) -> (i32, i32, i32) {
    %c0_i32 = arith.constant 0 : i32
    %c0_i32_0 = arith.constant 0 : i32
    %c0_i32_1 = arith.constant 0 : i32
    return %arg0, %c0_i32, %c0_i32_0 : i32, i32, i32
  }
  func.func @transform_1(%arg0: i32) -> (i32, i32) {
    %c0_i32 = arith.constant 0 : i32
    %c0_i32_0 = arith.constant 0 : i32
    %c0_i32_1 = arith.constant 0 : i32
    return %c0_i32, %c0_i32_0 : i32, i32
  }
  func.func @transform_2(%arg0: i32) -> (i32, i32) {
    %c0_i32 = arith.constant 0 : i32
    %c0_i32_0 = arith.constant 0 : i32
    %c0_i32_1 = arith.constant 0 : i32
    return %c0_i32, %c0_i32_0 : i32, i32
  }
  func.func @transform_3(%arg0: i32) -> (i32, i32) {
    %c0_i32 = arith.constant 0 : i32
    %c0_i32_0 = arith.constant 0 : i32
    %c0_i32_1 = arith.constant 0 : i32
    return %c0_i32, %c0_i32_0 : i32, i32
  }
  func.func @transform_4(%arg0: i32) -> (i32, i32) {
    %c0_i32 = arith.constant 0 : i32
    %c0_i32_0 = arith.constant 0 : i32
    %c0_i32_1 = arith.constant 0 : i32
    return %c0_i32, %c0_i32_0 : i32, i32
  }
  func.func @transform_5(%arg0: i32) -> (i32, i32) {
    %c0_i32 = arith.constant 0 : i32
    %c0_i32_0 = arith.constant 0 : i32
    %c0_i32_1 = arith.constant 0 : i32
    return %c0_i32, %c0_i32_0 : i32, i32
  }
  func.func @transform_6(%arg0: i32) -> (i32, i32) {
    %c0_i32 = arith.constant 0 : i32
    %c0_i32_0 = arith.constant 0 : i32
    %c0_i32_1 = arith.constant 0 : i32
    return %c0_i32, %c0_i32_0 : i32, i32
  }
  func.func @transform_7(%arg0: i32) -> (i32, i32) {
    %c0_i32 = arith.constant 0 : i32
    %c0_i32_0 = arith.constant 0 : i32
    %c0_i32_1 = arith.constant 0 : i32
    return %c0_i32, %c0_i32_0 : i32, i32
  }
  func.func @transform_8(%arg0: i32) -> (i32, i32) {
    %c0_i32 = arith.constant 0 : i32
    %c0_i32_0 = arith.constant 0 : i32
    %c0_i32_1 = arith.constant 0 : i32
    return %c0_i32, %c0_i32_0 : i32, i32
  }
  func.func @transform_9(%arg0: i32) -> (i32, i32) {
    %c0_i32 = arith.constant 0 : i32
    %c0_i32_0 = arith.constant 0 : i32
    %c0_i32_1 = arith.constant 0 : i32
    return %c0_i32, %c0_i32_0 : i32, i32
  }
  func.func @transform_10(%arg0: i32) -> (i32, i32) {
    %c0_i32 = arith.constant 0 : i32
    %c0_i32_0 = arith.constant 0 : i32
    %c0_i32_1 = arith.constant 0 : i32
    return %c0_i32, %c0_i32_0 : i32, i32
  }
  func.func @transform_11(%arg0: i32) -> (i32, i32) {
    %c0_i32 = arith.constant 0 : i32
    %c0_i32_0 = arith.constant 0 : i32
    %c0_i32_1 = arith.constant 0 : i32
    return %c0_i32, %c0_i32_0 : i32, i32
  }
  func.func @transform_12(%arg0: i32) -> (i32, i32) {
    %c0_i32 = arith.constant 0 : i32
    %c0_i32_0 = arith.constant 0 : i32
    %c0_i32_1 = arith.constant 0 : i32
    return %c0_i32, %c0_i32_0 : i32, i32
  }
  func.func @transform_13(%arg0: i32) -> (i32, i32) {
    %c0_i32 = arith.constant 0 : i32
    %c0_i32_0 = arith.constant 0 : i32
    %c0_i32_1 = arith.constant 0 : i32
    return %c0_i32, %c0_i32_0 : i32, i32
  }
  func.func @transform_14(%arg0: i32) -> (i32, i32) {
    %c0_i32 = arith.constant 0 : i32
    %c0_i32_0 = arith.constant 0 : i32
    %c0_i32_1 = arith.constant 0 : i32
    return %c0_i32, %c0_i32_0 : i32, i32
  }
  func.func @transform_15(%arg0: i32) -> (i32, i32) {
    %c0_i32 = arith.constant 0 : i32
    %c0_i32_0 = arith.constant 0 : i32
    %c0_i32_1 = arith.constant 0 : i32
    return %c0_i32, %c0_i32_0 : i32, i32
  }
  func.func @transform_16(%arg0: i32) -> (i32, i32) {
    %c0_i32 = arith.constant 0 : i32
    %c0_i32_0 = arith.constant 0 : i32
    %c0_i32_1 = arith.constant 0 : i32
    return %c0_i32, %c0_i32_0 : i32, i32
  }
  func.func @transform_17(%arg0: i32) -> (i32, i32) {
    %c0_i32 = arith.constant 0 : i32
    %c0_i32_0 = arith.constant 0 : i32
    %c0_i32_1 = arith.constant 0 : i32
    return %c0_i32, %c0_i32_0 : i32, i32
  }
  func.func @transform_18(%arg0: i32) -> (i32, i32) {
    %c0_i32 = arith.constant 0 : i32
    %c0_i32_0 = arith.constant 0 : i32
    %c0_i32_1 = arith.constant 0 : i32
    return %c0_i32, %c0_i32_0 : i32, i32
  }
  func.func @transform_19(%arg0: i32) -> (i32, i32) {
    %c0_i32 = arith.constant 0 : i32
    %c0_i32_0 = arith.constant 0 : i32
    %c0_i32_1 = arith.constant 0 : i32
    return %c0_i32, %c0_i32_0 : i32, i32
  }
  func.func @transform_20(%arg0: i32) -> (i32, i32) {
    %c0_i32 = arith.constant 0 : i32
    %c0_i32_0 = arith.constant 0 : i32
    %c0_i32_1 = arith.constant 0 : i32
    return %c0_i32, %c0_i32_0 : i32, i32
  }
  func.func @transform_21(%arg0: i32) -> (i32, i32) {
    %c0_i32 = arith.constant 0 : i32
    %c0_i32_0 = arith.constant 0 : i32
    %c0_i32_1 = arith.constant 0 : i32
    return %c0_i32, %c0_i32_0 : i32, i32
  }
  func.func @transform_22(%arg0: i32) -> (i32, i32) {
    %c0_i32 = arith.constant 0 : i32
    %c0_i32_0 = arith.constant 0 : i32
    %c0_i32_1 = arith.constant 0 : i32
    return %c0_i32, %c0_i32_0 : i32, i32
  }
  func.func @transform_23(%arg0: i32) -> (i32, i32) {
    %c0_i32 = arith.constant 0 : i32
    %c0_i32_0 = arith.constant 0 : i32
    %c0_i32_1 = arith.constant 0 : i32
    return %c0_i32, %c0_i32_0 : i32, i32
  }
  func.func @transform_24(%arg0: i32) -> (i32, i32) {
    %c0_i32 = arith.constant 0 : i32
    %c0_i32_0 = arith.constant 0 : i32
    %c0_i32_1 = arith.constant 0 : i32
    return %c0_i32, %c0_i32_0 : i32, i32
  }
  func.func @transform_25(%arg0: i32) -> (i32, i32) {
    %c0_i32 = arith.constant 0 : i32
    %c0_i32_0 = arith.constant 0 : i32
    %c0_i32_1 = arith.constant 0 : i32
    return %c0_i32, %c0_i32_0 : i32, i32
  }
  func.func @transform_26(%arg0: i32) -> (i32, i32) {
    %c0_i32 = arith.constant 0 : i32
    %c0_i32_0 = arith.constant 0 : i32
    %c0_i32_1 = arith.constant 0 : i32
    return %c0_i32, %c0_i32_0 : i32, i32
  }
  func.func @transform_27(%arg0: i32) -> (i32, i32) {
    %c0_i32 = arith.constant 0 : i32
    %c0_i32_0 = arith.constant 0 : i32
    %c0_i32_1 = arith.constant 0 : i32
    return %c0_i32, %c0_i32_0 : i32, i32
  }
  func.func @transform_28(%arg0: i32) -> (i32, i32) {
    %c0_i32 = arith.constant 0 : i32
    %c0_i32_0 = arith.constant 0 : i32
    %c0_i32_1 = arith.constant 0 : i32
    return %c0_i32, %c0_i32_0 : i32, i32
  }
  func.func @transform_29(%arg0: i32) -> (i32, i32) {
    %c0_i32 = arith.constant 0 : i32
    %c0_i32_0 = arith.constant 0 : i32
    %c0_i32_1 = arith.constant 0 : i32
    return %c0_i32, %c0_i32_0 : i32, i32
  }
  func.func @transform_30(%arg0: i32) -> (i32, i32) {
    %c0_i32 = arith.constant 0 : i32
    %c0_i32_0 = arith.constant 0 : i32
    %c0_i32_1 = arith.constant 0 : i32
    return %c0_i32, %c0_i32_0 : i32, i32
  }
  func.func @transform_31(%arg0: i32) -> (i32, i32) {
    %c0_i32 = arith.constant 0 : i32
    %c0_i32_0 = arith.constant 0 : i32
    %c0_i32_1 = arith.constant 0 : i32
    return %c0_i32, %c0_i32_0 : i32, i32
  }
  func.func @transform_32(%arg0: i32) -> (i32, i32, i32) {
    %c0_i32 = arith.constant 0 : i32
    %c0_i32_0 = arith.constant 0 : i32
    %c0_i32_1 = arith.constant 0 : i32
    return %arg0, %c0_i32, %c0_i32_0 : i32, i32, i32
  }
}

</mosaic_0001>

<bundles_post_ra>
// kernel: encoder_forward.1
= control target key start
LH: loop header
LB: loop body
LE: loop exit
PB: predicated region body
PF: predicated region fallthrough
CT: control target
= control target key end

     0   :  { %s9860_s6 = smov 1   ;;  %s9861_s10 = smov 2   ;;  %s11445_s0 = inlined_call_operand.smem [shape: u32[33], index: -1, kind: input, shape index: {}] }
   0x1   :  { %s9910_s5 = sld [smem:[%s11445_s0]]   ;;  %s9862_s14 = smov 3  }
   0x2   :  { %s9915_s9 = sld [smem:[%s11445_s0 + %s9860_s6]]   ;;  %s9863_s18 = smov 4  }
   0x3   :  { %s9920_s13 = sld [smem:[%s11445_s0 + %s9861_s10]]   ;;  %s9864_s22 = smov 5  }
   0x4   :  { %s9925_s17 = sld [smem:[%s11445_s0 + %s9862_s14]]   ;;  %s9865_s26 = smov 6  }
   0x5   :  { %s9930_s21 = sld [smem:[%s11445_s0 + %s9863_s18]]   ;;  %s9866_s30 = smov 7  }
   0x6   :  { %s9935_s25 = sld [smem:[%s11445_s0 + %s9864_s22]]   ;;  %s9867_s4 = smov 8  }
   0x7   :  { %s9940_s29 = sld [smem:[%s11445_s0 + %s9865_s26]]   ;;  %s9868_s10 = smov 9  }
   0x8   :  { %s9945_s3 = sld [smem:[%s11445_s0 + %s9866_s30]]   ;;  %s9869_s15 = smov 10  }
   0x9   :  { %s9950_s8 = sld [smem:[%s11445_s0 + %s9867_s4]]   ;;  %s9870_s20 = smov 11  }
   0xa   :  { %s9955_s14 = sld [smem:[%s11445_s0 + %s9868_s10]]   ;;  %s9871_s26 = smov 12  }
   0xb   :  { %s9960_s19 = sld [smem:[%s11445_s0 + %s9869_s15]]   ;;  %s9872_s1 = smov 13  }
   0xc   :  { %s9965_s24 = sld [smem:[%s11445_s0 + %s9870_s20]]   ;;  %s9873_s7 = smov 14  }
   0xd   :  { %s9970_s30 = sld [smem:[%s11445_s0 + %s9871_s26]]   ;;  %s9874_s15 = smov 15  }
   0xe   :  { %s9975_s6 = sld [smem:[%s11445_s0 + %s9872_s1]]   ;;  %s9875_s22 = smov 16  }
   0xf   :  { %s9980_s12 = sld [smem:[%s11445_s0 + %s9873_s7]]   ;;  %s9876_s28 = smov 17  }
  0x10   :  { %s9985_s20 = sld [smem:[%s11445_s0 + %s9874_s15]]   ;;  %s9877_s7 = smov 18  }
  0x11   :  { %s9990_s27 = sld [smem:[%s11445_s0 + %s9875_s22]]   ;;  %s9878_s15 = smov 19  }
  0x12   :  { %s9995_s4 = sld [smem:[%s11445_s0 + %s9876_s28]]   ;;  %s9879_s22 = smov 20  }
  0x13   :  { %s9880_s28 = smov 21  }
  0x14   :  { %11457 = sst [smem:[#allocation2_spill]] %s9975_s6 }
  0x15   :  { %s10000_s6 = sld [smem:[%s11445_s0 + %s9877_s7]]   ;;  %s9881_s7 = smov 22  }
  0x16   :  { %11458 = sst [smem:[#allocation3_spill]] %s9985_s20 }
  0x17   :  { %11459 = sst [smem:[#allocation4_spill]] %s9990_s27 }
  0x18   :  { %11460 = sst [smem:[#allocation5_spill]] %s9995_s4 }
  0x19   :  { %s10005_s20 = sld [smem:[%s11445_s0 + %s9878_s15]]   ;;  %s9882_s15 = smov 23  }
  0x1a   :  { %s10010_s27 = sld [smem:[%s11445_s0 + %s9879_s22]]   ;;  %s9883_s22 = smov 24  }
  0x1b   :  { %11461 = sst [smem:[#allocation6_spill]] %s10000_s6 }
  0x1c   :  { %s10015_s4 = sld [smem:[%s11445_s0 + %s9880_s28]]   ;;  %s9884_s28 = smov 25  }
  0x1d   :  { %s10020_s6 = sld [smem:[%s11445_s0 + %s9881_s7]]   ;;  %s9885_s7 = smov 26  }
  0x1f   :  { %11462 = sst [smem:[#allocation7_spill]] %s10005_s20 }
  0x20   :  { %11463 = sst [smem:[#allocation8_spill]] %s10010_s27 }
  0x21   :  { %s10025_s20 = sld [smem:[%s11445_s0 + %s9882_s15]]   ;;  %s9886_s15 = smov 27  }
  0x22   :  { %11464 = sst [smem:[#allocation9_spill]] %s10015_s4 }
  0x23   :  { %11465 = sst [smem:[#allocation10_spill]] %s10020_s6 }
  0x24   :  { %s10030_s27 = sld [smem:[%s11445_s0 + %s9883_s22]]   ;;  %s9887_s22 = smov 28  }
  0x25   :  { %s10035_s4 = sld [smem:[%s11445_s0 + %s9884_s28]]   ;;  %s9888_s28 = smov 29  }
  0x26   :  { %s10040_s6 = sld [smem:[%s11445_s0 + %s9885_s7]]   ;;  %s9889_s7 = smov 30  }
  0x27   :  { %11466 = sst [smem:[#allocation11_spill]] %s10025_s20 }
  0x28   :  { %s10045_s20 = sld [smem:[%s11445_s0 + %s9886_s15]]   ;;  %s9890_s15 = smov 31  }
  0x2a   :  { %11467 = sst [smem:[#allocation12_spill]] %s10030_s27 }
  0x2b   :  { %11468 = sst [smem:[#allocation13_spill]] %s10035_s4 }
  0x2c   :  { %11469 = sst [smem:[#allocation14_spill]] %s10040_s6 }
  0x2d   :  { %s10050_s27 = sld [smem:[%s11445_s0 + %s9887_s22]]   ;;  %s9891_s22 = smov 32  }
  0x2e   :  { %11470 = sst [smem:[#allocation15_spill]] %s10045_s20 }
  0x2f   :  { %s10055_s4 = sld [smem:[%s11445_s0 + %s9888_s28]]   ;;  %s10072_s28 = smov 0  }
  0x30   :  { %s10060_s6 = sld [smem:[%s11445_s0 + %s9889_s7]]  }
  0x31   :  { %s10065_s20 = sld [smem:[%s11445_s0 + %s9890_s15]]  }
  0x33   :  { %11471 = sst [smem:[#allocation16_spill]] %s10050_s27 }
  0x34   :  { %s10070_s27 = sld [smem:[%s11445_s0 + %s9891_s22]]  }
  0x35 LB: > { %s8149_s1 = sadd.s32 4294967295, %s9858_s28   ;;  %p8153_p0 = scmp.ge.s32.totalorder %s9858_s28, 1  ;;  %s9858_s28 = sphi %s10072_s28, %s75_s28  }
  0x36   : > { %p895_p1 = scmp.lt.s32.totalorder %s9858_s28, 3 }
  0x38   : > { %p896_p2 = pnand %p8153_p0, %p895_p1 }
  0x39   : > { %v989_v0 = vld [vmem:[%s9920_s13 + $0x8] sm:$0xff] (!%p896_p2)  ;;  %v991_v2 = vld [vmem:[%s9920_s13 + $0x18] sm:$0xff] (!%p896_p2)  ;;  %p976_p3 = scmp.lt.s32.totalorder (!%p896_p2), %s8149_s1, 1  ;;  %v988_v5 = vld [vmem:[%s9920_s13] sm:$0xff] (!%p896_p2)  ;;  %v9892_v7 = vmov (!%p896_p2), 0.0   ;;  %vm1018_vm0 = vcmask (!%p896_p2), 130048  }
  0x3a   : > { %899 = sbr.rel (%p896_p2) target bundleno = 6998 (0x1b56), region = 148  ;;  %v993_v1 = vld [vmem:[%s9920_s13 + $0x28] sm:$0xff] (!%p896_p2)  ;;  %v995_v4 = vld [vmem:[%s9920_s13 + $0x38] sm:$0xff] (!%p896_p2)  ;;  %v992_v6 = vld [vmem:[%s9920_s13 + $0x20] sm:$0xff] (!%p896_p2)  ;;  %1092 = vmatprep.mubr.f32.mxu0 (!%p896_p2), %v9892_v7  ;;  %1175 = vmatprep.mubr.f32.mxu1 (!%p896_p2), %v9892_v7  ;;  %vm9894_vm1 = vmmov (!%p896_p2), 0   ;;  %s9895_s7 = smov (!%p896_p2), 96  }
  0x3b   : > { %v9152_v3 = vpack.c.bf16 (!%p896_p2), %v993_v1, %v989_v0  ;;  %v9156_v8 = vpack.c.bf16 (!%p896_p2), %v995_v4, %v991_v2  ;;  %v9154_v9 = vpack.c.bf16 (!%p896_p2), %v992_v6, %v988_v5  ;;  %v990_v10 = vld [vmem:[%s9920_s13 + $0x10] sm:$0xff] (!%p896_p2)  ;;  %v1222_v12 = vld [vmem:[%s9930_s21 + $0x80] sm:$0xff] (!%p896_p2)  ;;  %v1223_v14 = vld [vmem:[%s9930_s21 + $0x88] sm:$0xff] (!%p896_p2)  ;;  %s9896_s10 = smov (!%p896_p2), 112   ;;  %s9897_s11 = smov (!%p896_p2), 80   ;;  %vm1747_vm2 = vcmask (!%p896_p2), 64512  }
  0x3c   : > { %v994_v11 = vld [vmem:[%s9920_s13 + $0x30] sm:$0xff] (!%p896_p2)  ;;  %v1254_v15 = vld [vmem:[%s9930_s21 + $0x180] sm:$0xff] (!%p896_p2)  ;;  %v1255_v16 = vld [vmem:[%s9930_s21 + $0x188] sm:$0xff] (!%p896_p2)  ;;  %v9160_v17 = vpack.c.bf16 (!%p896_p2), %v1223_v14, %v1222_v12  ;;  %s9898_s15 = smov (!%p896_p2), 64   ;;  %s9899_s16 = smov (!%p896_p2), 48   ;;  %vm3017_vm3 = vcmask (!%p896_p2), 261120  }
  0x3d   : > { %9153 = vmatprep.subr.bf16.mxu0 (!%p896_p2), %v9152_v3  ;;  %v9158_v13 = vpack.c.bf16 (!%p896_p2), %v994_v11, %v990_v10  ;;  %9157 = vmatprep.subr.bf16.mxu1 (!%p896_p2), %v9156_v8  ;;  %v9192_v18 = vpack.c.bf16 (!%p896_p2), %v1255_v16, %v1254_v15  ;;  %v1206_v19 = vld [vmem:[%s9930_s21] sm:$0xff] (!%p896_p2)  ;;  %v1207_v20 = vld [vmem:[%s9930_s21 + $0x8] sm:$0xff] (!%p896_p2)  ;;  %v1224_v23 = vld [vmem:[%s9930_s21 + $0x90] sm:$0xff] (!%p896_p2)  ;;  %s11455_s18 = smov (!%p896_p2), 32   ;;  %s11453_s22 = smov (!%p896_p2), 16   ;;  %vm3019_vm4 = vcmask (!%p896_p2), 392192  }
  0x3e   : > { %9155 = vmatpush1.bf16.msra.mxu0 (!%p896_p2), %v9154_v9  ;;  %v1238_v21 = vld [vmem:[%s9930_s21 + $0x100] sm:$0xff] (!%p896_p2)  ;;  %v1239_v22 = vld [vmem:[%s9930_s21 + $0x108] sm:$0xff] (!%p896_p2)  ;;  %v1225_v24 = vld [vmem:[%s9930_s21 + $0x98] sm:$0xff] (!%p896_p2)  ;;  %v9162_v25 = vpack.c.bf16 (!%p896_p2), %v1207_v20, %v1206_v19  ;;  %vm3021_vm5 = vcmask (!%p896_p2), 523264   ;;  %vm3023_vm6 = vcmask (!%p896_p2), 654336   ;;  %vm3025_vm7 = vcmask (!%p896_p2), 785408  }
  0x3f   : > { %9159 = vmatpush1.bf16.msra.mxu1 (!%p896_p2), %v9158_v13  ;;  %9161 = vmatprep.subr.bf16.mxu0 (!%p896_p2), %v9160_v17  ;;  %v9194_v26 = vpack.c.bf16 (!%p896_p2), %v1239_v22, %v1238_v21  ;;  %v1256_v27 = vld [vmem:[%s9930_s21 + $0x190] sm:$0xff] (!%p896_p2)  ;;  %v1257_v28 = vld [vmem:[%s9930_s21 + $0x198] sm:$0xff] (!%p896_p2)  ;;  %v9164_v31 = vpack.c.bf16 (!%p896_p2), %v1225_v24, %v1224_v23  ;;  %v1226_v37 = vld [vmem:[%s9930_s21 + $0xa0] sm:$0xff] (!%p896_p2)  ;;  %vm3027_vm8 = vcmask (!%p896_p2), 916480   ;;  %s11472_s23 = sld [smem:[#allocation6_spill]] (!%p896_p2)  ;;  %s11473_s26 = sld [smem:[#allocation8_spill]] (!%p896_p2) }
  0x40   : > { %9193 = vmatprep.subr.bf16.mxu1 (!%p896_p2), %v9192_v18  ;;  %v9196_v32 = vpack.c.bf16 (!%p896_p2), %v1257_v28, %v1256_v27  ;;  %v1208_v33 = vld [vmem:[%s9930_s21 + $0x10] sm:$0xff] (!%p896_p2)  ;;  %v1209_v34 = vld [vmem:[%s9930_s21 + $0x18] sm:$0xff] (!%p896_p2)  ;;  %v1227_v38 = vld [vmem:[%s9930_s21 + $0xa8] sm:$0xff] (!%p896_p2) }
  0x41   : > { %s11492_s1 = smov (!%p976_p3, %s8149_s1), 1  ;;  %v1240_v35 = vld [vmem:[%s9930_s21 + $0x110] sm:$0xff]  ;;  %v1241_v36 = vld [vmem:[%s9930_s21 + $0x118] sm:$0xff]  ;;  %v1258_v39 = vld [vmem:[%s9930_s21 + $0x1a0] sm:$0xff]  ;;  %v9166_v40 = vpack.c.bf16 %v1209_v34, %v1208_v33  ;;  %v9168_v45 = vpack.c.bf16 %v1227_v38, %v1226_v37 }
  0x42   : > { %s9568_s0 = smul.u32 24, %s11492_s1  ;;  %v9198_v41 = vpack.c.bf16 %v1241_v36, %v1240_v35  ;;  %v1259_v42 = vld [vmem:[%s9930_s21 + $0x1a8] sm:$0xff]  ;;  %v1210_v43 = vld [vmem:[%s9930_s21 + $0x20] sm:$0xff]  ;;  %v1228_v49 = vld [vmem:[%s9930_s21 + $0xb0] sm:$0xff] }
  0x43   : > { %v1211_v44 = vld [vmem:[%s9930_s21 + $0x28] sm:$0xff]  ;;  %v9200_v46 = vpack.c.bf16 %v1259_v42, %v1258_v39  ;;  %v1242_v47 = vld [vmem:[%s9930_s21 + $0x120] sm:$0xff]  ;;  %v1229_v50 = vld [vmem:[%s9930_s21 + $0xb8] sm:$0xff] }
  0x44   : > { %s10104_s2 = scalar_lea.vmem %s9910_s5, %s9568_s0  ;;  %v1243_v48 = vld [vmem:[%s9930_s21 + $0x128] sm:$0xff]  ;;  %v1260_v51 = vld [vmem:[%s9930_s21 + $0x1b0] sm:$0xff]  ;;  %v1261_v52 = vld [vmem:[%s9930_s21 + $0x1b8] sm:$0xff]  ;;  %v9170_v54 = vpack.c.bf16 %v1211_v44, %v1210_v43  ;;  %v9172_v58 = vpack.c.bf16 %v1229_v50, %v1228_v49  ;;  %s11474_s0 = sld [smem:[#allocation2_spill]] }
  0x45   : > { %v985_v29 = vld [vmem:[%s10104_s2] sm:$0xff]  ;;  %v986_v30 = vld [vmem:[%s10104_s2 + $0x8] sm:$0xff]  ;;  %v987_v53 = vld [vmem:[%s10104_s2 + $0x10] sm:$0xff]  ;;  %v9202_v55 = vpack.c.bf16 %v1243_v48, %v1242_v47  ;;  %v9204_v59 = vpack.c.bf16 %v1261_v52, %v1260_v51  ;;  %v9893_v52 = vmov 0.0|0.0   ;;  %s11475_s2 = sld [smem:[#allocation3_spill]] }
  0x46   : > { %8156 = vmatmul.mubr.msk.f32.vlgmr.msra.gmra.mrb[0].mxu0 %vm1018_vm0, %v985_v29  ;;  %8159 = vmatmul.mubr.msk.f32.vlgmr.msra.gmra.mrb[0].mxu1 %vm1018_vm0, %v985_v29  ;;  %v1212_v56 = vld [vmem:[%s9930_s21 + $0x30] sm:$0xff]  ;;  %v1213_v57 = vld [vmem:[%s9930_s21 + $0x38] sm:$0xff]  ;;  %v1230_v62 = vld [vmem:[%s9930_s21 + $0xc0] sm:$0xff] }
  0x47   : > { %1098 = vmatprep.mubr.f32.mxu0 %v9892_v7  ;;  %1181 = vmatprep.mubr.f32.mxu1 %v9892_v7  ;;  %v1244_v60 = vld [vmem:[%s9930_s21 + $0x130] sm:$0xff]  ;;  %v1245_v61 = vld [vmem:[%s9930_s21 + $0x138] sm:$0xff]  ;;  %v1231_v63 = vld [vmem:[%s9930_s21 + $0xc8] sm:$0xff]  ;;  %v9174_v2 = vpack.c.bf16 %v1213_v57, %v1212_v56 }
  0x48   : > { %9163 = vmatpush3.bf16.msra.mxu0 %v9162_v25  ;;  %9195 = vmatpush3.bf16.msra.mxu1 %v9194_v26  ;;  %v1262_v0 = vld [vmem:[%s9930_s21 + $0x1c0] sm:$0xff]  ;;  %v1263_v1 = vld [vmem:[%s9930_s21 + $0x1c8] sm:$0xff]  ;;  %v9206_v3 = vpack.c.bf16 %v1245_v61, %v1244_v60  ;;  %v9176_v6 = vpack.c.bf16 %v1231_v63, %v1230_v62  ;;  %v1232_v11 = vld [vmem:[%s9930_s21 + $0xd0] sm:$0xff] }
  0x49   : > { %9165 = vmatprep.subr.bf16.mxu0 %v9164_v31  ;;  %9197 = vmatprep.subr.bf16.mxu1 %v9196_v32  ;;  %v1214_v4 = vld [vmem:[%s9930_s21 + $0x40] sm:$0xff]  ;;  %v1215_v5 = vld [vmem:[%s9930_s21 + $0x48] sm:$0xff]  ;;  %v9208_v8 = vpack.c.bf16 %v1263_v1, %v1262_v0  ;;  %v1233_v12 = vld [vmem:[%s9930_s21 + $0xd8] sm:$0xff] }
  0x4a   : > { %8157 = vmatmul.mubr.msk.f32.gmra.mrb[2].mxu0 %vm1018_vm0, %v986_v30  ;;  %8160 = vmatmul.mubr.msk.f32.gmra.mrb[2].mxu1 %vm1018_vm0, %v986_v30  ;;  %v1246_v9 = vld [vmem:[%s9930_s21 + $0x140] sm:$0xff]  ;;  %v1247_v10 = vld [vmem:[%s9930_s21 + $0x148] sm:$0xff]  ;;  %v1264_v13 = vld [vmem:[%s9930_s21 + $0x1d0] sm:$0xff]  ;;  %v9178_v15 = vpack.c.bf16 %v1215_v5, %v1214_v4  ;;  %v9180_v19 = vpack.c.bf16 %v1233_v12, %v1232_v11 }
  0x4b   : > { %1104 = vmatprep.mubr.f32.mxu0 %v9892_v7  ;;  %1187 = vmatprep.mubr.f32.mxu1 %v9892_v7  ;;  %v1265_v14 = vld [vmem:[%s9930_s21 + $0x1d8] sm:$0xff]  ;;  %v9210_v16 = vpack.c.bf16 %v1247_v10, %v1246_v9  ;;  %v1216_v17 = vld [vmem:[%s9930_s21 + $0x50] sm:$0xff]  ;;  %v1234_v23 = vld [vmem:[%s9930_s21 + $0xe0] sm:$0xff] }
  0x4c   : > { %9167 = vmatpush3.bf16.msra.mxu0 %v9166_v40  ;;  %9199 = vmatpush3.bf16.msra.mxu1 %v9198_v41  ;;  %v1217_v18 = vld [vmem:[%s9930_s21 + $0x58] sm:$0xff]  ;;  %v9212_v20 = vpack.c.bf16 %v1265_v14, %v1264_v13  ;;  %v1248_v21 = vld [vmem:[%s9930_s21 + $0x150] sm:$0xff]  ;;  %v1235_v24 = vld [vmem:[%s9930_s21 + $0xe8] sm:$0xff] }
  0x4d   : > { %9169 = vmatprep.subr.bf16.mxu0 %v9168_v45  ;;  %9201 = vmatprep.subr.bf16.mxu1 %v9200_v46  ;;  %v1249_v22 = vld [vmem:[%s9930_s21 + $0x158] sm:$0xff]  ;;  %v1266_v25 = vld [vmem:[%s9930_s21 + $0x1e0] sm:$0xff]  ;;  %v1267_v26 = vld [vmem:[%s9930_s21 + $0x1e8] sm:$0xff]  ;;  %v9182_v27 = vpack.c.bf16 %v1217_v18, %v1216_v17  ;;  %v9184_v29 = vpack.c.bf16 %v1235_v24, %v1234_v23 }
  0x4e   : > { %8158 = vmatmul.mubr.msk.f32.gmra.mrb[4].mxu0 %vm1018_vm0, %v987_v53  ;;  %8161 = vmatmul.mubr.msk.f32.gmra.mrb[4].mxu1 %vm1018_vm0, %v987_v53  ;;  %v9214_v28 = vpack.c.bf16 %v1249_v22, %v1248_v21  ;;  %v9216_v30 = vpack.c.bf16 %v1267_v26, %v1266_v25  ;;  %v1218_v31 = vld [vmem:[%s9930_s21 + $0x60] sm:$0xff]  ;;  %v1219_v32 = vld [vmem:[%s9930_s21 + $0x68] sm:$0xff]  ;;  %v1236_v37 = vld [vmem:[%s9930_s21 + $0xf0] sm:$0xff]  ;;  %v998_v53 = vlaneseq }
  0x4f   : > { %v1250_v33 = vld [vmem:[%s9930_s21 + $0x160] sm:$0xff]  ;;  %v9186_v34 = vpack.c.bf16 %v1219_v32, %v1218_v31  ;;  %v1251_v35 = vld [vmem:[%s9930_s21 + $0x168] sm:$0xff]  ;;  %v1237_v38 = vld [vmem:[%s9930_s21 + $0xf8] sm:$0xff] }
  0x50   : > { %9171 = vmatpush3.bf16.msra.mxu0 %v9170_v54  ;;  %9203 = vmatpush3.bf16.msra.mxu1 %v9202_v55  ;;  %v9218_v36 = vpack.c.bf16 %v1251_v35, %v1250_v33  ;;  %v1268_v39 = vld [vmem:[%s9930_s21 + $0x1f0] sm:$0xff]  ;;  %v9188_v40 = vpack.c.bf16 %v1237_v38, %v1236_v37  ;;  %v1269_v41 = vld [vmem:[%s9930_s21 + $0x1f8] sm:$0xff]  ;;  %v1444_v49 = vld [vmem:[%s9940_s29 + $0x8] sm:$0xff]  ;;  %v10176_v54 = vshrl.u32 %v998_v53, 7 }
  0x51   : > { %9173 = vmatprep.subr.bf16.mxu0 %v9172_v58  ;;  %9205 = vmatprep.subr.bf16.mxu1 %v9204_v59  ;;  %v1220_v42 = vld [vmem:[%s9930_s21 + $0x70] sm:$0xff]  ;;  %v1221_v43 = vld [vmem:[%s9930_s21 + $0x78] sm:$0xff]  ;;  %v9220_v44 = vpack.c.bf16 %v1269_v41, %v1268_v39  ;;  %v1447_v50 = vld [vmem:[%s9940_s29 + $0x20] sm:$0xff] }
  0x52   : > { %v9190_v45 = vpack.c.bf16 %v1221_v43, %v1220_v42  ;;  %v1252_v46 = vld [vmem:[%s9930_s21 + $0x170] sm:$0xff]  ;;  %v1253_v47 = vld [vmem:[%s9930_s21 + $0x178] sm:$0xff]  ;;  %v9224_v51 = vpack.c.bf16 %v1447_v50, %v1444_v49  ;;  %v10179_v55 = vsub.s32 0, %v10176_v54  ;;  %v1008_v56 = vsub.s32 2, %v10176_v54  ;;  %v996_v57 = vld [vmem:[%s9925_s17] sm:$0xf] }
  0x53   : > { %v9222_v48 = vpack.c.bf16 %v1253_v47, %v1252_v46  ;;  %v10184_v58 = vsub.s32 1, %v10176_v54  ;;  %v1012_v59 = vsub.s32 3, %v10176_v54  ;;  %v1445_v9 = vld [vmem:[%s9940_s29 + $0x10] sm:$0xff]  ;;  %v1448_v10 = vld [vmem:[%s9940_s29 + $0x28] sm:$0xff]  ;;  %v1450_v13 = vld [vmem:[%s9940_s29 + $0x38] sm:$0xff] }
  0x54   : > { %9175 = vmatpush3.bf16.msra.mxu0 %v9174_v2  ;;  %9207 = vmatpush3.bf16.msra.mxu1 %v9206_v3  ;;  %v1001_v60 = vrot.slane %v996_v57, %v10179_v55  ;;  %v1009_v61 = vrot.slane %v996_v57, %v1008_v56  ;;  %v1443_v2 = vld [vmem:[%s9940_s29] sm:$0xff]  ;;  %v1453_v14 = vld [vmem:[%s9940_s29 + $0x50] sm:$0xff]  ;;  %v9257_v21 = vpack.c.bf16 %v1448_v10, %v1445_v9  ;;  %v1454_v31 = vld [vmem:[%s9940_s29 + $0x58] sm:$0xff] }
  0x55   : > { %9177 = vmatprep.subr.bf16.mxu0 %v9176_v6  ;;  %9209 = vmatprep.subr.bf16.mxu1 %v9208_v8  ;;  %v10191_v62 = vrot.slane %v996_v57, %v10184_v58  ;;  %v10193_v63 = vrot.slane %v996_v57, %v1012_v59  ;;  %v1446_v8 = vld [vmem:[%s9940_s29 + $0x18] sm:$0xff]  ;;  %v1449_v22 = vld [vmem:[%s9940_s29 + $0x30] sm:$0xff]  ;;  %v1459_v35 = vld [vmem:[%s9940_s29 + $0x80] sm:$0xff] }
  0x56   : > { %v1458_v50 = vld [vmem:[%s9940_s29 + $0x78] sm:$0xff]  ;;  %v1460_v53 = vld [vmem:[%s9940_s29 + $0x88] sm:$0xff]  ;;  %vm11169_vm9 = vmpackc.low %vm1018_vm0, %vm1018_vm0 }
  0x57   : > { %v1466_v9 = vld [vmem:[%s9940_s29 + $0xb8] sm:$0xff]  ;;  %v1468_v10 = vld [vmem:[%s9940_s29 + $0xc8] sm:$0xff] }
  0x58   : > { %9179 = vmatpush3.bf16.msra.mxu0 %v9178_v15  ;;  %9211 = vmatpush3.bf16.msra.mxu1 %v9210_v16 }
  0x59   : > { %9181 = vmatprep.subr.bf16.mxu0 %v9180_v19  ;;  %9213 = vmatprep.subr.bf16.mxu1 %v9212_v20  ;;  %v9226_v20 = vpack.c.bf16 %v1446_v8, %v1443_v2  ;;  %v1463_v8 = vld [vmem:[%s9940_s29 + $0xa0] sm:$0xff] }
  0x5c   : > { %9183 = vmatpush3.bf16.msra.mxu0 %v9182_v27  ;;  %9215 = vmatpush3.bf16.msra.mxu1 %v9214_v28  ;;  %v9228_v28 = vpack.c.bf16 %v1453_v14, %v1450_v13  ;;  %v9266_v13 = vpack.c.bf16 %v1466_v9, %v1463_v8  ;;  %v1467_v14 = vld [vmem:[%s9940_s29 + $0xc0] sm:$0xff] }
  0x5d   : > { %9185 = vmatprep.subr.bf16.mxu0 %v9184_v29  ;;  %9217 = vmatprep.subr.bf16.mxu1 %v9216_v30  ;;  %v1452_v29 = vld [vmem:[%s9940_s29 + $0x48] sm:$0xff]  ;;  %v1451_v30 = vld [vmem:[%s9940_s29 + $0x40] sm:$0xff] }
  0x5e   : > { %v9230_v42 = vpack.c.bf16 %v1452_v29, %v1449_v22  ;;  %v9260_v43 = vpack.c.bf16 %v1454_v31, %v1451_v30  ;;  %v1480_v30 = vld [vmem:[%s9940_s29 + $0x128] sm:$0xff]  ;;  %v1483_v31 = vld [vmem:[%s9940_s29 + $0x140] sm:$0xff] }
  0x60   : > { %9187 = vmatpush3.bf16.msra.mxu0 %v9186_v34  ;;  %9219 = vmatpush3.bf16.msra.mxu1 %v9218_v36  ;;  %v1456_v34 = vld [vmem:[%s9940_s29 + $0x68] sm:$0xff] }
  0x61   : > { %9189 = vmatprep.subr.bf16.mxu0 %v9188_v40  ;;  %9221 = vmatprep.subr.bf16.mxu1 %v9220_v44  ;;  %v1455_v44 = vld [vmem:[%s9940_s29 + $0x60] sm:$0xff]  ;;  %v9232_v49 = vpack.c.bf16 %v1459_v35, %v1456_v34  ;;  %v1482_v34 = vld [vmem:[%s9940_s29 + $0x138] sm:$0xff] }
  0x64   : > { %9191 = vmatpush3.bf16.msra.mxu0 %v9190_v45  ;;  %9223 = vmatpush3.bf16.msra.mxu1 %v9222_v48 }
  0x65   : > { %9256 = vmatprep.subr.bf16.mxu1 %v9893_v52  ;;  %9225 = vmatprep.subr.bf16.mxu0 %v9224_v51  ;;  %v1457_v51 = vld [vmem:[%s9940_s29 + $0x70] sm:$0xff] }
 0x119   : > { %v1094_v0 = vpop.f32.mrb[0].mxu0  ;;  %v1177_v1 = vpop.f32.mrb[0].mxu1 }
 0x11a   : > { %v1095_v3 = vadd.f32 %v1094_v0, %v1001_v60  ;;  %v1178_v4 = vadd.f32 %v1177_v1, %v1009_v61  ;;  %v1096_v5 = vpop.f32.mrb[1].mxu0  ;;  %v1179_v6 = vpop.f32.mrb[1].mxu1  ;;  %v1462_v0 = vld [vmem:[%s9940_s29 + $0x98] sm:$0xff] }
 0x11b   : > { %v1097_v11 = vadd.f32 %v1096_v5, %v10191_v62  ;;  %v1180_v12 = vadd.f32 %v1179_v6, %v10193_v63  ;;  %v9263_v5 = vpack.c.bf16 %v1460_v53, %v1457_v51  ;;  %v1464_v6 = vld [vmem:[%s9940_s29 + $0xa8] sm:$0xff] }
 0x11c   : > { %v1196_v15 = vmax.f32 %v1178_v4, 0.0  ;;  %v1194_v23 = vmax.f32 %v1095_v3, 0.0  ;;  %v9234_v4 = vpack.c.bf16 %v1458_v50, %v1455_v44  ;;  %v1487_v44 = vld [vmem:[%s9940_s29 + $0x160] sm:$0xff] }
 0x11d   : > { %v1195_v16 = vmax.f32 %v1097_v11, 0.0  ;;  %v1197_v17 = vmax.f32 %v1180_v12, 0.0  ;;  %v1100_v18 = vpop.f32.mrb[2].mxu0  ;;  %v1183_v19 = vpop.f32.mrb[2].mxu1  ;;  %v1471_v11 = vld [vmem:[%s9940_s29 + $0xe0] sm:$0xff] }
 0x11e   : > { %v1101_v24 = vadd.f32 %v1100_v18, %v1001_v60  ;;  %v1102_v25 = vpop.f32.mrb[3].mxu0  ;;  %v1184_v26 = vadd.f32 %v1183_v19, %v1009_v61  ;;  %v1185_v27 = vpop.f32.mrb[3].mxu1  ;;  %v1472_v18 = vld [vmem:[%s9940_s29 + $0xe8] sm:$0xff]  ;;  %v1474_v19 = vld [vmem:[%s9940_s29 + $0xf8] sm:$0xff]  ;;  %v8162_v50 = vld [vmem:[%s9935_s25] ss:$0 sm:$0xff] }
 0x11f   : > { %1341 = vmatprep.mubr.f32.mxu0 %v1195_v16  ;;  %1421 = vmatprep.mubr.f32.mxu1 %v1197_v17  ;;  %v1103_v32 = vadd.f32 %v1102_v25, %v10191_v62  ;;  %v1186_v33 = vadd.f32 %v1185_v27, %v10193_v63  ;;  %v1470_v16 = vld [vmem:[%s9940_s29 + $0xd8] sm:$0xff]  ;;  %v1469_v17 = vld [vmem:[%s9940_s29 + $0xd0] sm:$0xff]  ;;  %v1476_v25 = vld [vmem:[%s9940_s29 + $0x108] sm:$0xff] }
 0x120   : > { %1342 = vmatmul.mubr.f32.vlgmr.msra.gmra.mrb[6].mxu0 %v1194_v23  ;;  %1422 = vmatmul.mubr.f32.vlgmr.msra.gmra.mrb[6].mxu1 %v1196_v15  ;;  %v1198_v36 = vmax.f32 %v1101_v24, 0.0  ;;  %v1200_v37 = vmax.f32 %v1184_v26, 0.0  ;;  %v9240_v15 = vpack.c.bf16 %v1471_v11, %v1468_v10  ;;  %v9269_v22 = vpack.c.bf16 %v1472_v18, %v1469_v17  ;;  %v1473_v23 = vld [vmem:[%s9940_s29 + $0xf0] sm:$0xff]  ;;  %v1475_v26 = vld [vmem:[%s9940_s29 + $0x100] sm:$0xff]  ;;  %v1478_v27 = vld [vmem:[%s9940_s29 + $0x118] sm:$0xff] }
 0x121   : > { %v1199_v38 = vmax.f32 %v1103_v32, 0.0  ;;  %v1201_v39 = vmax.f32 %v1186_v33, 0.0  ;;  %v1106_v40 = vpop.f32.mrb[4].mxu0  ;;  %v1189_v41 = vpop.f32.mrb[4].mxu1  ;;  %9227 = vmatpush1.bf16.msra.mxu0 %v9226_v20  ;;  %9258 = vmatpush3.bf16.msra.mxu1 %v9257_v21  ;;  %v1477_v20 = vld [vmem:[%s9940_s29 + $0x110] sm:$0xff]  ;;  %v9242_v21 = vpack.c.bf16 %v1470_v16, %v1467_v14  ;;  %v9272_v29 = vpack.c.bf16 %v1478_v27, %v1475_v26  ;;  %v1479_v33 = vld [vmem:[%s9940_s29 + $0x120] sm:$0xff] }
 0x122   : > { %v1107_v45 = vadd.f32 %v1106_v40, %v1001_v60  ;;  %v1108_v46 = vpop.f32.mrb[5].mxu0  ;;  %v1190_v47 = vadd.f32 %v1189_v41, %v1009_v61  ;;  %v1191_v48 = vpop.f32.mrb[5].mxu1  ;;  %9229 = vmatprep.subr.bf16.mxu0 %v9228_v28  ;;  %9259 = vmatprep.subr.bf16.mxu1 %v9893_v52  ;;  %v1465_v60 = vld [vmem:[%s9940_s29 + $0xb0] sm:$0xff]  ;;  %v9244_v24 = vpack.c.bf16 %v1477_v20, %v1474_v19  ;;  %v1438_v10 = vld [vmem:[%s9915_s9 + $0x8] sm:$0xff] }
 0x123   : > { %1346 = vmatprep.mubr.f32.mxu0 %v1199_v38  ;;  %1426 = vmatprep.mubr.f32.mxu1 %v1201_v39  ;;  %v1109_v57 = vadd.f32 %v1108_v46, %v10191_v62  ;;  %v1192_v59 = vadd.f32 %v1191_v48, %v10193_v63  ;;  %v1461_v62 = vld [vmem:[%s9940_s29 + $0x90] sm:$0xff]  ;;  %v9236_v63 = vpack.c.bf16 %v1465_v60, %v1462_v0  ;;  %v1486_v39 = vld [vmem:[%s9940_s29 + $0x158] sm:$0xff] }
 0x124   : > { %1347 = vmatmul.mubr.f32.gmra.mrb[8].mxu0 %v1198_v36  ;;  %1427 = vmatmul.mubr.f32.gmra.mrb[8].mxu1 %v1200_v37  ;;  %v1202_v61 = vmax.f32 %v1107_v45, 0.0  ;;  %v1204_v1 = vmax.f32 %v1190_v47, 0.0  ;;  %v9238_v12 = vpack.c.bf16 %v1464_v6, %v1461_v62  ;;  %v9246_v28 = vpack.c.bf16 %v1476_v25, %v1473_v23  ;;  %v1481_v36 = vld [vmem:[%s9940_s29 + $0x130] sm:$0xff]  ;;  %v1484_v37 = vld [vmem:[%s9940_s29 + $0x148] sm:$0xff]  ;;  %v1490_v46 = vld [vmem:[%s9940_s29 + $0x178] sm:$0xff] }
 0x125   : > { %v1203_v2 = vmax.f32 %v1109_v57, 0.0  ;;  %v1205_v3 = vmax.f32 %v1192_v59, 0.0  ;;  %9231 = vmatpush1.bf16.msra.mxu0 %v9230_v42  ;;  %9261 = vmatpush3.bf16.msra.mxu1 %v9260_v43  ;;  %v9248_v32 = vpack.c.bf16 %v1483_v31, %v1480_v30  ;;  %v9250_v35 = vpack.c.bf16 %v1482_v34, %v1479_v33  ;;  %v1489_v40 = vld [vmem:[%s9940_s29 + $0x170] sm:$0xff]  ;;  %v1488_v43 = vld [vmem:[%s9940_s29 + $0x168] sm:$0xff] }
 0x126   : > { %9233 = vmatprep.subr.bf16.mxu0 %v9232_v49  ;;  %9262 = vmatprep.subr.bf16.mxu1 %v9893_v52  ;;  %v9275_v38 = vpack.c.bf16 %v1484_v37, %v1481_v36  ;;  %v9252_v41 = vpack.c.bf16 %v1489_v40, %v1486_v39  ;;  %v1485_v42 = vld [vmem:[%s9940_s29 + $0x150] sm:$0xff]  ;;  %v9278_v47 = vpack.c.bf16 %v1490_v46, %v1487_v44 }
 0x127   : > { %1351 = vmatprep.mubr.f32.mxu0 %v1203_v2  ;;  %1431 = vmatprep.mubr.f32.mxu1 %v1205_v3  ;;  %v9254_v45 = vpack.c.bf16 %v1488_v43, %v1485_v42  ;;  %v1439_v18 = vld [vmem:[%s9915_s9 + $0x10] sm:$0xff] }
 0x128   : > { %1352 = vmatmul.mubr.f32.gmra.mrb[10].mxu0 %v1202_v61  ;;  %1432 = vmatmul.mubr.f32.gmra.mrb[10].mxu1 %v1204_v1  ;;  %v1437_v1 = vld [vmem:[%s9915_s9] sm:$0xff] }
 0x129   : > { %9235 = vmatpush1.bf16.msra.mxu0 %v9234_v4  ;;  %9264 = vmatpush3.bf16.msra.mxu1 %v9263_v5 }
 0x12a   : > { %9237 = vmatprep.subr.bf16.mxu0 %v9236_v63  ;;  %9265 = vmatprep.subr.bf16.mxu1 %v9893_v52 }
 0x12b   : > { %1572 = vmatprep.mubr.f32.mxu0 %v9892_v7  ;;  %8680 = vmatprep.mubr.msk.f32.mxu1 %vm9894_vm1, %v9892_v7 }
 0x12d   : > { %9239 = vmatpush1.bf16.msra.mxu0 %v9238_v12  ;;  %9267 = vmatpush3.bf16.msra.mxu1 %v9266_v13 }
 0x12e   : > { %9241 = vmatprep.subr.bf16.mxu0 %v9240_v15  ;;  %9268 = vmatprep.subr.bf16.mxu1 %v9893_v52 }
 0x131   : > { %9243 = vmatpush1.bf16.msra.mxu0 %v9242_v21  ;;  %9270 = vmatpush3.bf16.msra.mxu1 %v9269_v22  ;;  %v1491_v21 = vld [vmem:[%s9945_s3] sm:$0x7] }
 0x132   : > { %9245 = vmatprep.subr.bf16.mxu0 %v9244_v24  ;;  %9271 = vmatprep.subr.bf16.mxu1 %v9893_v52  ;;  %v1504_v22 = vrot.slane %v1491_v21, %v1008_v56  ;;  %v10289_v23 = vrot.slane %v1491_v21, %v10184_v58 }
 0x135   : > { %9247 = vmatpush1.bf16.msra.mxu0 %v9246_v28  ;;  %9273 = vmatpush3.bf16.msra.mxu1 %v9272_v29  ;;  %v1496_v29 = vrot.slane %v1491_v21, %v10179_v55 }
 0x136   : > { %9274 = vmatprep.subr.bf16.mxu1 %v9893_v52  ;;  %9249 = vmatprep.subr.bf16.mxu0 %v9248_v32 }
 0x139   : > { %9251 = vmatpush1.bf16.msra.mxu0 %v9250_v35  ;;  %9276 = vmatpush3.bf16.msra.mxu1 %v9275_v38 }
 0x13a   : > { %9277 = vmatprep.subr.bf16.mxu1 %v9893_v52  ;;  %9253 = vmatprep.subr.bf16.mxu0 %v9252_v41 }
 0x13d   : > { %9255 = vmatpush1.bf16.msra.mxu0 %v9254_v45  ;;  %9279 = vmatpush3.bf16.msra.mxu1 %v9278_v47 }
 0x13e   : > { %8689 = vmatprep.subr.mxu0 %v9892_v7  ;;  %8694 = vmatprep.subr.mxu1 %v9892_v7 }
 0x1f3   : > { %v8306_v48 = vpop.f32.mrb[6].mxu0  ;;  %v8347_v49 = vpop.f32.mrb[6].mxu1 }
 0x1f4   : > { %v8307_v51 = vpop.f32.mrb[7].mxu0  ;;  %v8348_v53 = vpop.f32.mrb[7].mxu1 }
 0x1f5   : > { %v8308_v57 = vadd.f32 %v8307_v51, %v8306_v48  ;;  %v8349_v59 = vadd.f32 %v8348_v53, %v8347_v49 }
 0x1f7   : > { %v1344_v0 = vadd.f32 %v8308_v57, %v8162_v50  ;;  %v8309_v60 = vpop.f32.mrb[8].mxu0  ;;  %v8350_v61 = vpop.f32.mrb[8].mxu1 }
 0x1f8   : > { %v8310_v2 = vpop.f32.mrb[9].mxu0  ;;  %v8351_v3 = vpop.f32.mrb[9].mxu1 }
 0x1f9   : > { %v1424_v4 = vadd.f32 %v8349_v59, %v1344_v0  ;;  %v8311_v5 = vadd.f32 %v8310_v2, %v8309_v60  ;;  %v8352_v62 = vadd.f32 %v8351_v3, %v8350_v61 }
 0x1fb   : > { %v10261_v63 = vadd.f32 %v1437_v1, %v1424_v4  ;;  %v1349_v6 = vadd.f32 %v8311_v5, %v8162_v50  ;;  %v8312_v8 = vpop.f32.mrb[10].mxu0  ;;  %v8353_v9 = vpop.f32.mrb[10].mxu1 }
 0x1fc   : > { %v8313_v11 = vpop.f32.mrb[11].mxu0  ;;  %v8354_v12 = vpop.f32.mrb[11].mxu1 }
 0x1fd   : > { %1573 = vmatmul.mubr.f32.vlgmr.msra.gmra.mrb[12].mxu0 %v10261_v63  ;;  %8681 = vmatmul.mubr.f32.vlgmr.msra.gmra.mrb[12].mxu1 %v10261_v63  ;;  %v1429_v13 = vadd.f32 %v8352_v62, %v1349_v6  ;;  %v8314_v14 = vadd.f32 %v8313_v11, %v8312_v8  ;;  %v8355_v15 = vadd.f32 %v8354_v12, %v8353_v9 }
 0x1fe   : > { %1578 = vmatprep.mubr.f32.mxu0 %v9892_v7  ;;  %8683 = vmatprep.mubr.msk.f32.mxu1 %vm9894_vm1, %v9892_v7 }
 0x1ff   : > { %v10269_v16 = vadd.f32 %v1438_v10, %v1429_v13  ;;  %v1354_v17 = vadd.f32 %v8314_v14, %v8162_v50 }
 0x201   : > { %1579 = vmatmul.mubr.f32.gmra.mrb[14].mxu0 %v10269_v16  ;;  %v1434_v19 = vadd.f32 %v8355_v15, %v1354_v17  ;;  %8684 = vmatmul.mubr.f32.gmra.mrb[14].mxu1 %v10269_v16 }
 0x202   : > { %1584 = vmatprep.mubr.f32.mxu0 %v9892_v7  ;;  %8686 = vmatprep.mubr.msk.f32.mxu1 %vm9894_vm1, %v9892_v7 }
 0x203   : > { %v10277_v20 = vadd.f32 %v1439_v18, %v1434_v19 }
 0x205   : > { %1585 = vmatmul.mubr.f32.gmra.mrb[16].mxu0 %v10277_v20  ;;  %8687 = vmatmul.mubr.f32.gmra.mrb[16].mxu1 %v10277_v20 }
 0x206   : > { %8691 = vmatprep.mubr.msk.f32.mxu0 %vm9894_vm1, %v9892_v7  ;;  %8696 = vmatprep.mubr.msk.f32.mxu1 %vm9894_vm1, %v9892_v7 }
 0x2d0   : > { %v1574_v24 = vpop.f32.mrb[12].mxu0  ;;  %v1657_v25 = vpop.f32.mrb[12].mxu1 }
 0x2d1   : > { %v10291_v26 = vadd.f32 %v1657_v25, %v1504_v22  ;;  %v1576_v27 = vpop.f32.mrb[13].mxu0  ;;  %v8682_v28 = vpop.f32.mrb[13].mxu1  ;;  %v1575_v34 = vadd.f32 %v1574_v24, %v1496_v29 }
 0x2d2   : > { %v1577_v30 = vadd.f32 %v1576_v27, %v10289_v23 }
 0x2d3   : > { %8695 = vmatpush3.msra.mxu1 %v10291_v26 }
 0x2d4   : > { %2000 = vrot.lane.b32.xlu1 %v1577_v30, %s9895_s7  ;;  %1834 = vrot.lane.b32.xlu0 %v1577_v30, %s9896_s10  ;;  %v1580_v54 = vpop.f32.mrb[14].mxu0  ;;  %v1662_v56 = vpop.f32.mrb[14].mxu1 }
 0x2d5   : > { %8690 = vmatpush3.xpose.msk.msra.mxu0 %vm1018_vm0, %v1577_v30  ;;  %v1582_v31 = vpop.f32.mrb[15].mxu0  ;;  %v10299_v32 = vadd.f32 %v1662_v56, %v1504_v22  ;;  %v8685_v33 = vpop.f32.mrb[15].mxu1  ;;  %8704 = vmatprep.subr.mxu1 %v9892_v7  ;;  %v10318_v40 = vadd.f32 %v1580_v54, %v1496_v29 }
 0x2d6   : > { %8699 = vmatprep.subr.mxu0 %v9892_v7  ;;  %v10323_v41 = vadd.f32 %v1582_v31, %v10289_v23 }
 0x2d8   : > { %8692 = vmatmul.mubr.msk.f32.vlgmr.msra.gmra.mrb[18].mxu0 %vm1018_vm0, %v1575_v34  ;;  %1998 = vrot.lane.b32.xlu1 %v1575_v34, %s9895_s7  ;;  %v1586_v35 = vpop.f32.mrb[16].mxu0  ;;  %v1667_v36 = vpop.f32.mrb[16].mxu1 }
 0x2d9   : > { %1832 = vrot.lane.b32.xlu0 %v1575_v34, %s9896_s10  ;;  %v1588_v37 = vpop.f32.mrb[17].mxu0  ;;  %8701 = vmatprep.mubr.msk.f32.mxu0 %vm9894_vm1, %v9892_v7  ;;  %v10308_v38 = vadd.f32 %v1667_v36, %v1504_v22  ;;  %v8688_v39 = vpop.f32.mrb[17].mxu1  ;;  %v10349_v42 = vadd.f32 %v1586_v35, %v1496_v29 }
 0x2da   : > { %v10356_v43 = vadd.f32 %v1588_v37, %v10289_v23 }
 0x2dc   : > { %2163 = vrot.lane.b32.xlu1 %v1575_v34, %s9897_s11 }
 0x2dd   : > { %2165 = vrot.lane.b32.xlu0 %v1577_v30, %s9897_s11 }
 0x2e0   : > { %2328 = vrot.lane.b32.xlu1 %v1575_v34, %s9898_s15 }
 0x2e1   : > { %2330 = vrot.lane.b32.xlu0 %v1577_v30, %s9898_s15 }
 0x2e4   : > { %2493 = vrot.lane.b32.xlu1 %v1575_v34, %s9899_s16 }
 0x2e5   : > { %2495 = vrot.lane.b32.xlu0 %v1577_v30, %s9899_s16 }
 0x2e8   : > { %2658 = vrot.lane.b32.xlu1 %v1575_v34, %s11455_s18 }
 0x2e9   : > { %2660 = vrot.lane.b32.xlu0 %v1577_v30, %s11455_s18 }
 0x2ec   : > { %2823 = vrot.lane.b32.xlu1 %v1575_v34, %s11453_s22 }
 0x2ed   : > { %2825 = vrot.lane.b32.xlu0 %v1577_v30, %s11453_s22 }
 0x2f0   : > { %3189 = vrot.lane.b32.xlu1 %v10318_v40, %s9896_s10 }
 0x2f1   : > { %3191 = vrot.lane.b32.xlu0 %v10323_v41, %s9896_s10 }
 0x2f4   : > { %3355 = vrot.lane.b32.xlu1 %v10318_v40, %s9895_s7 }
 0x2f5   : > { %3357 = vrot.lane.b32.xlu0 %v10323_v41, %s9895_s7 }
 0x2f8   : > { %3520 = vrot.lane.b32.xlu1 %v10318_v40, %s9897_s11 }
 0x2f9   : > { %3522 = vrot.lane.b32.xlu0 %v10323_v41, %s9897_s11 }
 0x2fc   : > { %3685 = vrot.lane.b32.xlu1 %v10318_v40, %s9898_s15 }
 0x2fd   : > { %3687 = vrot.lane.b32.xlu0 %v10323_v41, %s9898_s15 }
 0x300   : > { %3850 = vrot.lane.b32.xlu1 %v10318_v40, %s9899_s16 }
 0x301   : > { %3852 = vrot.lane.b32.xlu0 %v10323_v41, %s9899_s16 }
 0x304   : > { %4015 = vrot.lane.b32.xlu1 %v10318_v40, %s11455_s18 }
 0x305   : > { %4017 = vrot.lane.b32.xlu0 %v10323_v41, %s11455_s18 }
 0x308   : > { %4180 = vrot.lane.b32.xlu1 %v10318_v40, %s11453_s22 }
 0x309   : > { %4182 = vrot.lane.b32.xlu0 %v10323_v41, %s11453_s22 }
 0x30c   : > { %4540 = vrot.lane.b32.xlu1 %v10349_v42, %s9896_s10 }
 0x30d   : > { %4542 = vrot.lane.b32.xlu0 %v10356_v43, %s9896_s10 }
 0x310   : > { %4706 = vrot.lane.b32.xlu1 %v10349_v42, %s9895_s7 }
 0x311   : > { %4708 = vrot.lane.b32.xlu0 %v10356_v43, %s9895_s7 }
 0x314   : > { %4871 = vrot.lane.b32.xlu1 %v10349_v42, %s9897_s11 }
 0x315   : > { %4873 = vrot.lane.b32.xlu0 %v10356_v43, %s9897_s11 }
 0x318   : > { %5036 = vrot.lane.b32.xlu1 %v10349_v42, %s9898_s15 }
 0x319   : > { %5038 = vrot.lane.b32.xlu0 %v10356_v43, %s9898_s15 }
 0x31c   : > { %5201 = vrot.lane.b32.xlu1 %v10349_v42, %s9899_s16 }
 0x31d   : > { %5203 = vrot.lane.b32.xlu0 %v10356_v43, %s9899_s16 }
 0x320   : > { %5366 = vrot.lane.b32.xlu1 %v10349_v42, %s11455_s18 }
 0x321   : > { %5368 = vrot.lane.b32.xlu0 %v10356_v43, %s11455_s18 }
 0x324   : > { %5531 = vrot.lane.b32.xlu1 %v10349_v42, %s11453_s22 }
 0x325   : > { %5533 = vrot.lane.b32.xlu0 %v10356_v43, %s11453_s22 }
 0x328   : > { %1922 = vrot.lane.b32.xlu1 %v10291_v26, %s9896_s10 }
 0x329   : > { %2087 = vrot.lane.b32.xlu0 %v10291_v26, %s9895_s7 }
 0x32c   : > { %2417 = vrot.lane.b32.xlu1 %v10291_v26, %s9898_s15 }
 0x32d   : > { %2252 = vrot.lane.b32.xlu0 %v10291_v26, %s9897_s11 }
 0x330   : > { %2912 = vrot.lane.b32.xlu1 %v10291_v26, %s11453_s22 }
 0x331   : > { %2582 = vrot.lane.b32.xlu0 %v10291_v26, %s9899_s16 }
 0x334   : > { %3444 = vrot.lane.b32.xlu1 %v10299_v32, %s9895_s7 }
 0x335   : > { %2747 = vrot.lane.b32.xlu0 %v10291_v26, %s11455_s18 }
 0x338   : > { %3774 = vrot.lane.b32.xlu1 %v10299_v32, %s9898_s15 }
 0x339   : > { %3279 = vrot.lane.b32.xlu0 %v10299_v32, %s9896_s10 }
 0x33d   : > { %3609 = vrot.lane.b32.xlu0 %v10299_v32, %s9897_s11 }
 0x346   : > { %v2001_v44 = vpop.permute.xlu1 %2000  ;;  %v1835_v45 = vpop.permute.xlu0 %1834 }
 0x347   : > { %8700 = vmatpush3.xpose.msk.msra.mxu0 %vm1018_vm0, %v1835_v45 }
 0x348   : > { %8709 = vmatprep.subr.mxu0 %v9892_v7 }
 0x34a   : > { %v1999_v46 = vpop.permute.xlu1 %1998 }
 0x34b   : > { %v1833_v47 = vpop.permute.xlu0 %1832 }
 0x34c   : > { %8702 = vmatmul.mubr.msk.f32.vlgmr.msra.gmra.mrb[20].mxu0 %vm1018_vm0, %v1833_v47 }
 0x34d   : > { %8710 = vmatpush3.xpose.msk.msra.mxu0 %vm1018_vm0, %v2001_v44  ;;  %8711 = vmatprep.mubr.msk.f32.mxu0 %vm9894_vm1, %v9892_v7 }
 0x34e   : > { %v2164_v48 = vpop.permute.xlu1 %2163  ;;  %8719 = vmatprep.subr.mxu0 %v9892_v7 }
 0x34f   : > { %v2166_v49 = vpop.permute.xlu0 %2165 }
 0x350   : > { %8712 = vmatmul.mubr.msk.f32.vlgmr.msra.gmra.mrb[22].mxu0 %vm1018_vm0, %v1999_v46 }
 0x351   : > { %8720 = vmatpush3.xpose.msk.msra.mxu0 %vm1018_vm0, %v2166_v49  ;;  %8721 = vmatprep.mubr.msk.f32.mxu0 %vm9894_vm1, %v9892_v7 }
 0x352   : > { %v2329_v50 = vpop.permute.xlu1 %2328  ;;  %8729 = vmatprep.subr.mxu0 %v9892_v7 }
 0x353   : > { %v2331_v51 = vpop.permute.xlu0 %2330 }
 0x354   : > { %8722 = vmatmul.mubr.msk.f32.vlgmr.msra.gmra.mrb[24].mxu0 %vm1018_vm0, %v2164_v48 }
 0x355   : > { %8730 = vmatpush3.xpose.msk.msra.mxu0 %vm1018_vm0, %v2331_v51  ;;  %8731 = vmatprep.mubr.msk.f32.mxu0 %vm9894_vm1, %v9892_v7 }
 0x356   : > { %v2494_v53 = vpop.permute.xlu1 %2493  ;;  %8739 = vmatprep.subr.mxu0 %v9892_v7 }
 0x357   : > { %v2496_v57 = vpop.permute.xlu0 %2495 }
 0x358   : > { %8732 = vmatmul.mubr.msk.f32.vlgmr.msra.gmra.mrb[26].mxu0 %vm1018_vm0, %v2329_v50 }
 0x359   : > { %8740 = vmatpush3.xpose.msk.msra.mxu0 %vm1018_vm0, %v2496_v57  ;;  %8741 = vmatprep.mubr.msk.f32.mxu0 %vm9894_vm1, %v9892_v7 }
 0x35a   : > { %v2659_v59 = vpop.permute.xlu1 %2658  ;;  %8749 = vmatprep.subr.mxu0 %v9892_v7 }
 0x35b   : > { %v2661_v0 = vpop.permute.xlu0 %2660 }
 0x35c   : > { %8742 = vmatmul.mubr.msk.f32.vlgmr.msra.gmra.mrb[28].mxu0 %vm1018_vm0, %v2494_v53 }
 0x35d   : > { %8750 = vmatpush3.xpose.msk.msra.mxu0 %vm1018_vm0, %v2661_v0  ;;  %8751 = vmatprep.mubr.msk.f32.mxu0 %vm9894_vm1, %v9892_v7 }
 0x35e   : > { %v2824_v60 = vpop.permute.xlu1 %2823  ;;  %8759 = vmatprep.subr.mxu0 %v9892_v7 }
 0x35f   : > { %v2826_v61 = vpop.permute.xlu0 %2825 }
 0x360   : > { %8752 = vmatmul.mubr.msk.f32.vlgmr.msra.gmra.mrb[30].mxu0 %vm1018_vm0, %v2659_v59 }
 0x361   : > { %8760 = vmatpush3.xpose.msk.msra.mxu0 %vm1018_vm0, %v2826_v61  ;;  %8761 = vmatprep.mubr.msk.f32.mxu0 %vm9894_vm1, %v9892_v7 }
 0x362   : > { %v3190_v1 = vpop.permute.xlu1 %3189  ;;  %8769 = vmatprep.subr.mxu0 %v9892_v7 }
 0x363   : > { %v3192_v2 = vpop.permute.xlu0 %3191 }
 0x364   : > { %8762 = vmatmul.mubr.msk.f32.vlgmr.msra.gmra.mrb[32].mxu0 %vm1018_vm0, %v2824_v60 }
 0x365   : > { %8770 = vmatpush3.xpose.msk.msra.mxu0 %vm1018_vm0, %v10323_v41  ;;  %8771 = vmatprep.mubr.msk.f32.mxu0 %vm9894_vm1, %v9892_v7 }
 0x366   : > { %v3356_v3 = vpop.permute.xlu1 %3355  ;;  %8779 = vmatprep.subr.mxu0 %v9892_v7 }
 0x367   : > { %v3358_v4 = vpop.permute.xlu0 %3357 }
 0x368   : > { %8772 = vmatmul.mubr.msk.f32.vlgmr.msra.gmra.mrb[34].mxu0 %vm1018_vm0, %v10318_v40 }
 0x369   : > { %8780 = vmatpush3.xpose.msk.msra.mxu0 %vm1018_vm0, %v3192_v2  ;;  %8781 = vmatprep.mubr.msk.f32.mxu0 %vm9894_vm1, %v9892_v7 }
 0x36a   : > { %v3521_v5 = vpop.permute.xlu1 %3520  ;;  %8789 = vmatprep.subr.mxu0 %v9892_v7 }
 0x36b   : > { %v3523_v62 = vpop.permute.xlu0 %3522 }
 0x36c   : > { %8782 = vmatmul.mubr.msk.f32.vlgmr.msra.gmra.mrb[36].mxu0 %vm1018_vm0, %v3190_v1 }
 0x36d   : > { %8790 = vmatpush3.xpose.msk.msra.mxu0 %vm1018_vm0, %v3358_v4  ;;  %8791 = vmatprep.mubr.msk.f32.mxu0 %vm9894_vm1, %v9892_v7 }
 0x36e   : > { %v3686_v6 = vpop.permute.xlu1 %3685  ;;  %8799 = vmatprep.subr.mxu0 %v9892_v7 }
 0x36f   : > { %v3688_v8 = vpop.permute.xlu0 %3687 }
 0x370   : > { %8792 = vmatmul.mubr.msk.f32.vlgmr.msra.gmra.mrb[38].mxu0 %vm1018_vm0, %v3356_v3 }
 0x371   : > { %8800 = vmatpush3.xpose.msk.msra.mxu0 %vm1018_vm0, %v3523_v62  ;;  %8801 = vmatprep.mubr.msk.f32.mxu0 %vm9894_vm1, %v9892_v7 }
 0x372   : > { %v3851_v9 = vpop.permute.xlu1 %3850  ;;  %8809 = vmatprep.subr.mxu0 %v9892_v7 }
 0x373   : > { %v3853_v10 = vpop.permute.xlu0 %3852 }
 0x374   : > { %8802 = vmatmul.mubr.msk.f32.vlgmr.msra.gmra.mrb[40].mxu0 %vm1018_vm0, %v3521_v5 }
 0x375   : > { %8810 = vmatpush3.xpose.msk.msra.mxu0 %vm1018_vm0, %v3688_v8  ;;  %8811 = vmatprep.mubr.msk.f32.mxu0 %vm9894_vm1, %v9892_v7 }
 0x376   : > { %v4016_v11 = vpop.permute.xlu1 %4015  ;;  %8819 = vmatprep.subr.mxu0 %v9892_v7 }
 0x377   : > { %v4018_v12 = vpop.permute.xlu0 %4017 }
 0x378   : > { %8812 = vmatmul.mubr.msk.f32.vlgmr.msra.gmra.mrb[42].mxu0 %vm1018_vm0, %v3686_v6 }
 0x379   : > { %8820 = vmatpush3.xpose.msk.msra.mxu0 %vm1018_vm0, %v3853_v10  ;;  %8821 = vmatprep.mubr.msk.f32.mxu0 %vm9894_vm1, %v9892_v7 }
 0x37a   : > { %v4181_v13 = vpop.permute.xlu1 %4180  ;;  %8829 = vmatprep.subr.mxu0 %v9892_v7 }
 0x37b   : > { %v4183_v14 = vpop.permute.xlu0 %4182 }
 0x37c   : > { %8822 = vmatmul.mubr.msk.f32.vlgmr.msra.gmra.mrb[44].mxu0 %vm1018_vm0, %v3851_v9 }
 0x37d   : > { %8830 = vmatpush3.xpose.msk.msra.mxu0 %vm1018_vm0, %v4018_v12  ;;  %8831 = vmatprep.mubr.msk.f32.mxu0 %vm9894_vm1, %v9892_v7 }
 0x37e   : > { %8839 = vmatprep.subr.mxu0 %v9892_v7  ;;  %v4541_v15 = vpop.permute.xlu1 %4540 }
 0x37f   : > { %v4543_v17 = vpop.permute.xlu0 %4542 }
 0x380   : > { %8832 = vmatmul.mubr.msk.f32.vlgmr.msra.gmra.mrb[46].mxu0 %vm1018_vm0, %v4016_v11 }
 0x381   : > { %8840 = vmatpush3.xpose.msk.msra.mxu0 %vm1018_vm0, %v4183_v14  ;;  %8841 = vmatprep.mubr.msk.f32.mxu0 %vm9894_vm1, %v9892_v7 }
 0x382   : > { %8849 = vmatprep.subr.mxu0 %v9892_v7  ;;  %v4707_v19 = vpop.permute.xlu1 %4706 }
 0x383   : > { %v4709_v18 = vpop.permute.xlu0 %4708 }
 0x384   : > { %8842 = vmatmul.mubr.msk.f32.vlgmr.msra.gmra.mrb[48].mxu0 %vm1018_vm0, %v4181_v13 }
 0x385   : > { %8850 = vmatpush3.xpose.msk.msra.mxu0 %vm1018_vm0, %v10356_v43  ;;  %8851 = vmatprep.mubr.msk.f32.mxu0 %vm9894_vm1, %v9892_v7 }
 0x386   : > { %8859 = vmatprep.subr.mxu0 %v9892_v7  ;;  %v4872_v22 = vpop.permute.xlu1 %4871 }
 0x387   : > { %v4874_v21 = vpop.permute.xlu0 %4873 }
 0x388   : > { %8852 = vmatmul.mubr.msk.f32.vlgmr.msra.gmra.mrb[50].mxu0 %vm1018_vm0, %v10349_v42 }
 0x389   : > { %8860 = vmatpush3.xpose.msk.msra.mxu0 %vm1018_vm0, %v4543_v17  ;;  %8861 = vmatprep.mubr.msk.f32.mxu0 %vm9894_vm1, %v9892_v7 }
 0x38a   : > { %8869 = vmatprep.subr.mxu0 %v9892_v7  ;;  %v5037_v24 = vpop.permute.xlu1 %5036 }
 0x38b   : > { %v5039_v23 = vpop.permute.xlu0 %5038 }
 0x38c   : > { %8862 = vmatmul.mubr.msk.f32.vlgmr.msra.gmra.mrb[52].mxu0 %vm1018_vm0, %v4541_v15 }
 0x38d   : > { %8870 = vmatpush3.xpose.msk.msra.mxu0 %vm1018_vm0, %v4709_v18  ;;  %8871 = vmatprep.mubr.msk.f32.mxu0 %vm9894_vm1, %v9892_v7 }
 0x38e   : > { %8879 = vmatprep.subr.mxu0 %v9892_v7  ;;  %v5202_v26 = vpop.permute.xlu1 %5201 }
 0x38f   : > { %v5204_v25 = vpop.permute.xlu0 %5203 }
 0x390   : > { %8872 = vmatmul.mubr.msk.f32.vlgmr.msra.gmra.mrb[54].mxu0 %vm1018_vm0, %v4707_v19 }
 0x391   : > { %8880 = vmatpush3.xpose.msk.msra.mxu0 %vm1018_vm0, %v4874_v21  ;;  %8881 = vmatprep.mubr.msk.f32.mxu0 %vm9894_vm1, %v9892_v7 }
 0x392   : > { %8889 = vmatprep.subr.mxu0 %v9892_v7  ;;  %v5367_v28 = vpop.permute.xlu1 %5366 }
 0x393   : > { %v5369_v27 = vpop.permute.xlu0 %5368 }
 0x394   : > { %8882 = vmatmul.mubr.msk.f32.vlgmr.msra.gmra.mrb[56].mxu0 %vm1018_vm0, %v4872_v22 }
 0x395   : > { %8890 = vmatpush3.xpose.msk.msra.mxu0 %vm1018_vm0, %v5039_v23  ;;  %8891 = vmatprep.mubr.msk.f32.mxu0 %vm9894_vm1, %v9892_v7 }
 0x396   : > { %8899 = vmatprep.subr.mxu0 %v9892_v7  ;;  %v5532_v30 = vpop.permute.xlu1 %5531 }
 0x397   : > { %v5534_v29 = vpop.permute.xlu0 %5533 }
 0x398   : > { %8892 = vmatmul.mubr.msk.f32.vlgmr.msra.gmra.mrb[58].mxu0 %vm1018_vm0, %v5037_v24 }
 0x399   : > { %8900 = vmatpush3.xpose.msk.msra.mxu0 %vm1018_vm0, %v5204_v25  ;;  %8901 = vmatprep.mubr.msk.f32.mxu0 %vm9894_vm1, %v9892_v7 }
 0x39a   : > { %8909 = vmatprep.subr.mxu0 %v9892_v7 }
 0x39b   : > { %v10548_v49 = vpop.permute.xlu0 %2087 }
 0x39c   : > { %8902 = vmatmul.mubr.msk.f32.vlgmr.msra.gmra.mrb[60].mxu0 %vm1018_vm0, %v5202_v26 }
 0x39d   : > { %8910 = vmatpush3.xpose.msk.msra.mxu0 %vm1018_vm0, %v5369_v27  ;;  %8911 = vmatprep.mubr.msk.f32.mxu0 %vm9894_vm1, %v9892_v7 }
 0x39e   : > { %8919 = vmatprep.subr.mxu0 %v9892_v7 }
 0x39f   : > { %v10554_v59 = vpop.permute.xlu0 %2252 }
 0x3a0   : > { %8912 = vmatmul.mubr.msk.f32.vlgmr.msra.gmra.mrb[62].mxu0 %vm1018_vm0, %v5367_v28 }
 0x3a1   : > { %8920 = vmatpush3.xpose.msk.msra.mxu0 %vm1018_vm0, %v5534_v29  ;;  %8921 = vmatprep.mubr.msk.f32.mxu0 %vm9894_vm1, %v9892_v7 }
 0x3a2   : > { %9280 = vmatprep.subr.bf16.mxu0 %v9893_v52 }
 0x3a3   : > { %v10560_v61 = vpop.permute.xlu0 %2582 }
 0x3a4   : > { %8922 = vmatmul.mubr.msk.f32.vlgmr.msra.gmra.mrb[64].mxu0 %vm1018_vm0, %v5532_v30 }
 0x3a5   : > { %8961 = vmatprep.mubr.msk.f32.mxu0 %vm9894_vm1, %v9892_v7 }
 0x3a7   : > { %v10566_v5 = vpop.permute.xlu0 %2747 }
 0x3ab   : > { %v1743_v54 = vpop.f32.mrb[18].mxu0  ;;  %v10572_v8 = vpop.permute.xlu0 %3279 }
 0x3ac   : > { %v8693_v56 = vpop.f32.mrb[19].mxu0  ;;  %v1748_v31 = vsel %vm1747_vm2, %v1743_v54, -inf }
 0x3ad   : > { %1749 = vmax.xlane.f32.xlu0 %v1748_v31 }
 0x3af   : > { %v10578_v13 = vpop.permute.xlu0 %3609 }
 0x41f   : > { %v10528_v33 = vpop.f32.mrb[20].mxu0 }
 0x420   : > { %v8703_v34 = vpop.f32.mrb[21].mxu0  ;;  %v1910_v35 = vsel %vm1747_vm2, %v10528_v33, -inf }
 0x421   : > { %1911 = vmax.xlane.f32.xlu1 %v1910_v35 }
 0x423   : > { %v10532_v36 = vpop.f32.mrb[22].mxu0 }
 0x424   : > { %v8713_v37 = vpop.f32.mrb[23].mxu0  ;;  %v2076_v39 = vsel %vm1747_vm2, %v10532_v36, -inf }
 0x425   : > { %2077 = vmax.xlane.f32.xlu0 %v2076_v39 }
 0x427   : > { %v10536_v40 = vpop.f32.mrb[24].mxu0 }
 0x428   : > { %v8723_v41 = vpop.f32.mrb[25].mxu0  ;;  %v2241_v42 = vsel %vm1747_vm2, %v10536_v40, -inf }
 0x429   : > { %2242 = vmax.xlane.f32.xlu0 %v2241_v42 }
 0x42b   : > { %v10540_v43 = vpop.f32.mrb[26].mxu0 }
 0x42c   : > { %v8733_v44 = vpop.f32.mrb[27].mxu0  ;;  %v2406_v45 = vsel %vm1747_vm2, %v10540_v43, -inf }
 0x42d   : > { %2407 = vmax.xlane.f32.xlu1 %v2406_v45 }
 0x42f   : > { %v10544_v46 = vpop.f32.mrb[28].mxu0 }
 0x430   : > { %v8743_v47 = vpop.f32.mrb[29].mxu0  ;;  %v2571_v48 = vsel %vm1747_vm2, %v10544_v46, -inf }
 0x431   : > { %2572 = vmax.xlane.f32.xlu0 %v2571_v48 }
 0x433   : > { %v10550_v50 = vpop.f32.mrb[30].mxu0 }
 0x434   : > { %v8753_v51 = vpop.f32.mrb[31].mxu0  ;;  %v2736_v27 = vsel %vm1747_vm2, %v10550_v50, -inf }
 0x437   : > { %v10552_v53 = vpop.f32.mrb[32].mxu0 }
 0x438   : > { %v8763_v57 = vpop.f32.mrb[33].mxu0  ;;  %v2901_v30 = vsel %vm1747_vm2, %v10552_v53, -inf }
 0x43a   : > { %v1750_v17 = vpop.xlane.xlu0 %1749 }
 0x43b   : > { %v10556_v0 = vpop.f32.mrb[34].mxu0  ;;  %v1751_v19 = vsub.f32 %v1743_v54, %v1750_v17 }
 0x43c   : > { %v8773_v60 = vpop.f32.mrb[35].mxu0  ;;  %v3105_v54 = vsel %vm1747_vm2, %v10556_v0, -inf }
 0x43d   : > { %v1752_v23 = vmul.f32 1.442695, %v1751_v19 }
 0x43e   : > { %4104 = vrot.lane.b32.xlu1 %v10299_v32, %s11455_s18 }
 0x43f   : > { %v10562_v1 = vpop.f32.mrb[36].mxu0  ;;  %9724 = vpow2.f32 %v1752_v23 }
 0x440   : > { %v8783_v2 = vpop.f32.mrb[37].mxu0  ;;  %v3267_v34 = vsel %vm1747_vm2, %v10562_v1, -inf }
 0x443   : > { %v10564_v3 = vpop.f32.mrb[38].mxu0 }
 0x444   : > { %v8793_v4 = vpop.f32.mrb[39].mxu0  ;;  %v3433_v35 = vsel %vm1747_vm2, %v10564_v3, -inf }
 0x447   : > { %3939 = vrot.lane.b32.xlu0 %v10299_v32, %s9899_s16  ;;  %v10570_v62 = vpop.f32.mrb[40].mxu0 }
 0x448   : > { %v8803_v6 = vpop.f32.mrb[41].mxu0  ;;  %v3598_v44 = vsel %vm1747_vm2, %v10570_v62, -inf }
 0x449   : > { %v10602_v37 = vpop.eup %9724 }
 0x44a   : > { %v1754_v42 = vsel %vm1747_vm2, %v10602_v37, 0.0 }
 0x44b   : > { %v10574_v9 = vpop.f32.mrb[42].mxu0 }
 0x44c   : > { %v8813_v10 = vpop.f32.mrb[43].mxu0  ;;  %v3763_v48 = vsel %vm1747_vm2, %v10574_v9, -inf }
 0x44f   : > { %v10576_v11 = vpop.f32.mrb[44].mxu0 }
 0x450   : > { %v8823_v12 = vpop.f32.mrb[45].mxu0  ;;  %v3928_v51 = vsel %vm1747_vm2, %v10576_v11, -inf }
 0x453   : > { %v10580_v14 = vpop.f32.mrb[46].mxu0 }
 0x454   : > { %v8833_v15 = vpop.f32.mrb[47].mxu0  ;;  %v4093_v2 = vsel %vm1747_vm2, %v10580_v14, -inf }
 0x457   : > { %v10582_v18 = vpop.f32.mrb[48].mxu0 }
 0x458   : > { %v8843_v21 = vpop.f32.mrb[49].mxu0  ;;  %v4258_v4 = vsel %vm1747_vm2, %v10582_v18, -inf }
 0x45b   : > { %v10584_v22 = vpop.f32.mrb[50].mxu0 }
 0x45c   : > { %v8853_v24 = vpop.f32.mrb[51].mxu0  ;;  %v4456_v15 = vsel %vm1747_vm2, %v10584_v22, -inf }
 0x45f   : > { %v10586_v25 = vpop.f32.mrb[52].mxu0 }
 0x460   : > { %v8863_v26 = vpop.f32.mrb[53].mxu0  ;;  %v4618_v6 = vsel %vm1747_vm2, %v10586_v25, -inf }
 0x462   : > { %2737 = vmax.xlane.f32.xlu1 %v2736_v27  ;;  %v10640_v27 = vpop.permute.xlu1 %1922 }
 0x463   : > { %v10590_v28 = vpop.f32.mrb[54].mxu0 }
 0x464   : > { %v8873_v29 = vpop.f32.mrb[55].mxu0  ;;  %v4784_v17 = vsel %vm1747_vm2, %v10590_v28, -inf }
 0x466   : > { %2902 = vmax.xlane.f32.xlu0 %v2901_v30  ;;  %3106 = vmax.xlane.f32.xlu1 %v3105_v54  ;;  %v10642_v29 = vpop.permute.xlu1 %2417 }
 0x467   : > { %v10596_v56 = vpop.f32.mrb[56].mxu0 }
 0x468   : > { %v8883_v31 = vpop.f32.mrb[57].mxu0  ;;  %v4949_v19 = vsel %vm1747_vm2, %v10596_v56, -inf }
 0x46a   : > { %3268 = vmax.xlane.f32.xlu0 %v3267_v34  ;;  %3434 = vmax.xlane.f32.xlu1 %v3433_v35  ;;  %v10644_v30 = vpop.permute.xlu1 %2912 }
 0x46b   : > { %v10604_v39 = vpop.f32.mrb[58].mxu0 }
 0x46c   : > { %v8893_v41 = vpop.f32.mrb[59].mxu0  ;;  %v5114_v21 = vsel %vm1747_vm2, %v10604_v39, -inf }
 0x46e   : > { %1755 = vadd.xlane.f32.xlu1 %v1754_v42  ;;  %3599 = vmax.xlane.f32.xlu0 %v3598_v44  ;;  %v10646_v54 = vpop.permute.xlu1 %3444 }
 0x46f   : > { %v10610_v45 = vpop.f32.mrb[60].mxu0 }
 0x470   : > { %v8903_v47 = vpop.f32.mrb[61].mxu0  ;;  %v5279_v23 = vsel %vm1747_vm2, %v10610_v45, -inf }
 0x472   : > { %3764 = vmax.xlane.f32.xlu1 %v3763_v48  ;;  %3929 = vmax.xlane.f32.xlu0 %v3928_v51  ;;  %v10648_v31 = vpop.permute.xlu1 %3774 }
 0x473   : > { %v10616_v57 = vpop.f32.mrb[62].mxu0 }
 0x474   : > { %v8913_v60 = vpop.f32.mrb[63].mxu0  ;;  %v5444_v24 = vsel %vm1747_vm2, %v10616_v57, -inf }
 0x476   : > { %4094 = vmax.xlane.f32.xlu1 %v4093_v2  ;;  %4259 = vmax.xlane.f32.xlu0 %v4258_v4 }
 0x477   : > { %v10624_v10 = vpop.f32.mrb[64].mxu0 }
 0x478   : > { %v8923_v12 = vpop.f32.mrb[65].mxu0  ;;  %v5609_v26 = vsel %vm1747_vm2, %v10624_v10, -inf }
 0x47a   : > { %4457 = vmax.xlane.f32.xlu1 %v4456_v15  ;;  %4619 = vmax.xlane.f32.xlu0 %v4618_v6 }
 0x47e   : > { %4785 = vmax.xlane.f32.xlu1 %v4784_v17  ;;  %4950 = vmax.xlane.f32.xlu0 %v4949_v19 }
 0x482   : > { %5115 = vmax.xlane.f32.xlu1 %v5114_v21  ;;  %5280 = vmax.xlane.f32.xlu0 %v5279_v23 }
 0x486   : > { %5445 = vmax.xlane.f32.xlu0 %v5444_v24 }
 0x48a   : > { %5610 = vmax.xlane.f32.xlu0 %v5609_v26 }
 0x4ae   : > { %v1912_v34 = vpop.xlane.xlu1 %1911 }
 0x4af   : > { %v1913_v35 = vsub.f32 %v10528_v33, %v1912_v34 }
 0x4b1   : > { %v1914_v41 = vmul.f32 1.442695, %v1913_v35 }
 0x4b2   : > { %v2078_v42 = vpop.xlane.xlu0 %2077 }
 0x4b3   : > { %9726 = vpow2.f32 %v1914_v41  ;;  %v2079_v44 = vsub.f32 %v10532_v36, %v2078_v42 }
 0x4b5   : > { %v2080_v47 = vmul.f32 1.442695, %v2079_v44 }
 0x4b6   : > { %v2243_v48 = vpop.xlane.xlu0 %2242 }
 0x4b7   : > { %9728 = vpow2.f32 %v2080_v47  ;;  %v2244_v51 = vsub.f32 %v10536_v40, %v2243_v48 }
 0x4b9   : > { %v2245_v60 = vmul.f32 1.442695, %v2244_v51 }
 0x4ba   : > { %v2408_v2 = vpop.xlane.xlu1 %2407 }
 0x4bb   : > { %9730 = vpow2.f32 %v2245_v60  ;;  %v2409_v4 = vsub.f32 %v10540_v43, %v2408_v2 }
 0x4bd   : > { %v10654_v6 = vpop.eup %9726  ;;  %v2410_v12 = vmul.f32 1.442695, %v2409_v4 }
 0x4be   : > { %v2573_v15 = vpop.xlane.xlu0 %2572  ;;  %v1916_v33 = vsel %vm1747_vm2, %v10654_v6, 0.0  ;;  %v10675_v34 = vpop.permute.xlu1 %4104 }
 0x4bf   : > { %9732 = vpow2.f32 %v2410_v12  ;;  %v2574_v36 = vsub.f32 %v10544_v46, %v2573_v15  ;;  %1917 = vadd.xlane.f32.xlu1 %v1916_v33 }
 0x4c1   : > { %v10659_v17 = vpop.eup %9728  ;;  %v2575_v19 = vmul.f32 1.442695, %v2574_v36 }
 0x4c2   : > { %v2082_v40 = vsel %vm1747_vm2, %v10659_v17, 0.0  ;;  %v10677_v35 = vpop.permute.xlu0 %3939 }
 0x4c3   : > { %9734 = vpow2.f32 %v2575_v19  ;;  %2083 = vadd.xlane.f32.xlu1 %v2082_v40 }
 0x4c5   : > { %v10663_v43 = vpop.eup %9730 }
 0x4c6   : > { %v2247_v21 = vsel %vm1747_vm2, %v10663_v43, 0.0 }
 0x4c7   : > { %2248 = vadd.xlane.f32.xlu0 %v2247_v21 }
 0x4c9   : > { %v10667_v23 = vpop.eup %9732 }
 0x4ca   : > { %v2412_v46 = vsel %vm1747_vm2, %v10667_v23, 0.0 }
 0x4cb   : > { %2413 = vadd.xlane.f32.xlu1 %v2412_v46 }
 0x4cd   : > { %v10671_v24 = vpop.eup %9734 }
 0x4ce   : > { %v2577_v26 = vsel %vm1747_vm2, %v10671_v24, 0.0 }
 0x4cf   : > { %2578 = vadd.xlane.f32.xlu0 %v2577_v26 }
 0x4ef   : > { %v2738_v41 = vpop.xlane.xlu1 %2737 }
 0x4f0   : > { %v2739_v42 = vsub.f32 %v10550_v50, %v2738_v41 }
 0x4f2   : > { %v2740_v44 = vmul.f32 1.442695, %v2739_v42 }
 0x4f3   : > { %v2903_v47 = vpop.xlane.xlu0 %2902  ;;  %v3107_v48 = vpop.xlane.xlu1 %3106 }
 0x4f4   : > { %9736 = vpow2.f32 %v2740_v44  ;;  %v2904_v51 = vsub.f32 %v10552_v53, %v2903_v47  ;;  %v3108_v60 = vsub.f32 %v10556_v0, %v3107_v48 }
 0x4f6   : > { %v2905_v2 = vmul.f32 1.442695, %v2904_v51  ;;  %v3109_v4 = vmul.f32 1.442695, %v3108_v60 }
 0x4f7   : > { %v3269_v12 = vpop.xlane.xlu0 %3268  ;;  %v3435_v15 = vpop.xlane.xlu1 %3434 }
 0x4f8   : > { %9738 = vpow2.f32 %v2905_v2  ;;  %v3270_v33 = vsub.f32 %v10562_v1, %v3269_v12  ;;  %v3436_v36 = vsub.f32 %v10564_v3, %v3435_v15 }
 0x4f9   : > { %9740 = vpow2.f32 %v3109_v4 }
 0x4fa   : > { %v3271_v19 = vmul.f32 1.442695, %v3270_v33  ;;  %v3437_v50 = vmul.f32 1.442695, %v3436_v36 }
 0x4fb   : > { %v1756_v40 = vpop.xlane.xlu1 %1755  ;;  %v3600_v21 = vpop.xlane.xlu0 %3599 }
 0x4fc   : > { %9742 = vpow2.f32 %v3271_v19  ;;  %v3601_v46 = vsub.f32 %v10570_v62, %v3600_v21 }
 0x4fd   : > { %9744 = vpow2.f32 %v3437_v50 }
 0x4fe   : > { %v10685_v53 = vpop.eup %9736  ;;  %9746 = vrcp.f32 %v1756_v40  ;;  %v3602_v0 = vmul.f32 1.442695, %v3601_v46 }
 0x4ff   : > { %v2742_v26 = vsel %vm1747_vm2, %v10685_v53, 0.0  ;;  %v3765_v12 = vpop.xlane.xlu1 %3764 }
 0x500   : > { %2743 = vadd.xlane.f32.xlu1 %v2742_v26  ;;  %9748 = vpow2.f32 %v3602_v0  ;;  %v3766_v33 = vsub.f32 %v10574_v9, %v3765_v12 }
 0x502   : > { %v10689_v1 = vpop.eup %9738  ;;  %v3767_v50 = vmul.f32 1.442695, %v3766_v33 }
 0x503   : > { %v2907_v3 = vsel %vm1747_vm2, %v10689_v1, 0.0  ;;  %v10693_v41 = vpop.eup %9740 }
 0x504   : > { %2908 = vadd.xlane.f32.xlu0 %v2907_v3  ;;  %v3111_v47 = vsel %vm1747_vm2, %v10693_v41, 0.0  ;;  %9750 = vpow2.f32 %v3767_v50 }
 0x506   : > { %v10695_v42 = vpop.eup %9742 }
 0x507   : > { %v10697_v62 = vpop.eup %9744  ;;  %v3273_v44 = vsel %vm1747_vm2, %v10695_v42, 0.0 }
 0x508   : > { %v9747_v48 = vpop.eup %9746  ;;  %3274 = vadd.xlane.f32.xlu1 %v3273_v44  ;;  %3112 = vadd.xlane.f32.xlu0 %v3111_v47  ;;  %v3439_v60 = vsel %vm1747_vm2, %v10697_v62, 0.0 }
 0x509   : > { %v1758_v51 = vmul.f32 %v9747_v48, %v10602_v37  ;;  %v3930_v37 = vpop.xlane.xlu0 %3929 }
 0x50a   : > { %v10707_v2 = vpop.eup %9748  ;;  %v3931_v19 = vsub.f32 %v10576_v11, %v3930_v37 }
 0x50b   : > { %8697 = vmatmul.mubr.msk.f32.vlgmr.msra.gmra.mrb[18].mxu1 %vm1747_vm2, %v1758_v51  ;;  %v3604_v4 = vsel %vm1747_vm2, %v10707_v2, 0.0 }
 0x50c   : > { %8705 = vmatpush3.msra.mxu1 %v10640_v27  ;;  %3440 = vadd.xlane.f32.xlu0 %v3439_v60  ;;  %v4095_v27 = vpop.xlane.xlu1 %4094  ;;  %v3932_v46 = vmul.f32 1.442695, %v3931_v19 }
 0x50d   : > { %8706 = vmatprep.mubr.msk.f32.mxu1 %vm9894_vm1, %v9892_v7  ;;  %8714 = vmatprep.subr.mxu1 %v9892_v7  ;;  %v4260_v15 = vpop.xlane.xlu0 %4259  ;;  %v4096_v40 = vsub.f32 %v10580_v14, %v4095_v27 }
 0x50e   : > { %v4261_v0 = vsub.f32 %v10582_v18, %v4260_v15  ;;  %9752 = vpow2.f32 %v3932_v46 }
 0x50f   : > { %v4097_v3 = vmul.f32 1.442695, %v4096_v40 }
 0x510   : > { %3605 = vadd.xlane.f32.xlu0 %v3604_v4  ;;  %v4458_v21 = vpop.xlane.xlu1 %4457  ;;  %v4262_v47 = vmul.f32 1.442695, %v4261_v0 }
 0x511   : > { %v4620_v36 = vpop.xlane.xlu0 %4619  ;;  %v4459_v48 = vsub.f32 %v10584_v22, %v4458_v21  ;;  %9754 = vpow2.f32 %v4097_v3 }
 0x512   : > { %v4621_v44 = vsub.f32 %v10586_v25, %v4620_v36  ;;  %9756 = vpow2.f32 %v4262_v47  ;;  %v10730_v25 = vpop.eup %9750 }
 0x513   : > { %v4460_v14 = vmul.f32 1.442695, %v4459_v48  ;;  %v3769_v36 = vsel %vm1747_vm2, %v10730_v25, 0.0 }
 0x514   : > { %v4786_v9 = vpop.xlane.xlu1 %4785  ;;  %v4622_v51 = vmul.f32 1.442695, %v4621_v44 }
 0x515   : > { %v4951_v26 = vpop.xlane.xlu0 %4950  ;;  %v4787_v4 = vsub.f32 %v10590_v28, %v4786_v9 }
 0x516   : > { %v4952_v11 = vsub.f32 %v10596_v56, %v4951_v26  ;;  %9758 = vpow2.f32 %v4622_v51 }
 0x517   : > { %9760 = vpow2.f32 %v4460_v14  ;;  %v4788_v15 = vmul.f32 1.442695, %v4787_v4 }
 0x518   : > { %v4953_v18 = vmul.f32 1.442695, %v4952_v11  ;;  %v5116_v12 = vpop.xlane.xlu1 %5115  ;;  %v10733_v33 = vpop.eup %9752 }
 0x519   : > { %4630 = vrot.lane.b32.xlu1 %v10308_v38, %s9896_s10  ;;  %v5281_v60 = vpop.xlane.xlu0 %5280  ;;  %v5117_v22 = vsub.f32 %v10604_v39, %v5116_v12  ;;  %v3934_v40 = vsel %vm1747_vm2, %v10733_v33, 0.0 }
 0x51a   : > { %v5282_v37 = vsub.f32 %v10610_v45, %v5281_v60  ;;  %9762 = vpow2.f32 %v4953_v18 }
 0x51b   : > { %v10737_v28 = vpop.eup %9754  ;;  %9764 = vpow2.f32 %v4788_v15  ;;  %v5118_v45 = vmul.f32 1.442695, %v5117_v22 }
 0x51c   : > { %v5283_v27 = vmul.f32 1.442695, %v5282_v37  ;;  %v10740_v50 = vpop.eup %9756  ;;  %v4099_v39 = vsel %vm1747_vm2, %v10737_v28, 0.0 }
 0x51d   : > { %4795 = vrot.lane.b32.xlu1 %v10308_v38, %s9895_s7  ;;  %v5446_v56 = vpop.xlane.xlu0 %5445 }
 0x51e   : > { %9766 = vpow2.f32 %v5283_v27  ;;  %v5447_v19 = vsub.f32 %v10616_v57, %v5446_v56  ;;  %v4264_v57 = vsel %vm1747_vm2, %v10740_v50, 0.0 }
 0x51f   : > { %9768 = vpow2.f32 %v5118_v45 }
 0x520   : > { %v10746_v21 = vpop.eup %9758  ;;  %v5448_v46 = vmul.f32 1.442695, %v5447_v19 }
 0x521   : > { %v10748_v0 = vpop.eup %9760  ;;  %v4624_v26 = vsel %vm1747_vm2, %v10746_v21, 0.0  ;;  %v5611_v11 = vpop.xlane.xlu0 %5610 }
 0x522   : > { %9770 = vpow2.f32 %v5448_v46  ;;  %v4462_v9 = vsel %vm1747_vm2, %v10748_v0, 0.0 }
 0x524   : > { %v10754_v3 = vpop.eup %9762 }
 0x525   : > { %v10756_v44 = vpop.eup %9764  ;;  %v4955_v48 = vsel %vm1747_vm2, %v10754_v3, 0.0 }
 0x526   : > { %4269 = vrot.lane.b32.xlu0 %v10299_v32, %s11453_s22  ;;  %v4790_v4 = vsel %vm1747_vm2, %v10756_v44, 0.0 }
 0x528   : > { %v10762_v51 = vpop.eup %9766 }
 0x529   : > { %v5285_v14 = vsel %vm1747_vm2, %v10762_v51, 0.0  ;;  %v10768_v18 = vpop.eup %9768 }
 0x52a   : > { %v5120_v12 = vsel %vm1747_vm2, %v10768_v18, 0.0 }
 0x52c   : > { %v10772_v15 = vpop.eup %9770 }
 0x541   : > { %3770 = vadd.xlane.f32.xlu1 %v3769_v36  ;;  %v5450_v36 = vsel %vm1747_vm2, %v10772_v15, 0.0 }
 0x545   : > { %4100 = vadd.xlane.f32.xlu1 %v4099_v39  ;;  %3935 = vadd.xlane.f32.xlu0 %v3934_v40 }
 0x549   : > { %4625 = vadd.xlane.f32.xlu1 %v4624_v26  ;;  %4265 = vadd.xlane.f32.xlu0 %v4264_v57 }
 0x54c   : > { %v1918_v47 = vpop.xlane.xlu1 %1917 }
 0x54d   : > { %9772 = vrcp.f32 %v1918_v47  ;;  %4956 = vadd.xlane.f32.xlu1 %v4955_v48  ;;  %4463 = vadd.xlane.f32.xlu0 %v4462_v9 }
 0x550   : > { %v2084_v60 = vpop.xlane.xlu1 %2083 }
 0x551   : > { %9774 = vrcp.f32 %v2084_v60  ;;  %5286 = vadd.xlane.f32.xlu1 %v5285_v14  ;;  %4791 = vadd.xlane.f32.xlu0 %v4790_v4 }
 0x554   : > { %v2249_v37 = vpop.xlane.xlu0 %2248 }
 0x555   : > { %9776 = vrcp.f32 %v2249_v37  ;;  %5121 = vadd.xlane.f32.xlu0 %v5120_v12 }
 0x557   : > { %v9773_v22 = vpop.eup %9772 }
 0x558   : > { %v1920_v27 = vmul.f32 %v9773_v22, %v10654_v6  ;;  %v2414_v56 = vpop.xlane.xlu1 %2413 }
 0x559   : > { %9778 = vrcp.f32 %v2414_v56  ;;  %5451 = vadd.xlane.f32.xlu0 %v5450_v36 }
 0x55a   : > { %8707 = vmatmul.mubr.msk.f32.vlgmr.msra.gmra.mrb[20].mxu1 %vm1747_vm2, %v1920_v27 }
 0x55b   : > { %v9775_v45 = vpop.eup %9774  ;;  %8715 = vmatpush3.msra.mxu1 %v10548_v49  ;;  %8716 = vmatprep.mubr.msk.f32.mxu1 %vm9894_vm1, %v9892_v7 }
 0x55c   : > { %v2086_v19 = vmul.f32 %v9775_v45, %v10659_v17  ;;  %v2579_v39 = vpop.xlane.xlu0 %2578  ;;  %8724 = vmatprep.subr.mxu1 %v9892_v7 }
 0x55d   : > { %9780 = vrcp.f32 %v2579_v39 }
 0x55e   : > { %8717 = vmatmul.mubr.msk.f32.vlgmr.msra.gmra.mrb[22].mxu1 %vm1747_vm2, %v2086_v19 }
 0x55f   : > { %v9777_v6 = vpop.eup %9776  ;;  %8725 = vmatpush3.msra.mxu1 %v10554_v59  ;;  %8726 = vmatprep.mubr.msk.f32.mxu1 %vm9894_vm1, %v9892_v7 }
 0x560   : > { %v2251_v40 = vmul.f32 %v9777_v6, %v10663_v43  ;;  %8734 = vmatprep.subr.mxu1 %v9892_v7 }
 0x562   : > { %5125 = vrot.lane.b32.xlu1 %v10308_v38, %s9898_s15  ;;  %8727 = vmatmul.mubr.msk.f32.vlgmr.msra.gmra.mrb[24].mxu1 %vm1747_vm2, %v2251_v40 }
 0x563   : > { %v9779_v49 = vpop.eup %9778  ;;  %8735 = vmatpush3.msra.mxu1 %v10642_v29  ;;  %8736 = vmatprep.mubr.msk.f32.mxu1 %vm9894_vm1, %v9892_v7 }
 0x564   : > { %v2416_v59 = vmul.f32 %v9779_v49, %v10667_v23  ;;  %8744 = vmatprep.subr.mxu1 %v9892_v7 }
 0x566   : > { %5290 = vrot.lane.b32.xlu1 %v10308_v38, %s9899_s16  ;;  %8737 = vmatmul.mubr.msk.f32.vlgmr.msra.gmra.mrb[26].mxu1 %vm1747_vm2, %v2416_v59 }
 0x567   : > { %v9781_v17 = vpop.eup %9780  ;;  %8745 = vmatpush3.msra.mxu1 %v10560_v61  ;;  %8746 = vmatprep.mubr.msk.f32.mxu1 %vm9894_vm1, %v9892_v7  ;;  %v5612_v61 = vsub.f32 %v10624_v10, %v5611_v11 }
 0x568   : > { %v2581_v29 = vmul.f32 %v9781_v17, %v10671_v24  ;;  %8754 = vmatprep.subr.mxu1 %v9892_v7 }
 0x569   : > { %v5613_v43 = vmul.f32 1.442695, %v5612_v61 }
 0x56a   : > { %5455 = vrot.lane.b32.xlu1 %v10308_v38, %s11455_s18  ;;  %8747 = vmatmul.mubr.msk.f32.vlgmr.msra.gmra.mrb[28].mxu1 %vm1747_vm2, %v2581_v29 }
 0x56b   : > { %8755 = vmatpush3.msra.mxu1 %v10566_v5  ;;  %8756 = vmatprep.mubr.msk.f32.mxu1 %vm9894_vm1, %v9892_v7  ;;  %9782 = vpow2.f32 %v5613_v43 }
 0x56c   : > { %8764 = vmatprep.subr.mxu1 %v9892_v7 }
 0x56f   : > { %4960 = vrot.lane.b32.xlu0 %v10308_v38, %s9897_s11 }
 0x575   : > { %v10815_v23 = vpop.eup %9782 }
 0x576   : > { %v5615_v46 = vsel %vm1747_vm2, %v10815_v23, 0.0 }
 0x58d   : > { %v2744_v24 = vpop.xlane.xlu1 %2743 }
 0x58e   : > { %9784 = vrcp.f32 %v2744_v24  ;;  %5616 = vadd.xlane.f32.xlu1 %v5615_v46 }
 0x591   : > { %v2909_v5 = vpop.xlane.xlu0 %2908 }
 0x592   : > { %9786 = vrcp.f32 %v2909_v5 }
 0x595   : > { %v3113_v26 = vpop.xlane.xlu0 %3112  ;;  %v3275_v57 = vpop.xlane.xlu1 %3274 }
 0x596   : > { %9788 = vrcp.f32 %v3113_v26 }
 0x597   : > { %9790 = vrcp.f32 %v3275_v57 }
 0x598   : > { %v9785_v47 = vpop.eup %9784 }
 0x599   : > { %v2746_v48 = vmul.f32 %v9785_v47, %v10685_v53  ;;  %v3441_v10 = vpop.xlane.xlu0 %3440 }
 0x59a   : > { %9792 = vrcp.f32 %v3441_v10 }
 0x59b   : > { %8757 = vmatmul.mubr.msk.f32.vlgmr.msra.gmra.mrb[30].mxu1 %vm1747_vm2, %v2746_v48 }
 0x59c   : > { %v9787_v9 = vpop.eup %9786  ;;  %8765 = vmatpush3.msra.mxu1 %v10644_v30  ;;  %8766 = vmatprep.mubr.msk.f32.mxu1 %vm9894_vm1, %v9892_v7 }
 0x59d   : > { %v2911_v11 = vmul.f32 %v9787_v9, %v10689_v1  ;;  %8774 = vmatprep.subr.mxu1 %v9892_v7  ;;  %v3606_v60 = vpop.xlane.xlu0 %3605 }
 0x59e   : > { %9794 = vrcp.f32 %v3606_v60 }
 0x59f   : > { %5620 = vrot.lane.b32.xlu1 %v10308_v38, %s11453_s22  ;;  %8767 = vmatmul.mubr.msk.f32.vlgmr.msra.gmra.mrb[32].mxu1 %vm1747_vm2, %v2911_v11 }
 0x5a0   : > { %8775 = vmatpush3.msra.mxu1 %v10299_v32  ;;  %8776 = vmatprep.mubr.msk.f32.mxu1 %vm9894_vm1, %v9892_v7  ;;  %v9789_v30 = vpop.eup %9788 }
 0x5a1   : > { %8784 = vmatprep.subr.mxu1 %v9892_v7  ;;  %v3115_v53 = vmul.f32 %v9789_v30, %v10693_v41  ;;  %v9791_v1 = vpop.eup %9790  ;;  %v4270_v4 = vpop.permute.xlu0 %4269 }
 0x5a2   : > { %v3277_v14 = vmul.f32 %v9791_v1, %v10695_v42 }
 0x5a3   : > { %8777 = vmatmul.mubr.msk.f32.vlgmr.msra.gmra.mrb[34].mxu1 %vm1747_vm2, %v3115_v53 }
 0x5a4   : > { %8785 = vmatpush3.msra.mxu1 %v10572_v8  ;;  %8786 = vmatprep.mubr.msk.f32.mxu1 %vm9894_vm1, %v9892_v7  ;;  %v9793_v32 = vpop.eup %9792 }
 0x5a5   : > { %8794 = vmatprep.subr.mxu1 %v9892_v7  ;;  %v3443_v41 = vmul.f32 %v9793_v32, %v10697_v62 }
 0x5a7   : > { %8787 = vmatmul.mubr.msk.f32.vlgmr.msra.gmra.mrb[36].mxu1 %vm1747_vm2, %v3277_v14 }
 0x5a8   : > { %8795 = vmatpush3.msra.mxu1 %v10646_v54  ;;  %8796 = vmatprep.mubr.msk.f32.mxu1 %vm9894_vm1, %v9892_v7  ;;  %v9795_v8 = vpop.eup %9794  ;;  %v4631_v54 = vpop.permute.xlu1 %4630 }
 0x5a9   : > { %8804 = vmatprep.subr.mxu1 %v9892_v7  ;;  %v3608_v42 = vmul.f32 %v9795_v8, %v10707_v2 }
 0x5ab   : > { %8797 = vmatmul.mubr.msk.f32.vlgmr.msra.gmra.mrb[38].mxu1 %vm1747_vm2, %v3443_v41 }
 0x5ac   : > { %8805 = vmatpush3.msra.mxu1 %v10578_v13  ;;  %8806 = vmatprep.mubr.msk.f32.mxu1 %vm9894_vm1, %v9892_v7  ;;  %v4796_v62 = vpop.permute.xlu1 %4795 }
 0x5ad   : > { %8814 = vmatprep.subr.mxu1 %v9892_v7 }
 0x5af   : > { %8807 = vmatmul.mubr.msk.f32.vlgmr.msra.gmra.mrb[40].mxu1 %vm1747_vm2, %v3608_v42 }
 0x5b0   : > { %8815 = vmatpush3.msra.mxu1 %v10648_v31  ;;  %8816 = vmatprep.mubr.msk.f32.mxu1 %vm9894_vm1, %v9892_v7 }
 0x5b1   : > { %8824 = vmatprep.subr.mxu1 %v9892_v7 }
 0x5ce   : > { %v3771_v13 = vpop.xlane.xlu1 %3770 }
 0x5cf   : > { %9796 = vrcp.f32 %v3771_v13 }
 0x5d2   : > { %v3936_v37 = vpop.xlane.xlu0 %3935  ;;  %v4101_v12 = vpop.xlane.xlu1 %4100 }
 0x5d3   : > { %9798 = vrcp.f32 %v3936_v37 }
 0x5d4   : > { %9800 = vrcp.f32 %v4101_v12 }
 0x5d6   : > { %v4266_v2 = vpop.xlane.xlu0 %4265  ;;  %v4626_v19 = vpop.xlane.xlu1 %4625 }
 0x5d7   : > { %9802 = vrcp.f32 %v4266_v2 }
 0x5d9   : > { %v9797_v22 = vpop.eup %9796 }
 0x5da   : > { %v3773_v27 = vmul.f32 %v9797_v22, %v10730_v25  ;;  %v4464_v31 = vpop.xlane.xlu0 %4463  ;;  %v4957_v49 = vpop.xlane.xlu1 %4956 }
 0x5db   : > { %9804 = vrcp.f32 %v4464_v31  ;;  %v5732_v31 = vld [vmem:[%s9950_s8 + $0x8] sm:$0xff] }
 0x5dc   : > { %8817 = vmatmul.mubr.msk.f32.vlgmr.msra.gmra.mrb[42].mxu1 %vm1747_vm2, %v3773_v27  ;;  %9806 = vrcp.f32 %v4626_v19  ;;  %v5731_v27 = vld [vmem:[%s9950_s8] sm:$0xff]  ;;  %v5734_v19 = vld [vmem:[%s9950_s8 + $0x18] sm:$0xff] }
 0x5dd   : > { %8825 = vmatpush3.msra.mxu1 %v10677_v35  ;;  %8826 = vmatprep.mubr.msk.f32.mxu1 %vm9894_vm1, %v9892_v7  ;;  %v9799_v56 = vpop.eup %9798 }
 0x5de   : > { %v10862_v36 = vpop.f32.mrb[18].mxu1  ;;  %8834 = vmatprep.subr.mxu1 %v9892_v7  ;;  %v3938_v45 = vmul.f32 %v9799_v56, %v10733_v33  ;;  %v9801_v25 = vpop.eup %9800  ;;  %v5733_v56 = vld [vmem:[%s9950_s8 + $0x10] sm:$0xff] }
 0x5df   : > { %v8698_v39 = vpop.f32.mrb[19].mxu1  ;;  %v4103_v35 = vmul.f32 %v9801_v25, %v10737_v28  ;;  %v4792_v6 = vpop.xlane.xlu0 %4791 }
 0x5e0   : > { %8827 = vmatmul.mubr.msk.f32.vlgmr.msra.gmra.mrb[44].mxu1 %vm1747_vm2, %v3938_v45  ;;  %9808 = vrcp.f32 %v4792_v6  ;;  %v5287_v29 = vpop.xlane.xlu1 %5286  ;;  %v9281_v45 = vpack.c.bf16 %v5732_v31, %v5731_v27  ;;  %v9284_v6 = vpack.c.bf16 %v5734_v19, %v5733_v56  ;;  %v5850_v31 = vld [vmem:[%s9970_s30 + $0x8] sm:$0xff]  ;;  %v5852_v56 = vld [vmem:[%s9970_s30 + $0x18] sm:$0xff] }
 0x5e1   : > { %8835 = vmatpush3.msra.mxu1 %v10675_v34  ;;  %8836 = vmatprep.mubr.msk.f32.mxu1 %vm9894_vm1, %v9892_v7  ;;  %v9803_v40 = vpop.eup %9802  ;;  %9810 = vrcp.f32 %v4957_v49  ;;  %v9304_v19 = vpack.c.bf16 %v5852_v56, %v5850_v31 }
 0x5e2   : > { %8844 = vmatprep.subr.mxu1 %v9892_v7  ;;  %v4268_v33 = vmul.f32 %v9803_v40, %v10740_v50  ;;  %9282 = vmatpush3.bf16.msra.mxu0 %v9281_v45  ;;  %v5735_v40 = vld [vmem:[%s9950_s8 + $0x20] sm:$0xff] }
 0x5e3   : > { %v5122_v59 = vpop.xlane.xlu0 %5121  ;;  %9283 = vmatprep.subr.bf16.mxu0 %v9893_v52  ;;  %v5849_v45 = vld [vmem:[%s9970_s30] sm:$0xff] }
 0x5e4   : > { %8837 = vmatmul.mubr.msk.f32.vlgmr.msra.gmra.mrb[46].mxu1 %vm1747_vm2, %v4103_v35  ;;  %9812 = vrcp.f32 %v5122_v59  ;;  %v5126_v24 = vpop.permute.xlu1 %5125 }
 0x5e5   : > { %8845 = vmatpush3.msra.mxu1 %v4270_v4  ;;  %8846 = vmatprep.mubr.msk.f32.mxu1 %vm9894_vm1, %v9892_v7  ;;  %v9805_v34 = vpop.eup %9804  ;;  %9814 = vrcp.f32 %v5287_v29 }
 0x5e6   : > { %8854 = vmatprep.subr.mxu1 %v9892_v7  ;;  %v4466_v28 = vmul.f32 %v9805_v34, %v10748_v0  ;;  %v9807_v17 = vpop.eup %9806  ;;  %9285 = vmatpush3.bf16.msra.mxu0 %v9284_v6 }
 0x5e7   : > { %v4628_v50 = vmul.f32 %v9807_v17, %v10746_v21  ;;  %v5452_v61 = vpop.xlane.xlu0 %5451  ;;  %9286 = vmatprep.subr.bf16.mxu0 %v9893_v52  ;;  %v5737_v17 = vld [vmem:[%s9950_s8 + $0x30] sm:$0xff] }
 0x5e8   : > { %8847 = vmatmul.mubr.msk.f32.vlgmr.msra.gmra.mrb[48].mxu1 %vm1747_vm2, %v4268_v33  ;;  %9816 = vrcp.f32 %v5452_v61  ;;  %v5291_v26 = vpop.permute.xlu1 %5290  ;;  %v5736_v33 = vld [vmem:[%s9950_s8 + $0x28] sm:$0xff]  ;;  %v5739_v61 = vld [vmem:[%s9950_s8 + $0x40] sm:$0xff] }
 0x5e9   : > { %8855 = vmatpush3.msra.mxu1 %v10308_v38  ;;  %8856 = vmatprep.mubr.msk.f32.mxu1 %vm9894_vm1, %v9892_v7 }
 0x5ea   : > { %8864 = vmatprep.subr.mxu1 %v9892_v7  ;;  %v9809_v38 = vpop.eup %9808 }
 0x5eb   : > { %v4794_v0 = vmul.f32 %v9809_v38, %v10756_v44  ;;  %v9811_v43 = vpop.eup %9810  ;;  %v4961_v46 = vpop.permute.xlu0 %4960  ;;  %v5740_v38 = vld [vmem:[%s9950_s8 + $0x48] sm:$0xff] }
 0x5ec   : > { %8857 = vmatmul.mubr.msk.f32.vlgmr.msra.gmra.mrb[50].mxu1 %vm1747_vm2, %v4466_v28  ;;  %v4959_v21 = vmul.f32 %v9811_v43, %v10754_v3  ;;  %v5456_v48 = vpop.permute.xlu1 %5455  ;;  %v9287_v28 = vpack.c.bf16 %v5736_v33, %v5735_v40  ;;  %v5741_v43 = vld [vmem:[%s9950_s8 + $0x50] sm:$0xff]  ;;  %v5853_v33 = vld [vmem:[%s9970_s30 + $0x20] sm:$0xff] }
 0x5ed   : > { %8865 = vmatpush3.msra.mxu1 %v4631_v54  ;;  %8866 = vmatprep.mubr.msk.f32.mxu1 %vm9894_vm1, %v9892_v7 }
 0x5ee   : > { %8874 = vmatprep.subr.mxu1 %v9892_v7  ;;  %v9813_v5 = vpop.eup %9812  ;;  %9288 = vmatpush3.bf16.msra.mxu0 %v9287_v28 }
 0x5ef   : > { %v5124_v44 = vmul.f32 %v9813_v5, %v10768_v18  ;;  %v9815_v57 = vpop.eup %9814  ;;  %9289 = vmatprep.subr.bf16.mxu0 %v9893_v52  ;;  %v5744_v5 = vld [vmem:[%s9950_s8 + $0x68] sm:$0xff] }
 0x5f0   : > { %8867 = vmatmul.mubr.msk.f32.vlgmr.msra.gmra.mrb[52].mxu1 %vm1747_vm2, %v4628_v50  ;;  %v5289_v3 = vmul.f32 %v9815_v57, %v10762_v51  ;;  %v5738_v50 = vld [vmem:[%s9950_s8 + $0x38] sm:$0xff] }
 0x5f1   : > { %8875 = vmatpush3.msra.mxu1 %v4796_v62  ;;  %8876 = vmatprep.mubr.msk.f32.mxu1 %vm9894_vm1, %v9892_v7  ;;  %v9290_v29 = vpack.c.bf16 %v5738_v50, %v5737_v17  ;;  %v5857_v50 = vld [vmem:[%s9970_s30 + $0x40] sm:$0xff] }
 0x5f2   : > { %8884 = vmatprep.subr.mxu1 %v9892_v7  ;;  %v9817_v47 = vpop.eup %9816 }
 0x5f3   : > { %v5454_v18 = vmul.f32 %v9817_v47, %v10772_v15  ;;  %9291 = vmatpush3.bf16.msra.mxu0 %v9290_v29  ;;  %v5745_v47 = vld [vmem:[%s9950_s8 + $0x70] sm:$0xff] }
 0x5f4   : > { %8877 = vmatmul.mubr.msk.f32.vlgmr.msra.gmra.mrb[54].mxu1 %vm1747_vm2, %v4794_v0  ;;  %9292 = vmatprep.subr.bf16.mxu0 %v9893_v52  ;;  %v9293_v0 = vpack.c.bf16 %v5740_v38, %v5739_v61  ;;  %v5859_v29 = vld [vmem:[%s9970_s30 + $0x50] sm:$0xff]  ;;  %v5862_v61 = vld [vmem:[%s9970_s30 + $0x68] sm:$0xff]  ;;  %v5864_v38 = vld [vmem:[%s9970_s30 + $0x78] sm:$0xff] }
 0x5f5   : > { %8885 = vmatpush3.msra.mxu1 %v4961_v46  ;;  %8886 = vmatprep.mubr.msk.f32.mxu1 %vm9894_vm1, %v9892_v7 }
 0x5f6   : > { %8894 = vmatprep.subr.mxu1 %v9892_v7 }
 0x5f7   : > { %9294 = vmatpush3.bf16.msra.mxu0 %v9293_v0  ;;  %v9314_v0 = vpack.c.bf16 %v5859_v29, %v5857_v50 }
 0x5f8   : > { %8887 = vmatmul.mubr.msk.f32.vlgmr.msra.gmra.mrb[56].mxu1 %vm1747_vm2, %v4959_v21  ;;  %9295 = vmatprep.subr.bf16.mxu0 %v9893_v52  ;;  %v5743_v21 = vld [vmem:[%s9950_s8 + $0x60] sm:$0xff] }
 0x5f9   : > { %8895 = vmatpush3.msra.mxu1 %v5126_v24  ;;  %8896 = vmatprep.mubr.msk.f32.mxu1 %vm9894_vm1, %v9892_v7  ;;  %v5742_v24 = vld [vmem:[%s9950_s8 + $0x58] sm:$0xff] }
 0x5fa   : > { %8904 = vmatprep.subr.mxu1 %v9892_v7  ;;  %v9296_v46 = vpack.c.bf16 %v5742_v24, %v5741_v43  ;;  %v9316_v43 = vpack.c.bf16 %v5864_v38, %v5862_v61  ;;  %v5861_v24 = vld [vmem:[%s9970_s30 + $0x60] sm:$0xff] }
 0x5fc   : > { %8897 = vmatmul.mubr.msk.f32.vlgmr.msra.gmra.mrb[58].mxu1 %vm1747_vm2, %v5124_v44  ;;  %9297 = vmatpush3.bf16.msra.mxu0 %v9296_v46  ;;  %v9299_v44 = vpack.c.bf16 %v5744_v5, %v5743_v21  ;;  %v5863_v46 = vld [vmem:[%s9970_s30 + $0x70] sm:$0xff]  ;;  %v5866_v21 = vld [vmem:[%s9970_s30 + $0x88] sm:$0xff]  ;;  %v5868_v5 = vld [vmem:[%s9970_s30 + $0x98] sm:$0xff] }
 0x5fd   : > { %8905 = vmatpush3.msra.mxu1 %v5291_v26  ;;  %8906 = vmatprep.mubr.msk.f32.mxu1 %vm9894_vm1, %v9892_v7 }
 0x5fe   : > { %8914 = vmatprep.subr.mxu1 %v9892_v7  ;;  %9298 = vmatprep.subr.bf16.mxu0 %v9893_v52 }
 0x600   : > { %8907 = vmatmul.mubr.msk.f32.vlgmr.msra.gmra.mrb[60].mxu1 %vm1747_vm2, %v5289_v3  ;;  %9300 = vmatpush3.bf16.msra.mxu0 %v9299_v44 }
 0x601   : > { %8915 = vmatpush3.msra.mxu1 %v5456_v48  ;;  %8916 = vmatprep.mubr.msk.f32.mxu1 %vm9894_vm1, %v9892_v7  ;;  %v5746_v48 = vld [vmem:[%s9950_s8 + $0x78] sm:$0xff] }
 0x602   : > { %8924 = vmatprep.subr.mxu1 %v9892_v7  ;;  %9301 = vmatprep.subr.bf16.mxu0 %v9893_v52 }
 0x604   : > { %8917 = vmatmul.mubr.msk.f32.vlgmr.msra.gmra.mrb[62].mxu1 %vm1747_vm2, %v5454_v18  ;;  %v9302_v18 = vpack.c.bf16 %v5746_v48, %v5745_v47  ;;  %v5865_v47 = vld [vmem:[%s9970_s30 + $0x80] sm:$0xff]  ;;  %v5867_v48 = vld [vmem:[%s9970_s30 + $0x90] sm:$0xff] }
 0x605   : > { %8926 = vmatprep.mubr.msk.f32.mxu1 %vm9894_vm1, %v9892_v7 }
 0x606   : > { %9303 = vmatpush3.bf16.msra.mxu0 %v9302_v18  ;;  %v5870_v18 = vld [vmem:[%s9970_s30 + $0xa8] sm:$0xff] }
 0x61b   : > { %v5617_v51 = vpop.xlane.xlu1 %5616 }
 0x61c   : > { %9818 = vrcp.f32 %v5617_v51 }
 0x61f   : > { %v5621_v10 = vpop.permute.xlu1 %5620 }
 0x620   : > { %8925 = vmatpush3.msra.mxu1 %v5621_v10 }
 0x621   : > { %9305 = vmatprep.subr.bf16.mxu1 %v9304_v19 }
 0x626   : > { %v9819_v9 = vpop.eup %9818 }
 0x627   : > { %v5619_v11 = vmul.f32 %v9819_v9, %v10815_v23 }
 0x629   : > { %8927 = vmatmul.mubr.msk.f32.vlgmr.msra.gmra.mrb[64].mxu1 %vm1747_vm2, %v5619_v11 }
 0x62a   : > { %5957 = vmatprep.mubr.f32.mxu1 %v9892_v7 }
 0x62d   : > { %v1994_v60 = vpop.f32.mrb[20].mxu1 }
 0x62e   : > { %v8708_v15 = vpop.f32.mrb[21].mxu1 }
 0x631   : > { %v2159_v30 = vpop.f32.mrb[22].mxu1 }
 0x632   : > { %v8718_v53 = vpop.f32.mrb[23].mxu1 }
 0x635   : > { %v2324_v1 = vpop.f32.mrb[24].mxu1 }
 0x636   : > { %v8728_v14 = vpop.f32.mrb[25].mxu1 }
 0x639   : > { %v2489_v32 = vpop.f32.mrb[26].mxu1 }
 0x63a   : > { %v8738_v41 = vpop.f32.mrb[27].mxu1 }
 0x63d   : > { %v10919_v8 = vpop.f32.mrb[28].mxu1 }
 0x63e   : > { %v8748_v42 = vpop.f32.mrb[29].mxu1 }
 0x66e   : > { %v10921_v23 = vpop.f32.mrb[30].mxu1 }
 0x66f   : > { %v8758_v54 = vpop.f32.mrb[31].mxu1 }
 0x672   : > { %v10923_v62 = vpop.f32.mrb[32].mxu1 }
 0x673   : > { %v8768_v4 = vpop.f32.mrb[33].mxu1 }
 0x676   : > { %v10925_v13 = vpop.f32.mrb[34].mxu1 }
 0x677   : > { %v8778_v37 = vpop.f32.mrb[35].mxu1 }
 0x67a   : > { %v3351_v12 = vpop.f32.mrb[36].mxu1 }
 0x67b   : > { %v9619_v2 = vpack.i.bf16 %v3351_v12, %v1994_v60  ;;  %v8788_v22 = vpop.f32.mrb[37].mxu1 }
 0x67d   : > { %9620 = vrot.lane.b32.xlu1 %v9619_v2, %s11453_s22 }
 0x67e   : > { %v3516_v39 = vpop.f32.mrb[38].mxu1 }
 0x67f   : > { %v9624_v25 = vpack.i.bf16 %v3516_v39, %v2159_v30  ;;  %v8798_v35 = vpop.f32.mrb[39].mxu1  ;;  %v5851_v39 = vld [vmem:[%s9970_s30 + $0x10] sm:$0xff] }
 0x680   : > { %v5856_v35 = vld [vmem:[%s9970_s30 + $0x38] sm:$0xff]  ;;  %v9306_v6 = vpack.c.bf16 %v5851_v39, %v5849_v45 }
 0x681   : > { %9625 = vrot.lane.b32.xlu0 %v9624_v25, %s11455_s18  ;;  %v5854_v25 = vld [vmem:[%s9970_s30 + $0x28] sm:$0xff] }
 0x682   : > { %v3681_v49 = vpop.f32.mrb[40].mxu1  ;;  %v9308_v40 = vpack.c.bf16 %v5856_v35, %v5854_v25  ;;  %9307 = vmatpush1.bf16.msra.mxu1 %v9306_v6 }
 0x683   : > { %v9629_v34 = vpack.i.bf16 %v3681_v49, %v2324_v1  ;;  %v8808_v59 = vpop.f32.mrb[41].mxu1  ;;  %v5855_v49 = vld [vmem:[%s9970_s30 + $0x30] sm:$0xff] }
 0x684   : > { %v5860_v59 = vld [vmem:[%s9970_s30 + $0x58] sm:$0xff]  ;;  %v9310_v28 = vpack.c.bf16 %v5855_v49, %v5853_v33  ;;  %9309 = vmatprep.subr.bf16.mxu1 %v9308_v40 }
 0x685   : > { %9630 = vrot.lane.b32.xlu1 %v9629_v34, %s9899_s16  ;;  %v5858_v34 = vld [vmem:[%s9970_s30 + $0x48] sm:$0xff] }
 0x686   : > { %v9312_v17 = vpack.c.bf16 %v5860_v59, %v5858_v34  ;;  %9311 = vmatpush1.bf16.msra.mxu1 %v9310_v28 }
 0x688   : > { %9313 = vmatprep.subr.bf16.mxu1 %v9312_v17 }
 0x68a   : > { %9315 = vmatpush1.bf16.msra.mxu1 %v9314_v0 }
 0x68b   : > { %9317 = vmatprep.subr.bf16.mxu1 %v9316_v43 }
 0x6af   : > { %v3846_v26 = vpop.f32.mrb[42].mxu1 }
 0x6b0   : > { %v9634_v57 = vpack.i.bf16 %v3846_v26, %v2489_v32  ;;  %v8818_v3 = vpop.f32.mrb[43].mxu1 }
 0x6b1   : > { %v9320_v3 = vpack.c.bf16 %v5868_v5, %v5866_v21 }
 0x6b2   : > { %9635 = vrot.lane.b32.xlu0 %v9634_v57, %s9898_s15  ;;  %v9318_v57 = vpack.c.bf16 %v5863_v46, %v5861_v24 }
 0x6b3   : > { %v4011_v51 = vpop.f32.mrb[44].mxu1 }
 0x6b4   : > { %v9639_v10 = vpack.i.bf16 %v4011_v51, %v10919_v8  ;;  %v8828_v9 = vpop.f32.mrb[45].mxu1  ;;  %v5872_v51 = vld [vmem:[%s9970_s30 + $0xb8] sm:$0xff]  ;;  %9319 = vmatpush1.bf16.msra.mxu1 %v9318_v57 }
 0x6b5   : > { %9321 = vmatprep.subr.bf16.mxu1 %v9320_v3  ;;  %v9324_v9 = vpack.c.bf16 %v5872_v51, %v5870_v18  ;;  %v5876_v18 = vld [vmem:[%s9970_s30 + $0xd8] sm:$0xff] }
 0x6b6   : > { %9640 = vrot.lane.b32.xlu1 %v9639_v10, %s9897_s11  ;;  %v9322_v10 = vpack.c.bf16 %v5867_v48, %v5865_v47 }
 0x6b7   : > { %v4176_v11 = vpop.f32.mrb[46].mxu1 }
 0x6b8   : > { %v9644_v60 = vpack.i.bf16 %v4176_v11, %v10921_v23  ;;  %v8838_v15 = vpop.f32.mrb[47].mxu1  ;;  %v5869_v11 = vld [vmem:[%s9970_s30 + $0xa0] sm:$0xff]  ;;  %9323 = vmatpush1.bf16.msra.mxu1 %v9322_v10 }
 0x6b9   : > { %9325 = vmatprep.subr.bf16.mxu1 %v9324_v9  ;;  %v5873_v10 = vld [vmem:[%s9970_s30 + $0xc0] sm:$0xff]  ;;  %v5875_v9 = vld [vmem:[%s9970_s30 + $0xd0] sm:$0xff] }
 0x6ba   : > { %9645 = vrot.lane.b32.xlu0 %v9644_v60, %s9895_s7  ;;  %v5871_v60 = vld [vmem:[%s9970_s30 + $0xb0] sm:$0xff] }
 0x6bb   : > { %v4341_v30 = vpop.f32.mrb[48].mxu1  ;;  %v9326_v15 = vpack.c.bf16 %v5871_v60, %v5869_v11  ;;  %v9330_v11 = vpack.c.bf16 %v5875_v9, %v5873_v10  ;;  %v5878_v60 = vld [vmem:[%s9970_s30 + $0xe8] sm:$0xff] }
 0x6bc   : > { %v9649_v53 = vpack.i.bf16 %v4341_v30, %v10923_v62  ;;  %v8848_v1 = vpop.f32.mrb[49].mxu1 }
 0x6bd   : > { %9327 = vmatpush1.bf16.msra.mxu1 %v9326_v15  ;;  %v5880_v15 = vld [vmem:[%s9970_s30 + $0xf8] sm:$0xff] }
 0x6be   : > { %9650 = vrot.lane.b32.xlu1 %v9649_v53, %s9896_s10 }
 0x6bf   : > { %v10960_v14 = vpop.f32.mrb[50].mxu1 }
 0x6c0   : > { %v8858_v32 = vpop.f32.mrb[51].mxu1 }
 0x6c3   : > { %v4702_v41 = vpop.f32.mrb[52].mxu1 }
 0x6c4   : > { %5697 = vrot.lane.b32.xlu0 %v4702_v41, %s11453_s22  ;;  %v8868_v8 = vpop.f32.mrb[53].mxu1  ;;  %s11477_s22 = sld [smem:[#allocation5_spill]] }
 0x6c7   : > { %v4867_v42 = vpop.f32.mrb[54].mxu1 }
 0x6c8   : > { %5701 = vrot.lane.b32.xlu1 %v4867_v42, %s11455_s18  ;;  %v8878_v23 = vpop.f32.mrb[55].mxu1  ;;  %s11479_s18 = sld [smem:[#allocation7_spill]] }
 0x6cb   : > { %v5032_v54 = vpop.f32.mrb[56].mxu1 }
 0x6cc   : > { %5705 = vrot.lane.b32.xlu0 %v5032_v54, %s9899_s16  ;;  %v8888_v62 = vpop.f32.mrb[57].mxu1 }
 0x6cf   : > { %v5197_v4 = vpop.f32.mrb[58].mxu1 }
 0x6d0   : > { %5709 = vrot.lane.b32.xlu1 %v5197_v4, %s9898_s15  ;;  %v8898_v37 = vpop.f32.mrb[59].mxu1 }
 0x6d3   : > { %v5362_v12 = vpop.f32.mrb[60].mxu1 }
 0x6d4   : > { %5713 = vrot.lane.b32.xlu0 %v5362_v12, %s9897_s11  ;;  %v8908_v2 = vpop.f32.mrb[61].mxu1 }
 0x6d7   : > { %v5527_v22 = vpop.f32.mrb[62].mxu1 }
 0x6d8   : > { %5717 = vrot.lane.b32.xlu1 %v5527_v22, %s9895_s7  ;;  %v8918_v27 = vpop.f32.mrb[63].mxu1 }
 0x6ef   : > { %v9621_v30 = vpop.permute.xlu1 %9620 }
 0x6f0   : > { %v9622_v41 = vunpack.i.l.bf16 %v9621_v30  ;;  %v9623_v4 = vunpack.i.h.bf16 %v9621_v30  ;;  %v9332_v30 = vpack.c.bf16 %v5880_v15, %v5878_v60 }
 0x6f2   : > { %v3016_v37 = vsel %vm1018_vm0, %v10862_v36, %v9622_v41  ;;  %v4373_v25 = vsel %vm1018_vm0, %v10925_v13, %v9623_v4  ;;  %v5998_v41 = vld [vmem:[%s9980_s12 + $0x80] sm:$0xff]  ;;  %v6001_v4 = vld [vmem:[%s9980_s12 + $0x98] sm:$0xff] }
 0x6f3   : > { %v9626_v53 = vpop.permute.xlu0 %9625 }
 0x6f4   : > { %v9627_v8 = vunpack.i.l.bf16 %v9626_v53  ;;  %v9628_v2 = vunpack.i.h.bf16 %v9626_v53  ;;  %v5877_v53 = vld [vmem:[%s9970_s30 + $0xe0] sm:$0xff] }
 0x6f6   : > { %v3018_v22 = vsel %vm3017_vm3, %v3016_v37, %v9627_v8  ;;  %v4374_v40 = vsel %vm3017_vm3, %v4373_v25, %v9628_v2  ;;  %v5999_v8 = vld [vmem:[%s9980_s12 + $0x88] sm:$0xff]  ;;  %v5984_v2 = vld [vmem:[%s9980_s12 + $0x10] sm:$0xff] }
 0x6f7   : > { %v9631_v1 = vpop.permute.xlu1 %9630  ;;  %v6004_v25 = vld [vmem:[%s9980_s12 + $0xb0] sm:$0xff] }
 0x6f8   : > { %v9632_v23 = vunpack.i.l.bf16 %v9631_v1  ;;  %v9633_v31 = vunpack.i.h.bf16 %v9631_v1  ;;  %v5879_v1 = vld [vmem:[%s9970_s30 + $0xf0] sm:$0xff] }
 0x6fa   : > { %v3020_v56 = vsel %vm3019_vm4, %v3018_v22, %v9632_v23  ;;  %v4375_v34 = vsel %vm3019_vm4, %v4374_v40, %v9633_v31  ;;  %v9336_v23 = vpack.c.bf16 %v5999_v8, %v5998_v41  ;;  %v5985_v22 = vld [vmem:[%s9980_s12 + $0x18] sm:$0xff]  ;;  %v6003_v31 = vld [vmem:[%s9980_s12 + $0xa8] sm:$0xff]  ;;  %v5988_v40 = vld [vmem:[%s9980_s12 + $0x30] sm:$0xff] }
 0x6fb   : > { %v5839_v41 = vld [vmem:[%s9960_s19 + $0x10] sm:$0xff] }
 0x6fc   : > { %v5692_v44 = vpop.f32.mrb[64].mxu1  ;;  %9337 = vmatprep.subr.bf16.mxu0 %v9336_v23 }
 0x6fd   : > { %5721 = vrot.lane.b32.xlu0 %v5692_v44, %s9896_s10  ;;  %v8928_v26 = vpop.f32.mrb[65].mxu1 }
 0x724   : > { %v9636_v32 = vpop.permute.xlu0 %9635 }
 0x725   : > { %v9637_v54 = vunpack.i.l.bf16 %v9636_v32  ;;  %v9638_v45 = vunpack.i.h.bf16 %v9636_v32  ;;  %v9334_v32 = vpack.c.bf16 %v5879_v1, %v5877_v53 }
 0x727   : > { %v3022_v19 = vsel %vm3021_vm5, %v3020_v56, %v9637_v54  ;;  %v4376_v17 = vsel %vm3021_vm5, %v4375_v34, %v9638_v45  ;;  %v5983_v54 = vld [vmem:[%s9980_s12 + $0x8] sm:$0xff]  ;;  %v9342_v56 = vpack.c.bf16 %v5985_v22, %v5984_v2  ;;  %v5996_v22 = vld [vmem:[%s9980_s12 + $0x70] sm:$0xff] }
 0x728   : > { %v9641_v42 = vpop.permute.xlu1 %9640  ;;  %v6007_v34 = vld [vmem:[%s9980_s12 + $0xc8] sm:$0xff] }
 0x729   : > { %v9642_v12 = vunpack.i.l.bf16 %v9641_v42  ;;  %v9643_v36 = vunpack.i.h.bf16 %v9641_v42  ;;  %v5982_v42 = vld [vmem:[%s9980_s12] sm:$0xff] }
 0x72a   : > { %v9338_v37 = vpack.c.bf16 %v5983_v54, %v5982_v42  ;;  %v5845_v42 = vld [vmem:[%s9965_s24 + $0x10] sm:$0xff] }
 0x72b   : > { %v3024_v35 = vsel %vm3023_vm6, %v3022_v19, %v9642_v12  ;;  %v4377_v13 = vsel %vm3023_vm6, %v4376_v17, %v9643_v36  ;;  %v5986_v19 = vld [vmem:[%s9980_s12 + $0x20] sm:$0xff]  ;;  %v6005_v36 = vld [vmem:[%s9980_s12 + $0xb8] sm:$0xff] }
 0x72c   : > { %v9646_v62 = vpop.permute.xlu0 %9645  ;;  %v5990_v17 = vld [vmem:[%s9980_s12 + $0x40] sm:$0xff] }
 0x72d   : > { %v9647_v27 = vunpack.i.l.bf16 %v9646_v62  ;;  %v9648_v33 = vunpack.i.h.bf16 %v9646_v62  ;;  %v6000_v62 = vld [vmem:[%s9980_s12 + $0x90] sm:$0xff] }
 0x72e   : > { %v9340_v12 = vpack.c.bf16 %v6001_v4, %v6000_v62  ;;  %v5994_v62 = vld [vmem:[%s9980_s12 + $0x60] sm:$0xff]  ;;  %v5995_v4 = vld [vmem:[%s9980_s12 + $0x68] sm:$0xff] }
 0x72f   : > { %v3026_v49 = vsel %vm3025_vm7, %v3024_v35, %v9647_v27  ;;  %v4378_v50 = vsel %vm3025_vm7, %v4377_v13, %v9648_v33  ;;  %v6002_v27 = vld [vmem:[%s9980_s12 + $0xa0] sm:$0xff]  ;;  %v5989_v33 = vld [vmem:[%s9980_s12 + $0x38] sm:$0xff]  ;;  %v5991_v13 = vld [vmem:[%s9980_s12 + $0x48] sm:$0xff] }
 0x730   : > { %v9651_v39 = vpop.permute.xlu1 %9650  ;;  %v9344_v45 = vpack.c.bf16 %v6003_v31, %v6002_v27  ;;  %v5997_v27 = vld [vmem:[%s9980_s12 + $0x78] sm:$0xff] }
 0x731   : > { %v9652_v6 = vunpack.i.l.bf16 %v9651_v39  ;;  %v9653_v59 = vunpack.i.h.bf16 %v9651_v39  ;;  %v5987_v39 = vld [vmem:[%s9980_s12 + $0x28] sm:$0xff]  ;;  %v9366_v31 = vpack.c.bf16 %v5997_v27, %v5996_v22 }
 0x732   : > { %v9346_v35 = vpack.c.bf16 %v5987_v39, %v5986_v19  ;;  %v6210_v19 = vld [vmem:[%s11473_s26 + $0x8] sm:$0xff] }
 0x733   : > { %v3028_v28 = vsel %vm3027_vm8, %v3026_v49, %v9652_v6  ;;  %v4379_v29 = vsel %vm3027_vm8, %v4378_v50, %v9653_v59  ;;  %v9348_v6 = vpack.c.bf16 %v6005_v36, %v6004_v25  ;;  %v6006_v49 = vld [vmem:[%s9980_s12 + $0xc0] sm:$0xff]  ;;  %v9350_v59 = vpack.c.bf16 %v5989_v33, %v5988_v40  ;;  %v6008_v50 = vld [vmem:[%s9980_s12 + $0xd0] sm:$0xff]  ;;  %v6212_v25 = vld [vmem:[%s11473_s26 + $0x18] sm:$0xff] }
 0x734   : > { %8962 = vmatmul.mubr.f32.vlgmr.msra.gmra.mrb[66].mxu0 %v3028_v28  ;;  %v9352_v28 = vpack.c.bf16 %v6007_v34, %v6006_v49  ;;  %v6118_v36 = vld [vmem:[%s11472_s23 + $0x10] sm:$0xff]  ;;  %v6120_v33 = vld [vmem:[%s11472_s23 + $0x20] sm:$0xff]  ;;  %v6121_v49 = vld [vmem:[%s11472_s23 + $0x28] sm:$0xff] }
 0x735   : > { %8964 = vmatprep.mubr.msk.f32.mxu0 %vm9894_vm1, %v9892_v7  ;;  %9339 = vmatpush3.bf16.msra.mxu0 %v9338_v37  ;;  %v9362_v37 = vpack.c.bf16 %v5995_v4, %v5994_v62  ;;  %v9375_v34 = vpack.c.bf16 %v6121_v49, %v6120_v33  ;;  %v6224_v62 = vld [vmem:[%s11473_s26 + $0x78] sm:$0xff]  ;;  %v6225_v33 = vld [vmem:[%s11473_s26 + $0x80] sm:$0xff]  ;;  %v6227_v49 = vld [vmem:[%s11473_s26 + $0x90] sm:$0xff] }
 0x736   : > { %v5698_v61 = vpop.permute.xlu0 %5697  ;;  %9341 = vmatprep.subr.bf16.mxu0 %v9340_v12  ;;  %v6013_v12 = vld [vmem:[%s9980_s12 + $0xf8] sm:$0xff] }
 0x737   : > { %v5724_v24 = vsel %vm1018_vm0, %v10960_v14, %v5698_v61  ;;  %v5874_v14 = vld [vmem:[%s9970_s30 + $0xc8] sm:$0xff]  ;;  %v9354_v61 = vpack.c.bf16 %v5991_v13, %v5990_v17  ;;  %v6124_v13 = vld [vmem:[%s11472_s23 + $0x40] sm:$0xff] }
 0x738   : > { %8965 = vmatmul.mubr.f32.gmra.mrb[68].mxu0 %v4379_v29  ;;  %v9328_v51 = vpack.c.bf16 %v5876_v18, %v5874_v14  ;;  %v6009_v29 = vld [vmem:[%s9980_s12 + $0xd8] sm:$0xff]  ;;  %v5843_v14 = vld [vmem:[%s9965_s24] sm:$0xff] }
 0x739   : > { %8967 = vmatprep.mubr.msk.f32.mxu0 %vm9894_vm1, %v9892_v7  ;;  %9343 = vmatpush3.bf16.msra.mxu0 %v9342_v56  ;;  %v6116_v56 = vld [vmem:[%s11472_s23] sm:$0xff] }
 0x73a   : > { %v5702_v38 = vpop.permute.xlu1 %5701  ;;  %9329 = vmatprep.subr.bf16.mxu1 %v9328_v51  ;;  %9345 = vmatprep.subr.bf16.mxu0 %v9344_v45  ;;  %v6117_v45 = vld [vmem:[%s11472_s23 + $0x8] sm:$0xff] }
 0x73b   : > { %v5725_v46 = vsel %vm3017_vm3, %v5724_v24, %v5702_v38  ;;  %9331 = vmatpush1.bf16.msra.mxu1 %v9330_v11  ;;  %v9356_v38 = vpack.c.bf16 %v6009_v29, %v6008_v50  ;;  %v6010_v24 = vld [vmem:[%s9980_s12 + $0xe0] sm:$0xff]  ;;  %v5838_v11 = vld [vmem:[%s9960_s19 + $0x8] sm:$0xff]  ;;  %v9369_v39 = vpack.c.bf16 %v6117_v45, %v6116_v56 }
 0x73c   : > { %9333 = vmatprep.subr.bf16.mxu1 %v9332_v30  ;;  %v5844_v30 = vld [vmem:[%s9965_s24 + $0x8] sm:$0xff] }
 0x73d   : > { %9347 = vmatpush3.bf16.msra.mxu0 %v9346_v35  ;;  %v6119_v35 = vld [vmem:[%s11472_s23 + $0x18] sm:$0xff]  ;;  %v6125_v50 = vld [vmem:[%s11472_s23 + $0x48] sm:$0xff] }
 0x73e   : > { %v5706_v0 = vpop.permute.xlu0 %5705  ;;  %9349 = vmatprep.subr.bf16.mxu0 %v9348_v6  ;;  %v9392_v6 = vpack.c.bf16 %v6212_v25, %v6210_v19  ;;  %v9372_v40 = vpack.c.bf16 %v6119_v35, %v6118_v36  ;;  %v9381_v29 = vpack.c.bf16 %v6125_v50, %v6124_v13  ;;  %v6228_v25 = vld [vmem:[%s11473_s26 + $0x98] sm:$0xff]  ;;  %v6126_v35 = vld [vmem:[%s11472_s23 + $0x50] sm:$0xff]  ;;  %v6128_v13 = vld [vmem:[%s11472_s23 + $0x60] sm:$0xff] }
 0x73f   : > { %v5726_v5 = vsel %vm3019_vm4, %v5725_v46, %v5706_v0  ;;  %9335 = vmatpush1.bf16.msra.mxu1 %v9334_v32  ;;  %v5992_v0 = vld [vmem:[%s9980_s12 + $0x50] sm:$0xff]  ;;  %v6011_v46 = vld [vmem:[%s9980_s12 + $0xe8] sm:$0xff] }
 0x740   : > { %9368 = vmatprep.subr.bf16.mxu1 %v9893_v52  ;;  %v6129_v50 = vld [vmem:[%s11472_s23 + $0x68] sm:$0xff] }
 0x741   : > { %9351 = vmatpush3.bf16.msra.mxu0 %v9350_v59  ;;  %v6122_v59 = vld [vmem:[%s11472_s23 + $0x30] sm:$0xff] }
 0x742   : > { %v5710_v43 = vpop.permute.xlu1 %5709  ;;  %9353 = vmatprep.subr.bf16.mxu0 %v9352_v28  ;;  %v6123_v28 = vld [vmem:[%s11472_s23 + $0x38] sm:$0xff] }
 0x743   : > { %v5727_v26 = vsel %vm3021_vm5, %v5726_v5, %v5710_v43  ;;  %v5993_v43 = vld [vmem:[%s9980_s12 + $0x58] sm:$0xff]  ;;  %v9360_v5 = vpack.c.bf16 %v6011_v46, %v6010_v24  ;;  %v9378_v17 = vpack.c.bf16 %v6123_v28, %v6122_v59  ;;  %v6230_v59 = vld [vmem:[%s11473_s26 + $0xa8] sm:$0xff] }
 0x744   : > { %v6232_v28 = vld [vmem:[%s11473_s26 + $0xb8] sm:$0xff] }
 0x745   : > { %9355 = vmatpush3.bf16.msra.mxu0 %v9354_v61  ;;  %v5881_v61 = vld [vmem:[%s11474_s0] sm:$0x3]  ;;  %s11476_s0 = sld [smem:[#allocation4_spill]] }
 0x746   : > { %v5714_v21 = vpop.permute.xlu0 %5713  ;;  %9357 = vmatprep.subr.bf16.mxu0 %v9356_v38  ;;  %v5886_v38 = vrot.slane %v5881_v61, %v10179_v55 }
 0x747   : > { %v5728_v57 = vsel %vm3023_vm6, %v5727_v26, %v5714_v21  ;;  %v9358_v21 = vpack.c.bf16 %v5993_v43, %v5992_v0  ;;  %v5890_v0 = vrot.slane %v5881_v61, %v10184_v58  ;;  %v9387_v61 = vpack.c.bf16 %v6129_v50, %v6128_v13 }
 0x749   : > { %9359 = vmatpush3.bf16.msra.mxu0 %v9358_v21  ;;  %v6209_v21 = vld [vmem:[%s11473_s26] sm:$0xff] }
 0x74a   : > { %v5718_v44 = vpop.permute.xlu1 %5717  ;;  %9361 = vmatprep.subr.bf16.mxu0 %v9360_v5  ;;  %v6211_v5 = vld [vmem:[%s11473_s26 + $0x10] sm:$0xff] }
 0x74b   : > { %v5729_v3 = vsel %vm3025_vm7, %v5728_v57, %v5718_v44  ;;  %v8235_v44 = vld [vmem:[%s9955_s14] ss:$0 sm:$0xff] }
 0x74d   : > { %9363 = vmatpush3.bf16.msra.mxu0 %v9362_v37 }
 0x76f   : > { %v5722_v47 = vpop.permute.xlu0 %5721 }
 0x770   : > { %v5730_v48 = vsel %vm3027_vm8, %v5729_v3, %v5722_v47  ;;  %v5837_v47 = vld [vmem:[%s9960_s19] sm:$0xff] }
 0x771   : > { %8968 = vmatmul.mubr.f32.gmra.mrb[70].mxu0 %v5730_v48 }
 0x807   : > { %v5820_v26 = vpop.f32.mrb[66].mxu0 }
 0x808   : > { %v5821_v57 = vadd.f32 %v8235_v44, %v5820_v26  ;;  %v8963_v3 = vpop.f32.mrb[67].mxu0  ;;  %v6214_v26 = vld [vmem:[%s11473_s26 + $0x28] sm:$0xff] }
 0x80a   : > { %v5834_v48 = vadd.f32 %v5821_v57, %v10261_v63  ;;  %v6216_v57 = vld [vmem:[%s11473_s26 + $0x38] sm:$0xff] }
 0x80b   : > { %v5825_v18 = vpop.f32.mrb[68].mxu0 }
 0x80c   : > { %v5840_v51 = vmul.f32 %v5837_v47, %v5834_v48  ;;  %v5826_v10 = vadd.f32 %v8235_v44, %v5825_v18  ;;  %v8966_v9 = vpop.f32.mrb[69].mxu0  ;;  %v9394_v48 = vpack.c.bf16 %v6211_v5, %v6209_v21  ;;  %v6130_v21 = vld [vmem:[%s11472_s23 + $0x70] sm:$0xff]  ;;  %v6131_v5 = vld [vmem:[%s11472_s23 + $0x78] sm:$0xff] }
 0x80d   : > { %v6213_v9 = vld [vmem:[%s11473_s26 + $0x20] sm:$0xff] }
 0x80e   : > { %v11061_v60 = vadd.f32 %v5843_v14, %v5840_v51  ;;  %v5835_v15 = vadd.f32 %v5826_v10, %v10269_v16  ;;  %v9396_v10 = vpack.c.bf16 %v6216_v57, %v6214_v26  ;;  %v6233_v26 = vld [vmem:[%s11473_s26 + $0xc0] sm:$0xff]  ;;  %v6235_v57 = vld [vmem:[%s11473_s26 + $0xd0] sm:$0xff] }
 0x810   : > { %v5841_v53 = vmul.f32 %v5838_v11, %v5835_v15  ;;  %5958 = vmatmul.mubr.f32.vlgmr.msra.gmra.mrb[66].mxu1 %v11061_v60  ;;  %v6215_v11 = vld [vmem:[%s11473_s26 + $0x30] sm:$0xff] }
 0x811   : > { %5963 = vmatprep.mubr.f32.mxu1 %v9892_v7  ;;  %9370 = vmatpush3.bf16.msra.mxu1 %v9369_v39  ;;  %v6226_v39 = vld [vmem:[%s11473_s26 + $0x88] sm:$0xff] }
 0x812   : > { %v11067_v63 = vadd.f32 %v5844_v30, %v5841_v53  ;;  %9371 = vmatprep.subr.bf16.mxu1 %v9893_v52  ;;  %v6218_v30 = vld [vmem:[%s11473_s26 + $0x48] sm:$0xff]  ;;  %v6220_v53 = vld [vmem:[%s11473_s26 + $0x58] sm:$0xff]  ;;  %v9408_v36 = vpack.c.bf16 %v6228_v25, %v6226_v39 }
 0x814   : > { %5964 = vmatmul.mubr.f32.gmra.mrb[68].mxu1 %v11067_v63 }
 0x815   : > { %5969 = vmatprep.mubr.f32.mxu1 %v9892_v7  ;;  %9373 = vmatpush3.bf16.msra.mxu1 %v9372_v40 }
 0x816   : > { %9374 = vmatprep.subr.bf16.mxu1 %v9893_v52 }
 0x819   : > { %9376 = vmatpush3.bf16.msra.mxu1 %v9375_v34  ;;  %v9410_v34 = vpack.c.bf16 %v6227_v49, %v6225_v33 }
 0x81a   : > { %9377 = vmatprep.subr.bf16.mxu1 %v9893_v52 }
 0x81d   : > { %9379 = vmatpush3.bf16.msra.mxu1 %v9378_v17  ;;  %v9412_v17 = vpack.c.bf16 %v6232_v28, %v6230_v59 }
 0x81e   : > { %9380 = vmatprep.subr.bf16.mxu1 %v9893_v52 }
 0x821   : > { %9382 = vmatpush3.bf16.msra.mxu1 %v9381_v29  ;;  %v6229_v29 = vld [vmem:[%s11473_s26 + $0xa0] sm:$0xff] }
 0x822   : > { %9383 = vmatprep.subr.bf16.mxu1 %v9893_v52 }
 0x844   : > { %v5830_v1 = vpop.f32.mrb[70].mxu0 }
 0x845   : > { %v5831_v32 = vadd.f32 %v8235_v44, %v5830_v1  ;;  %v8969_v16 = vpop.f32.mrb[71].mxu0 }
 0x847   : > { %v5836_v8 = vadd.f32 %v5831_v32, %v10277_v20  ;;  %v6012_v20 = vld [vmem:[%s9980_s12 + $0xf0] sm:$0xff]  ;;  %v9398_v32 = vpack.c.bf16 %v6215_v11, %v6213_v9  ;;  %v8236_v11 = vld [vmem:[%s11475_s2] ss:$0 sm:$0xff]  ;;  %s11478_s2 = sld [smem:[#allocation9_spill]] }
 0x848   : > { %v9364_v2 = vpack.c.bf16 %v6013_v12, %v6012_v20  ;;  %v6221_v20 = vld [vmem:[%s11473_s26 + $0x60] sm:$0xff]  ;;  %v6223_v12 = vld [vmem:[%s11473_s26 + $0x70] sm:$0xff] }
 0x849   : > { %v5842_v23 = vmul.f32 %v5839_v41, %v5836_v8  ;;  %v9400_v41 = vpack.c.bf16 %v6220_v53, %v6218_v30  ;;  %v6217_v8 = vld [vmem:[%s11473_s26 + $0x40] sm:$0xff] }
 0x84a   : > { %9365 = vmatprep.subr.bf16.mxu0 %v9364_v2  ;;  %v9406_v2 = vpack.c.bf16 %v6223_v12, %v6221_v20  ;;  %v6111_v12 = vld [vmem:[%s11477_s22 + $0x8] sm:$0xff] }
 0x84b   : > { %v11074_v54 = vadd.f32 %v5845_v42, %v5842_v23  ;;  %9367 = vmatpush3.bf16.msra.mxu0 %v9366_v31  ;;  %v6219_v42 = vld [vmem:[%s11473_s26 + $0x50] sm:$0xff]  ;;  %v6222_v23 = vld [vmem:[%s11473_s26 + $0x68] sm:$0xff] }
 0x84c   : > { %9393 = vmatprep.subr.bf16.mxu0 %v9392_v6  ;;  %v9402_v4 = vpack.c.bf16 %v6219_v42, %v6217_v8  ;;  %v9404_v37 = vpack.c.bf16 %v6224_v62, %v6222_v23  ;;  %v6127_v6 = vld [vmem:[%s11472_s23 + $0x58] sm:$0xff]  ;;  %v6110_v42 = vld [vmem:[%s11477_s22] sm:$0xff] }
 0x84d   : > { %5970 = vmatmul.mubr.f32.gmra.mrb[70].mxu1 %v11074_v54  ;;  %v9384_v40 = vpack.c.bf16 %v6127_v6, %v6126_v35  ;;  %v6241_v33 = vld [vmem:[%s11478_s2] sm:$0x3]  ;;  %s11483_s2 = smov 16  }
 0x84e   : > { %9002 = vmatprep.mubr.msk.f32.mxu1 %vm9894_vm1, %v9892_v7  ;;  %v6246_v49 = vrot.slane %v6241_v33, %v10179_v55 }
 0x84f   : > { %9385 = vmatpush3.bf16.msra.mxu1 %v9384_v40 }
 0x850   : > { %9386 = vmatprep.subr.bf16.mxu1 %v9893_v52 }
 0x853   : > { %9388 = vmatpush3.bf16.msra.mxu1 %v9387_v61 }
 0x854   : > { %9389 = vmatprep.subr.bf16.mxu1 %v9893_v52 }
 0x8e3   : > { %v5959_v43 = vpop.f32.mrb[66].mxu1 }
 0x8e4   : > { %v5960_v24 = vadd.f32 %v5959_v43, %v5886_v38  ;;  %v5961_v46 = vpop.f32.mrb[67].mxu1  ;;  %v6234_v43 = vld [vmem:[%s11473_s26 + $0xc8] sm:$0xff] }
 0x8e5   : > { %v5962_v44 = vadd.f32 %v5961_v46, %v5890_v0 }
 0x8e6   : > { %v5976_v14 = vmax.f32 %v5960_v24, 0.0  ;;  %v6236_v24 = vld [vmem:[%s11473_s26 + $0xd8] sm:$0xff] }
 0x8e7   : > { %v5977_v3 = vmax.f32 %v5962_v44, 0.0  ;;  %v5965_v47 = vpop.f32.mrb[68].mxu1  ;;  %v9416_v46 = vpack.c.bf16 %v6236_v24, %v6234_v43  ;;  %v9390_v44 = vpack.c.bf16 %v6131_v5, %v6130_v21  ;;  %v8237_v24 = vld [vmem:[%s11479_s18] ss:$0 sm:$0xff]  ;;  %s11482_s18 = smov 32  }
 0x8e8   : > { %v5966_v18 = vadd.f32 %v5965_v47, %v5886_v38  ;;  %v5967_v51 = vpop.f32.mrb[69].mxu1  ;;  %v6238_v47 = vld [vmem:[%s11473_s26 + $0xe8] sm:$0xff] }
 0x8e9   : > { %v5968_v15 = vadd.f32 %v5967_v51, %v5890_v0  ;;  %6085 = vmatprep.mubr.f32.mxu0 %v5977_v3  ;;  %v9418_v3 = vpack.c.bf16 %v6235_v57, %v6233_v26  ;;  %9391 = vmatpush3.bf16.msra.mxu1 %v9390_v44  ;;  %v6239_v51 = vld [vmem:[%s11473_s26 + $0xf0] sm:$0xff] }
 0x8ea   : > { %6086 = vmatmul.mubr.f32.vlgmr.msra.gmra.mrb[72].mxu0 %v5976_v14  ;;  %v5978_v16 = vmax.f32 %v5966_v18, 0.0  ;;  %v6237_v18 = vld [vmem:[%s11473_s26 + $0xe0] sm:$0xff]  ;;  %9424 = vmatprep.subr.bf16.mxu1 %v9893_v52 }
 0x8eb   : > { %v5979_v1 = vmax.f32 %v5968_v15, 0.0  ;;  %9395 = vmatpush1.bf16.msra.mxu0 %v9394_v48  ;;  %v6240_v48 = vld [vmem:[%s11473_s26 + $0xf8] sm:$0xff] }
 0x8ec   : > { %9397 = vmatprep.subr.bf16.mxu0 %v9396_v10  ;;  %v9420_v14 = vpack.c.bf16 %v6240_v48, %v6238_v47  ;;  %v9422_v10 = vpack.c.bf16 %v6239_v51, %v6237_v18 }
 0x8ed   : > { %6090 = vmatprep.mubr.f32.mxu0 %v5979_v1 }
 0x8ee   : > { %6091 = vmatmul.mubr.f32.gmra.mrb[74].mxu0 %v5978_v16 }
 0x8ef   : > { %9399 = vmatpush1.bf16.msra.mxu0 %v9398_v32  ;;  %v6104_v32 = vld [vmem:[%s11476_s0] sm:$0xff] }
 0x8f0   : > { %9401 = vmatprep.subr.bf16.mxu0 %v9400_v41 }
 0x8f3   : > { %9403 = vmatpush1.bf16.msra.mxu0 %v9402_v4  ;;  %v6105_v4 = vld [vmem:[%s11476_s0 + $0x8] sm:$0xff] }
 0x8f4   : > { %9405 = vmatprep.subr.bf16.mxu0 %v9404_v37 }
 0x8f7   : > { %9407 = vmatpush1.bf16.msra.mxu0 %v9406_v2 }
 0x8f8   : > { %9409 = vmatprep.subr.bf16.mxu0 %v9408_v36 }
 0x8fb   : > { %9411 = vmatpush1.bf16.msra.mxu0 %v9410_v34  ;;  %v6250_v34 = vrot.slane %v6241_v33, %v10184_v58 }
 0x8fc   : > { %9413 = vmatprep.subr.bf16.mxu0 %v9412_v17 }
 0x920   : > { %v5971_v22 = vpop.f32.mrb[70].mxu1 }
 0x921   : > { %v5972_v27 = vadd.f32 %v5971_v22, %v5886_v38  ;;  %v5973_v31 = vpop.f32.mrb[71].mxu1  ;;  %v6231_v38 = vld [vmem:[%s11473_s26 + $0xb0] sm:$0xff] }
 0x922   : > { %v5974_v56 = vadd.f32 %v5973_v31, %v5890_v0  ;;  %v9414_v0 = vpack.c.bf16 %v6231_v38, %v6229_v29 }
 0x923   : > { %v5980_v19 = vmax.f32 %v5972_v27, 0.0 }
 0x924   : > { %v5981_v45 = vmax.f32 %v5974_v56, 0.0  ;;  %9415 = vmatpush1.bf16.msra.mxu0 %v9414_v0 }
 0x925   : > { %9417 = vmatprep.subr.bf16.mxu0 %v9416_v46 }
 0x926   : > { %6095 = vmatprep.mubr.f32.mxu0 %v5981_v45  ;;  %v6106_v45 = vld [vmem:[%s11476_s0 + $0x10] sm:$0xff] }
 0x927   : > { %6096 = vmatmul.mubr.f32.gmra.mrb[76].mxu0 %v5980_v19 }
 0x928   : > { %6317 = vmatprep.mubr.f32.mxu0 %v9892_v7  ;;  %9419 = vmatpush1.bf16.msra.mxu0 %v9418_v3 }
 0x929   : > { %9421 = vmatprep.subr.bf16.mxu0 %v9420_v14 }
 0x92c   : > { %9423 = vmatpush1.bf16.msra.mxu0 %v9422_v10 }
 0x92d   : > { %9452 = vmatprep.subr.bf16.mxu0 %v9893_v52 }
 0x9bd   : > { %v8522_v9 = vpop.f32.mrb[72].mxu0 }
 0x9be   : > { %v8523_v15 = vpop.f32.mrb[73].mxu0 }
 0x9bf   : > { %v8524_v30 = vadd.f32 %v8523_v15, %v8522_v9 }
 0x9c1   : > { %v6088_v53 = vadd.f32 %v8524_v30, %v8236_v11  ;;  %v8525_v1 = vpop.f32.mrb[74].mxu0 }
 0x9c2   : > { %v8526_v16 = vpop.f32.mrb[75].mxu0 }
 0x9c3   : > { %v6101_v41 = vadd.f32 %v6088_v53, %v11061_v60  ;;  %v8527_v8 = vadd.f32 %v8526_v16, %v8525_v1 }
 0x9c5   : > { %v6107_v23 = vmul.f32 %v6104_v32, %v6101_v41  ;;  %v6093_v62 = vadd.f32 %v8527_v8, %v8236_v11 }
 0x9c7   : > { %v11151_v37 = vadd.f32 %v6110_v42, %v6107_v23  ;;  %v6102_v20 = vadd.f32 %v6093_v62, %v11067_v63  ;;  %v6112_v63 = vld [vmem:[%s11477_s22 + $0x10] sm:$0xff] }
 0x9c9   : > { %v6108_v2 = vmul.f32 %v6105_v4, %v6102_v20  ;;  %9003 = vmatmul.mubr.f32.vlgmr.msra.gmra.mrb[72].mxu1 %v11151_v37 }
 0x9ca   : > { %9009 = vmatprep.mubr.msk.f32.mxu1 %vm9894_vm1, %v9892_v7 }
 0x9cb   : > { %v6114_v22 = vadd.f32 %v6111_v12, %v6108_v2 }
 0x9cd   : > { %6318 = vmatmul.mubr.f32.vlgmr.msra.gmra.mrb[78].mxu0 %v6114_v22 }
 0x9ce   : > { %6323 = vmatprep.mubr.f32.mxu0 %v9892_v7 }
 0x9fa   : > { %v8528_v60 = vpop.f32.mrb[76].mxu0 }
 0x9fb   : > { %v8529_v27 = vpop.f32.mrb[77].mxu0 }
 0x9fc   : > { %v8530_v31 = vadd.f32 %v8529_v27, %v8528_v60 }
 0x9fe   : > { %v6098_v56 = vadd.f32 %v8530_v31, %v8236_v11 }
 0xa00   : > { %v6103_v19 = vadd.f32 %v6098_v56, %v11074_v54 }
 0xa02   : > { %v6109_v39 = vmul.f32 %v6106_v45, %v6103_v19 }
 0xa04   : > { %v6115_v25 = vadd.f32 %v6112_v63, %v6109_v39 }
 0xa06   : > { %6324 = vmatmul.mubr.f32.gmra.mrb[80].mxu0 %v6115_v25 }
 0xa07   : > { %9065 = vmatprep.mubr.msk.f32.mxu0 %vm9894_vm1, %v9892_v7 }
 0xa9c   : > { %v6205_v36 = vpop.f32.mrb[72].mxu1 }
 0xa9d   : > { %v9004_v35 = vpop.f32.mrb[73].mxu1  ;;  %v11181_v46 = vadd.f32 %v8237_v24, %v6205_v36 }
 0xaa0   : > { %v6319_v6 = vpop.f32.mrb[78].mxu0 }
 0xaa1   : > { %v6321_v40 = vpop.f32.mrb[79].mxu0  ;;  %v6320_v28 = vadd.f32 %v6319_v6, %v6246_v49 }
 0xaa2   : > { %v6322_v13 = vadd.f32 %v6321_v40, %v6250_v34 }
 0xad9   : > { %v6325_v59 = vpop.f32.mrb[80].mxu0 }
 0xada   : > { %v6326_v54 = vadd.f32 %v6325_v59, %v6246_v49  ;;  %v6327_v17 = vpop.f32.mrb[81].mxu0 }
 0xadb   : > { %v6328_v50 = vadd.f32 %v6327_v17, %v6250_v34 }
 0xadc   : > { %v9425_v61 = vpack.c.bf16 %v6326_v54, %v6320_v28  ;;  %v11173_v38 = vpack.i.bf16 %v6326_v54, %v6320_v28 }
 0xadd   : > { %v9429_v0 = vpack.c.bf16 %v6328_v50, %v6322_v13  ;;  %v11175_v43 = vpack.i.bf16 %v6328_v50, %v6322_v13 }
 0xade   : > { %9427 = vmatpush3.bf16.xpose.msk.msra.mxu1 %vm11169_vm9, %v9425_v61 }
 0xadf   : > { %9428 = vmatprep.subr.bf16.mxu1 %v9893_v52 }
 0xae5   : > { %9010 = vmatmul.mubr.msk.f32.vlgmr.msra.gmra.mrb[74].mxu1 %vm1018_vm0, %v11181_v46 }
 0xae6   : > { %9430 = vmatpush3.bf16.msra.mxu1 %v9429_v0  ;;  %9016 = vmatprep.mubr.msk.f32.mxu1 %vm9894_vm1, %v9892_v7 }
 0xae7   : > { %9431 = vmatprep.subr.bf16.mxu1 %v9893_v52 }
 0xbb8   : > { %v6405_v21 = vpop.f32.mrb[74].mxu1 }
 0xbb9   : > { %v9011_v5 = vpop.f32.mrb[75].mxu1  ;;  %v6409_v44 = vsel %vm1018_vm0, %v6405_v21, -inf }
 0xbba   : > { %6410 = vmax.xlane.f32.xlu1 %v6409_v44 }
 0xbcb   : > { %6493 = vrot.lane.b32.xlu1 %v11181_v46, %s9896_s10 }
 0xc47   : > { %v6411_v26 = vpop.xlane.xlu1 %6410 }
 0xc48   : > { %v6412_v57 = vsub.f32 %v6405_v21, %v6411_v26 }
 0xc4a   : > { %v6413_v3 = vmul.f32 1.442695, %v6412_v57 }
 0xc4b   : > { %v6494_v30 = vpop.permute.xlu1 %6493 }
 0xc4c   : > { %9820 = vpow2.f32 %v6413_v3 }
 0xc56   : > { %v9821_v47 = vpop.eup %9820 }
 0xc57   : > { %v6415_v48 = vsel %vm1018_vm0, %v9821_v47, 0.0 }
 0xc58   : > { %6416 = vadd.xlane.f32.xlu0 %v6415_v48 }
 0xc6e   : > { %9655 = vrot.lane.b32.xlu0 %v11173_v38, %s9896_s10 }
 0xce5   : > { %v6417_v14 = vpop.xlane.xlu0 %6416 }
 0xce6   : > { %9822 = vrcp.f32 %v6417_v14 }
 0xce9   : > { %v9656_v18 = vpop.permute.xlu0 %9655 }
 0xcea   : > { %v9658_v51 = vunpack.i.h.bf16 %v9656_v18  ;;  %v9657_v10 = vunpack.i.l.bf16 %v9656_v18 }
 0xcec   : > { %v9432_v15 = vpack.c.bf16 %v9658_v51, %v9657_v10 }
 0xcf0   : > { %v9823_v9 = vpop.eup %9822 }
 0xcf1   : > { %v6419_v11 = vmul.f32 %v9823_v9, %v9821_v47 }
 0xcf3   : > { %9017 = vmatmul.mubr.msk.f32.vlgmr.msra.gmra.mrb[76].mxu1 %vm1018_vm0, %v6419_v11 }
 0xcf4   : > { %9434 = vmatpush3.bf16.xpose.msk.msra.mxu1 %vm11169_vm9, %v9432_v15  ;;  %9023 = vmatprep.mubr.msk.f32.mxu1 %vm9894_vm1, %v9892_v7 }
 0xcf5   : > { %9435 = vmatprep.subr.bf16.mxu1 %v9893_v52 }
 0xcfb   : > { %9024 = vmatmul.mubr.msk.f32.vlgmr.msra.gmra.mrb[78].mxu1 %vm1018_vm0, %v6494_v30 }
 0xcfc   : > { %9030 = vmatprep.mubr.msk.f32.mxu1 %vm9894_vm1, %v9892_v7 }
 0xdc6   : > { %v11203_v53 = vpop.f32.mrb[76].mxu1 }
 0xdc7   : > { %v9018_v1 = vpop.f32.mrb[77].mxu1 }
 0xdce   : > { %v6571_v32 = vpop.f32.mrb[78].mxu1 }
 0xdcf   : > { %v9025_v16 = vpop.f32.mrb[79].mxu1  ;;  %v6575_v41 = vsel %vm1018_vm0, %v6571_v32, -inf }
 0xdd0   : > { %6576 = vmax.xlane.f32.xlu1 %v6575_v41 }
 0xde1   : > { %9665 = vrot.lane.b32.xlu1 %v11173_v38, %s9895_s7 }
 0xde5   : > { %6667 = vrot.lane.b32.xlu1 %v11181_v46, %s9895_s7 }
 0xde9   : > { %9675 = vrot.lane.b32.xlu1 %v11173_v38, %s9897_s11 }
 0xe5d   : > { %v6577_v8 = vpop.xlane.xlu1 %6576 }
 0xe5e   : > { %v6578_v42 = vsub.f32 %v6571_v32, %v6577_v8 }
 0xe60   : > { %v6579_v23 = vmul.f32 1.442695, %v6578_v42 }
 0xe61   : > { %v9666_v27 = vpop.permute.xlu1 %9665 }
 0xe62   : > { %9824 = vpow2.f32 %v6579_v23  ;;  %v9668_v56 = vunpack.i.h.bf16 %v9666_v27  ;;  %v9667_v45 = vunpack.i.l.bf16 %v9666_v27 }
 0xe64   : > { %v9439_v63 = vpack.c.bf16 %v9668_v56, %v9667_v45 }
 0xe65   : > { %v6668_v39 = vpop.permute.xlu1 %6667 }
 0xe69   : > { %v9676_v61 = vpop.permute.xlu1 %9675 }
 0xe6a   : > { %v9678_v26 = vunpack.i.h.bf16 %v9676_v61  ;;  %v9677_v57 = vunpack.i.l.bf16 %v9676_v61 }
 0xe6c   : > { %v9825_v62 = vpop.eup %9824  ;;  %v9446_v14 = vpack.c.bf16 %v9678_v26, %v9677_v57 }
 0xe6d   : > { %v6581_v4 = vsel %vm1018_vm0, %v9825_v62, 0.0 }
 0xe6e   : > { %6582 = vadd.xlane.f32.xlu0 %v6581_v4 }
 0xe84   : > { %9660 = vrot.lane.b32.xlu0 %v11175_v43, %s9896_s10 }
 0xefb   : > { %v6583_v20 = vpop.xlane.xlu0 %6582 }
 0xefc   : > { %9826 = vrcp.f32 %v6583_v20 }
 0xeff   : > { %v9661_v12 = vpop.permute.xlu0 %9660 }
 0xf00   : > { %v9663_v2 = vunpack.i.h.bf16 %v9661_v12  ;;  %v9662_v22 = vunpack.i.l.bf16 %v9661_v12 }
 0xf02   : > { %v9436_v60 = vpack.c.bf16 %v9663_v2, %v9662_v22 }
 0xf04   : > { %9437 = vmatpush3.bf16.msra.mxu1 %v9436_v60 }
 0xf05   : > { %9438 = vmatprep.subr.bf16.mxu1 %v9893_v52 }
 0xf06   : > { %v9827_v31 = vpop.eup %9826 }
 0xf07   : > { %v6585_v19 = vmul.f32 %v9827_v31, %v9825_v62 }
 0xf09   : > { %9031 = vmatmul.mubr.msk.f32.vlgmr.msra.gmra.mrb[80].mxu1 %vm1018_vm0, %v6585_v19 }
 0xf0a   : > { %9037 = vmatprep.mubr.msk.f32.mxu1 %vm9894_vm1, %v9892_v7 }
 0xf0d   : > { %9441 = vmatpush3.bf16.xpose.msk.msra.mxu1 %vm11169_vm9, %v9439_v63 }
 0xf0e   : > { %9442 = vmatprep.subr.bf16.mxu1 %v9893_v52 }
 0xf14   : > { %9038 = vmatmul.mubr.msk.f32.vlgmr.msra.gmra.mrb[82].mxu1 %vm1018_vm0, %v6668_v39 }
 0xf15   : > { %9044 = vmatprep.mubr.msk.f32.mxu1 %vm9894_vm1, %v9892_v7 }
 0xfdc   : > { %v11225_v25 = vpop.f32.mrb[80].mxu1 }
 0xfdd   : > { %v9032_v36 = vpop.f32.mrb[81].mxu1 }
 0xfe7   : > { %v6745_v35 = vpop.f32.mrb[82].mxu1 }
 0xfe8   : > { %v9039_v6 = vpop.f32.mrb[83].mxu1  ;;  %v6749_v40 = vsel %vm1018_vm0, %v6745_v35, -inf }
 0xfe9   : > { %6750 = vmax.xlane.f32.xlu0 %v6749_v40 }
 0xfff   : > { %9670 = vrot.lane.b32.xlu0 %v11175_v43, %s9895_s7 }
0x1003   : > { %6839 = vrot.lane.b32.xlu0 %v11181_v46, %s9897_s11 }
0x1007   : > { %7011 = vrot.lane.b32.xlu0 %v11181_v46, %s9898_s15 }
0x1076   : > { %v6751_v33 = vpop.xlane.xlu0 %6750 }
0x1077   : > { %v6752_v49 = vsub.f32 %v6745_v35, %v6751_v33 }
0x1079   : > { %v6753_v34 = vmul.f32 1.442695, %v6752_v49 }
0x107a   : > { %v9671_v59 = vpop.permute.xlu0 %9670 }
0x107b   : > { %9828 = vpow2.f32 %v6753_v34  ;;  %v9673_v28 = vunpack.i.h.bf16 %v9671_v59  ;;  %v9672_v54 = vunpack.i.l.bf16 %v9671_v59 }
0x107d   : > { %v9443_v17 = vpack.c.bf16 %v9673_v28, %v9672_v54 }
0x107e   : > { %v6840_v3 = vpop.permute.xlu0 %6839 }
0x107f   : > { %9444 = vmatpush3.bf16.msra.mxu1 %v9443_v17 }
0x1080   : > { %9445 = vmatprep.subr.bf16.mxu1 %v9893_v52 }
0x1082   : > { %v7012_v18 = vpop.permute.xlu0 %7011 }
0x1085   : > { %v9829_v13 = vpop.eup %9828 }
0x1086   : > { %v6755_v50 = vsel %vm1018_vm0, %v9829_v13, 0.0 }
0x1087   : > { %6756 = vadd.xlane.f32.xlu1 %v6755_v50 }
0x1098   : > { %9680 = vrot.lane.b32.xlu1 %v11173_v38, %s9898_s15 }
0x1114   : > { %v6757_v0 = vpop.xlane.xlu1 %6756 }
0x1115   : > { %9830 = vrcp.f32 %v6757_v0 }
0x1118   : > { %v9681_v24 = vpop.permute.xlu1 %9680 }
0x1119   : > { %v9683_v21 = vunpack.i.h.bf16 %v9681_v24  ;;  %v9682_v5 = vunpack.i.l.bf16 %v9681_v24 }
0x111b   : > { %v9453_v44 = vpack.c.bf16 %v9683_v21, %v9682_v5 }
0x111d   : > { %9455 = vmatpush3.bf16.xpose.msk.msra.mxu0 %vm11169_vm9, %v9453_v44 }
0x111e   : > { %9463 = vmatprep.subr.bf16.mxu0 %v9893_v52 }
0x111f   : > { %v9831_v47 = vpop.eup %9830 }
0x1120   : > { %v6759_v48 = vmul.f32 %v9831_v47, %v9829_v13 }
0x1122   : > { %9045 = vmatmul.mubr.msk.f32.vlgmr.msra.gmra.mrb[84].mxu1 %vm1018_vm0, %v6759_v48 }
0x1123   : > { %9448 = vmatpush3.bf16.xpose.msk.msra.mxu1 %vm11169_vm9, %v9446_v14  ;;  %9051 = vmatprep.mubr.msk.f32.mxu1 %vm9894_vm1, %v9892_v7 }
0x1124   : > { %9066 = vmatmul.mubr.msk.f32.vlgmr.msra.gmra.mrb[82].mxu0 %vm1018_vm0, %v7012_v18  ;;  %9449 = vmatprep.subr.bf16.mxu1 %v9893_v52 }
0x1125   : > { %9086 = vmatprep.mubr.msk.f32.mxu0 %vm9894_vm1, %v9892_v7 }
0x112a   : > { %9052 = vmatmul.mubr.msk.f32.vlgmr.msra.gmra.mrb[86].mxu1 %vm1018_vm0, %v6840_v3 }
0x112b   : > { %9058 = vmatprep.mubr.msk.f32.mxu1 %vm9894_vm1, %v9892_v7 }
0x11f5   : > { %v11253_v51 = vpop.f32.mrb[84].mxu1 }
0x11f6   : > { %v9046_v10 = vpop.f32.mrb[85].mxu1 }
0x11f7   : > { %v7089_v9 = vpop.f32.mrb[82].mxu0 }
0x11f8   : > { %v9067_v11 = vpop.f32.mrb[83].mxu0  ;;  %v7093_v15 = vsel %vm1018_vm0, %v7089_v9, -inf }
0x11f9   : > { %7094 = vmax.xlane.f32.xlu0 %v7093_v15 }
0x11fd   : > { %v6917_v30 = vpop.f32.mrb[86].mxu1 }
0x11fe   : > { %v9053_v1 = vpop.f32.mrb[87].mxu1  ;;  %v6921_v32 = vsel %vm1018_vm0, %v6917_v30, -inf }
0x11ff   : > { %6922 = vmax.xlane.f32.xlu1 %v6921_v32 }
0x1286   : > { %v7095_v16 = vpop.xlane.xlu0 %7094 }
0x1287   : > { %v7096_v41 = vsub.f32 %v7089_v9, %v7095_v16 }
0x1289   : > { %v7097_v8 = vmul.f32 1.442695, %v7096_v41 }
0x128b   : > { %9832 = vpow2.f32 %v7097_v8 }
0x128c   : > { %v6923_v42 = vpop.xlane.xlu1 %6922 }
0x128d   : > { %v6924_v23 = vsub.f32 %v6917_v30, %v6923_v42 }
0x128f   : > { %v6925_v62 = vmul.f32 1.442695, %v6924_v23 }
0x1291   : > { %9834 = vpow2.f32 %v6925_v62 }
0x1295   : > { %v9833_v4 = vpop.eup %9832 }
0x1296   : > { %v7099_v20 = vsel %vm1018_vm0, %v9833_v4, 0.0 }
0x1297   : > { %7100 = vadd.xlane.f32.xlu1 %v7099_v20 }
0x129b   : > { %v9835_v12 = vpop.eup %9834 }
0x129c   : > { %v6927_v2 = vsel %vm1018_vm0, %v9835_v12, 0.0 }
0x129d   : > { %6928 = vadd.xlane.f32.xlu0 %v6927_v2 }
0x12a8   : > { %9690 = vrot.lane.b32.xlu1 %v11175_v43, %s9898_s15 }
0x12ac   : > { %9695 = vrot.lane.b32.xlu1 %v11173_v38, %s9899_s16 }
0x12b0   : > { %7183 = vrot.lane.b32.xlu1 %v11181_v46, %s9899_s16 }
0x12b3   : > { %9685 = vrot.lane.b32.xlu0 %v11175_v43, %s9897_s11 }
0x12b7   : > { %9700 = vrot.lane.b32.xlu0 %v11173_v38, %s11482_s18 }
0x12bb   : > { %7355 = vrot.lane.b32.xlu0 %v11181_v46, %s11482_s18 }
0x1324   : > { %v7101_v22 = vpop.xlane.xlu1 %7100 }
0x1328   : > { %v9691_v45 = vpop.permute.xlu1 %9690 }
0x1329   : > { %v9693_v63 = vunpack.i.h.bf16 %v9691_v45  ;;  %v9692_v39 = vunpack.i.l.bf16 %v9691_v45 }
0x132a   : > { %v6929_v60 = vpop.xlane.xlu0 %6928 }
0x132b   : > { %9836 = vrcp.f32 %v6929_v60  ;;  %v9457_v40 = vpack.c.bf16 %v9693_v63, %v9692_v39 }
0x132c   : > { %9838 = vrcp.f32 %v7101_v22  ;;  %v9696_v33 = vpop.permute.xlu1 %9695 }
0x132d   : > { %v9698_v34 = vunpack.i.h.bf16 %v9696_v33  ;;  %v9697_v59 = vunpack.i.l.bf16 %v9696_v33 }
0x132e   : > { %v9686_v27 = vpop.permute.xlu0 %9685 }
0x132f   : > { %v9688_v31 = vunpack.i.h.bf16 %v9686_v27  ;;  %v9687_v56 = vunpack.i.l.bf16 %v9686_v27  ;;  %v9460_v28 = vpack.c.bf16 %v9698_v34, %v9697_v59 }
0x1330   : > { %v7184_v50 = vpop.permute.xlu1 %7183 }
0x1331   : > { %v9450_v19 = vpack.c.bf16 %v9688_v31, %v9687_v56 }
0x1332   : > { %v9701_v54 = vpop.permute.xlu0 %9700 }
0x1333   : > { %9451 = vmatpush3.bf16.msra.mxu1 %v9450_v19  ;;  %v9703_v17 = vunpack.i.h.bf16 %v9701_v54  ;;  %v9702_v13 = vunpack.i.l.bf16 %v9701_v54 }
0x1334   : > { %9456 = vmatprep.subr.bf16.mxu1 %v9893_v52 }
0x1335   : > { %v9837_v36 = vpop.eup %9836  ;;  %v9467_v61 = vpack.c.bf16 %v9703_v17, %v9702_v13 }
0x1336   : > { %v6931_v35 = vmul.f32 %v9837_v36, %v9835_v12  ;;  %v9839_v6 = vpop.eup %9838  ;;  %v7356_v0 = vpop.permute.xlu0 %7355 }
0x1337   : > { %v7103_v49 = vmul.f32 %v9839_v6, %v9833_v4 }
0x1338   : > { %9059 = vmatmul.mubr.msk.f32.vlgmr.msra.gmra.mrb[88].mxu1 %vm1018_vm0, %v6931_v35 }
0x1339   : > { %9458 = vmatpush3.bf16.msra.mxu1 %v9457_v40  ;;  %9072 = vmatprep.mubr.msk.f32.mxu1 %vm9894_vm1, %v9892_v7 }
0x133a   : > { %9459 = vmatprep.subr.bf16.mxu1 %v9893_v52 }
0x133c   : > { %9073 = vmatmul.mubr.msk.f32.vlgmr.msra.gmra.mrb[90].mxu1 %vm1018_vm0, %v7103_v49 }
0x133d   : > { %9079 = vmatprep.mubr.msk.f32.mxu1 %vm9894_vm1, %v9892_v7 }
0x1342   : > { %9462 = vmatpush3.bf16.xpose.msk.msra.mxu1 %vm11169_vm9, %v9460_v28 }
0x1343   : > { %9466 = vmatprep.subr.bf16.mxu1 %v9893_v52 }
0x1349   : > { %9080 = vmatmul.mubr.msk.f32.vlgmr.msra.gmra.mrb[92].mxu1 %vm1018_vm0, %v7184_v50 }
0x134a   : > { %9469 = vmatpush3.bf16.xpose.msk.msra.mxu1 %vm11169_vm9, %v9467_v61  ;;  %9093 = vmatprep.mubr.msk.f32.mxu1 %vm9894_vm1, %v9892_v7 }
0x134b   : > { %9470 = vmatprep.subr.bf16.mxu1 %v9893_v52 }
0x1351   : > { %9094 = vmatmul.mubr.msk.f32.vlgmr.msra.gmra.mrb[94].mxu1 %vm1018_vm0, %v7356_v0 }
0x1352   : > { %9100 = vmatprep.mubr.msk.f32.mxu1 %vm9894_vm1, %v9892_v7 }
0x140b   : > { %v11291_v24 = vpop.f32.mrb[88].mxu1 }
0x140c   : > { %v9060_v21 = vpop.f32.mrb[89].mxu1 }
0x140f   : > { %v7179_v5 = vpop.f32.mrb[90].mxu1 }
0x1410   : > { %v9074_v44 = vpop.f32.mrb[91].mxu1 }
0x141c   : > { %v7261_v26 = vpop.f32.mrb[92].mxu1 }
0x141d   : > { %v9081_v57 = vpop.f32.mrb[93].mxu1  ;;  %v7265_v15 = vsel %vm1018_vm0, %v7261_v26, -inf }
0x1424   : > { %v7433_v3 = vpop.f32.mrb[94].mxu1 }
0x1425   : > { %v9095_v47 = vpop.f32.mrb[95].mxu1  ;;  %v7437_v48 = vsel %vm1018_vm0, %v7433_v3, -inf }
0x1426   : > { %7438 = vmax.xlane.f32.xlu1 %v7437_v48 }
0x1437   : > { %9710 = vrot.lane.b32.xlu1 %v11173_v38, %s11483_s2 }
0x143b   : > { %7527 = vrot.lane.b32.xlu1 %v11181_v46, %s11483_s2 }
0x14b3   : > { %v7439_v14 = vpop.xlane.xlu1 %7438 }
0x14b4   : > { %v7440_v18 = vsub.f32 %v7433_v3, %v7439_v14 }
0x14b6   : > { %v7441_v10 = vmul.f32 1.442695, %v7440_v18 }
0x14b7   : > { %v9711_v16 = vpop.permute.xlu1 %9710 }
0x14b8   : > { %9840 = vpow2.f32 %v7441_v10  ;;  %v9713_v8 = vunpack.i.h.bf16 %v9711_v16  ;;  %v9712_v42 = vunpack.i.l.bf16 %v9711_v16 }
0x14ba   : > { %v9474_v62 = vpack.c.bf16 %v9713_v8, %v9712_v42 }
0x14bb   : > { %v7528_v4 = vpop.permute.xlu1 %7527 }
0x14c2   : > { %v9841_v9 = vpop.eup %9840 }
0x14c3   : > { %v7443_v11 = vsel %vm1018_vm0, %v9841_v9, 0.0 }
0x14c4   : > { %7444 = vadd.xlane.f32.xlu0 %v7443_v11 }
0x14da   : > { %9705 = vrot.lane.b32.xlu0 %v11175_v43, %s11482_s18 }
0x14f9   : > { %7266 = vmax.xlane.f32.xlu0 %v7265_v15 }
0x1551   : > { %v7445_v30 = vpop.xlane.xlu0 %7444 }
0x1552   : > { %9842 = vrcp.f32 %v7445_v30 }
0x1555   : > { %v9706_v38 = vpop.permute.xlu0 %9705 }
0x1556   : > { %v9708_v1 = vunpack.i.h.bf16 %v9706_v38  ;;  %v9707_v32 = vunpack.i.l.bf16 %v9706_v38 }
0x1558   : > { %v9471_v46 = vpack.c.bf16 %v9708_v1, %v9707_v32 }
0x155a   : > { %9472 = vmatpush3.bf16.msra.mxu1 %v9471_v46 }
0x155b   : > { %9473 = vmatprep.subr.bf16.mxu1 %v9893_v52 }
0x155c   : > { %v9843_v41 = vpop.eup %9842 }
0x155d   : > { %v7447_v23 = vmul.f32 %v9843_v41, %v9841_v9 }
0x155f   : > { %9101 = vmatmul.mubr.msk.f32.vlgmr.msra.gmra.mrb[96].mxu1 %vm1018_vm0, %v7447_v23 }
0x1560   : > { %9107 = vmatprep.mubr.msk.f32.mxu1 %vm9894_vm1, %v9892_v7 }
0x1563   : > { %9476 = vmatpush3.bf16.xpose.msk.msra.mxu1 %vm11169_vm9, %v9474_v62 }
0x156a   : > { %9108 = vmatmul.mubr.msk.f32.vlgmr.msra.gmra.mrb[98].mxu1 %vm1018_vm0, %v7528_v4 }
0x156b   : > { %7940 = vmatprep.mubr.f32.mxu1 %v9892_v7 }
0x1586   : > { %v7267_v20 = vpop.xlane.xlu0 %7266 }
0x1587   : > { %v7268_v12 = vsub.f32 %v7261_v26, %v7267_v20 }
0x1589   : > { %v7269_v2 = vmul.f32 1.442695, %v7268_v12 }
0x158b   : > { %9844 = vpow2.f32 %v7269_v2 }
0x1595   : > { %v9845_v22 = vpop.eup %9844 }
0x1596   : > { %v7271_v60 = vsel %vm1018_vm0, %v9845_v22, 0.0 }
0x1597   : > { %7272 = vadd.xlane.f32.xlu0 %v7271_v60 }
0x1624   : > { %v7273_v19 = vpop.xlane.xlu0 %7272 }
0x1625   : > { %9846 = vrcp.f32 %v7273_v19 }
0x162f   : > { %v9847_v33 = vpop.eup %9846 }
0x1632   : > { %v7523_v27 = vpop.f32.mrb[96].mxu1 }
0x1633   : > { %v9102_v31 = vpop.f32.mrb[97].mxu1 }
0x163d   : > { %v7605_v56 = vpop.f32.mrb[98].mxu1 }
0x163e   : > { %v9109_v45 = vpop.f32.mrb[99].mxu1  ;;  %v7609_v29 = vsel %vm1018_vm0, %v7605_v56, -inf }
0x163f   : > { %7610 = vmax.xlane.f32.xlu1 %v7609_v29 }
0x1650   : > { %9715 = vrot.lane.b32.xlu1 %v11175_v43, %s9899_s16 }
0x1654   : > { %7700 = vrot.lane.b32.xlu1 %v11225_v25, %s11483_s2  ;;  %v7275_v25 = vmul.f32 %v9847_v33, %v9845_v22 }
0x1658   : > { %7704 = vrot.lane.b32.xlu1 %v11253_v51, %s11482_s18  ;;  %s11489_s18 = sld [smem:[#allocation13_spill]] }
0x165c   : > { %7712 = vrot.lane.b32.xlu1 %v7179_v5, %s9898_s15  ;;  %s11487_s15 = sld [smem:[#allocation11_spill]] }
0x1660   : > { %7720 = vrot.lane.b32.xlu1 %v7523_v27, %s9895_s7  ;;  %s11484_s7 = sld [smem:[#allocation10_spill]] }
0x1666   : > { %v7735_v21 = vld [vmem:[%s11484_s7 + $0x8] sm:$0xff]  ;;  %v7736_v5 = vld [vmem:[%s11484_s7 + $0x10] sm:$0xff]  ;;  %v7737_v26 = vld [vmem:[%s11484_s7 + $0x18] sm:$0xff] }
0x1667   : > { %v9484_v57 = vpack.c.bf16 %v7737_v26, %v7736_v5  ;;  %v7738_v3 = vld [vmem:[%s11484_s7 + $0x20] sm:$0xff]  ;;  %v7740_v48 = vld [vmem:[%s11484_s7 + $0x30] sm:$0xff]  ;;  %v7741_v14 = vld [vmem:[%s11484_s7 + $0x38] sm:$0xff] }
0x1668   : > { %v9490_v18 = vpack.c.bf16 %v7741_v14, %v7740_v48  ;;  %v7742_v10 = vld [vmem:[%s11484_s7 + $0x40] sm:$0xff]  ;;  %v7743_v9 = vld [vmem:[%s11484_s7 + $0x48] sm:$0xff]  ;;  %v7744_v15 = vld [vmem:[%s11484_s7 + $0x50] sm:$0xff] }
0x1669   : > { %v9493_v11 = vpack.c.bf16 %v7743_v9, %v7742_v10  ;;  %v7745_v30 = vld [vmem:[%s11484_s7 + $0x58] sm:$0xff]  ;;  %v7746_v1 = vld [vmem:[%s11484_s7 + $0x60] sm:$0xff]  ;;  %v7747_v32 = vld [vmem:[%s11484_s7 + $0x68] sm:$0xff] }
0x166a   : > { %v9496_v38 = vpack.c.bf16 %v7745_v30, %v7744_v15  ;;  %v9499_v46 = vpack.c.bf16 %v7747_v32, %v7746_v1  ;;  %v7748_v16 = vld [vmem:[%s11484_s7 + $0x70] sm:$0xff]  ;;  %v7749_v41 = vld [vmem:[%s11484_s7 + $0x78] sm:$0xff] }
0x166b   : > { %v9502_v8 = vpack.c.bf16 %v7749_v41, %v7748_v16 }
0x16cc   : > { %v7611_v63 = vpop.xlane.xlu1 %7610 }
0x16cd   : > { %v7612_v39 = vsub.f32 %v7605_v56, %v7611_v63 }
0x16cf   : > { %v7613_v36 = vmul.f32 1.442695, %v7612_v39 }
0x16d0   : > { %v9716_v35 = vpop.permute.xlu1 %9715 }
0x16d1   : > { %9848 = vpow2.f32 %v7613_v36  ;;  %v9718_v6 = vunpack.i.h.bf16 %v9716_v35  ;;  %v9717_v40 = vunpack.i.l.bf16 %v9716_v35 }
0x16d3   : > { %v9464_v49 = vpack.c.bf16 %v9718_v6, %v9717_v40 }
0x16d4   : > { %v7701_v5 = vpop.permute.xlu1 %7700 }
0x16d5   : > { %9465 = vmatpush3.bf16.msra.mxu0 %v9464_v49 }
0x16d6   : > { %9477 = vmatprep.subr.bf16.mxu0 %v9893_v52 }
0x16d8   : > { %9087 = vmatmul.mubr.msk.f32.vlgmr.msra.gmra.mrb[84].mxu0 %vm1018_vm0, %v7275_v25 }
0x16d9   : > { %9114 = vmatprep.mubr.msk.f32.mxu0 %vm9894_vm1, %v9892_v7 }
0x16db   : > { %v9849_v51 = vpop.eup %9848 }
0x16dc   : > { %v7615_v34 = vsel %vm1018_vm0, %v9849_v51, 0.0 }
0x16dd   : > { %7616 = vadd.xlane.f32.xlu0 %v7615_v34 }
0x16f3   : > { %9720 = vrot.lane.b32.xlu0 %v11175_v43, %s11483_s2  ;;  %s11490_s2 = sld [smem:[#allocation15_spill]] }
0x16f7   : > { %7708 = vrot.lane.b32.xlu0 %v11291_v24, %s9899_s16  ;;  %v7734_v24 = vld [vmem:[%s11484_s7] sm:$0xff]  ;;  %s11488_s16 = sld [smem:[#allocation12_spill]] }
0x16f8   : > { %v9481_v44 = vpack.c.bf16 %v7735_v21, %v7734_v24 }
0x176a   : > { %v7617_v59 = vpop.xlane.xlu0 %7616 }
0x176b   : > { %9850 = vrcp.f32 %v7617_v59 }
0x176e   : > { %v9721_v28 = vpop.permute.xlu0 %9720 }
0x176f   : > { %v9723_v54 = vunpack.i.h.bf16 %v9721_v28  ;;  %v9722_v17 = vunpack.i.l.bf16 %v9721_v28 }
0x1771   : > { %v9478_v13 = vpack.c.bf16 %v9723_v54, %v9722_v17 }
0x1772   : > { %v7709_v26 = vpop.permute.xlu0 %7708 }
0x1773   : > { %9479 = vmatpush3.bf16.msra.mxu0 %v9478_v13 }
0x1774   : > { %9480 = vmatprep.subr.bf16.mxu0 %v9893_v52 }
0x1775   : > { %v9851_v50 = vpop.eup %9850 }
0x1776   : > { %v7619_v43 = vmul.f32 %v9851_v50, %v9849_v51 }
0x1778   : > { %9115 = vmatmul.mubr.msk.f32.vlgmr.msra.gmra.mrb[86].mxu0 %vm1018_vm0, %v7619_v43 }
0x1779   : > { %9149 = vmatprep.mubr.msk.f32.mxu0 %vm9894_vm1, %v9892_v7  ;;  %9482 = vmatpush3.bf16.msra.mxu0 %v9481_v44  ;;  %v7739_v7 = vld [vmem:[%s11484_s7 + $0x28] sm:$0xff]  ;;  %v7705_v44 = vpop.permute.xlu1 %7704 }
0x177a   : > { %9483 = vmatprep.subr.bf16.mxu0 %v9893_v52  ;;  %v9487_v47 = vpack.c.bf16 %v7739_v7, %v7738_v3 }
0x177d   : > { %9485 = vmatpush3.bf16.msra.mxu0 %v9484_v57  ;;  %v7727_v57 = vsel %vm1018_vm0, %v11203_v53, %v7701_v5  ;;  %v7713_v7 = vpop.permute.xlu1 %7712 }
0x177e   : > { %9486 = vmatprep.subr.bf16.mxu0 %v9893_v52  ;;  %v7728_v3 = vsel %vm3017_vm3, %v7727_v57, %v7705_v44 }
0x1781   : > { %9488 = vmatpush3.bf16.msra.mxu0 %v9487_v47  ;;  %v7729_v47 = vsel %vm3019_vm4, %v7728_v3, %v7709_v26  ;;  %v7721_v10 = vpop.permute.xlu1 %7720  ;;  %v8270_v3 = vld [vmem:[%s11487_s15] ss:$0 sm:$0xff]  ;;  %s8155_s15 = sshll.u32 %s11492_s1, 3 }
0x1782   : > { %9489 = vmatprep.subr.bf16.mxu0 %v9893_v52  ;;  %v7730_v14 = vsel %vm3021_vm5, %v7729_v47, %v7713_v7 }
0x1785   : > { %9491 = vmatpush3.bf16.msra.mxu0 %v9490_v18 }
0x1786   : > { %9492 = vmatprep.subr.bf16.mxu0 %v9893_v52 }
0x1789   : > { %9494 = vmatpush3.bf16.msra.mxu0 %v9493_v11 }
0x178a   : > { %9495 = vmatprep.subr.bf16.mxu0 %v9893_v52 }
0x178d   : > { %9497 = vmatpush3.bf16.msra.mxu0 %v9496_v38 }
0x178e   : > { %9498 = vmatprep.subr.bf16.mxu0 %v9893_v52 }
0x1791   : > { %9500 = vmatpush3.bf16.msra.mxu0 %v9499_v46 }
0x1792   : > { %9501 = vmatprep.subr.bf16.mxu0 %v9893_v52 }
0x1795   : > { %9503 = vmatpush3.bf16.msra.mxu0 %v9502_v8 }
0x17ab   : > { %v7351_v61 = vpop.f32.mrb[84].mxu0 }
0x17ac   : > { %7716 = vrot.lane.b32.xlu0 %v7351_v61, %s9897_s11  ;;  %v9088_v0 = vpop.f32.mrb[85].mxu0  ;;  %s11485_s11 = sld [smem:[#allocation14_spill]] }
0x17b2   : > { %v7833_v42 = vld [vmem:[%s11485_s11 + $0x8] sm:$0xff]  ;;  %v7835_v23 = vld [vmem:[%s11485_s11 + $0x18] sm:$0xff]  ;;  %v7832_v62 = vld [vmem:[%s11485_s11] sm:$0xff] }
0x17b3   : > { %v9504_v4 = vpack.c.bf16 %v7835_v23, %v7833_v42  ;;  %v7834_v20 = vld [vmem:[%s11485_s11 + $0x10] sm:$0xff]  ;;  %v7837_v12 = vld [vmem:[%s11485_s11 + $0x28] sm:$0xff]  ;;  %v7839_v2 = vld [vmem:[%s11485_s11 + $0x38] sm:$0xff] }
0x17b4   : > { %v9506_v22 = vpack.c.bf16 %v7834_v20, %v7832_v62  ;;  %v9508_v60 = vpack.c.bf16 %v7839_v2, %v7837_v12  ;;  %v7836_v27 = vld [vmem:[%s11485_s11 + $0x20] sm:$0xff]  ;;  %v7838_v31 = vld [vmem:[%s11485_s11 + $0x30] sm:$0xff]  ;;  %v7841_v56 = vld [vmem:[%s11485_s11 + $0x48] sm:$0xff] }
0x17b5   : > { %9505 = vmatprep.subr.bf16.mxu1 %v9504_v4  ;;  %v7843_v52 = vld [vmem:[%s11485_s11 + $0x58] sm:$0xff]  ;;  %v9510_v45 = vpack.c.bf16 %v7838_v31, %v7836_v27  ;;  %v7840_v19 = vld [vmem:[%s11485_s11 + $0x40] sm:$0xff]  ;;  %v7842_v63 = vld [vmem:[%s11485_s11 + $0x50] sm:$0xff] }
0x17b6   : > { %9507 = vmatpush1.bf16.msra.mxu1 %v9506_v22  ;;  %v9512_v29 = vpack.c.bf16 %v7843_v52, %v7841_v56  ;;  %v7845_v39 = vld [vmem:[%s11485_s11 + $0x68] sm:$0xff]  ;;  %v7847_v36 = vld [vmem:[%s11485_s11 + $0x78] sm:$0xff]  ;;  %v9514_v35 = vpack.c.bf16 %v7842_v63, %v7840_v19  ;;  %v7844_v40 = vld [vmem:[%s11485_s11 + $0x60] sm:$0xff] }
0x17b7   : > { %9509 = vmatprep.subr.bf16.mxu1 %v9508_v60  ;;  %v9516_v6 = vpack.c.bf16 %v7847_v36, %v7845_v39  ;;  %v7846_v33 = vld [vmem:[%s11485_s11 + $0x70] sm:$0xff]  ;;  %v7849_v49 = vld [vmem:[%s11485_s11 + $0x88] sm:$0xff]  ;;  %v7851_v25 = vld [vmem:[%s11485_s11 + $0x98] sm:$0xff] }
0x17b8   : > { %v9518_v59 = vpack.c.bf16 %v7846_v33, %v7844_v40  ;;  %v9520_v28 = vpack.c.bf16 %v7851_v25, %v7849_v49  ;;  %v7848_v54 = vld [vmem:[%s11485_s11 + $0x80] sm:$0xff]  ;;  %v7850_v17 = vld [vmem:[%s11485_s11 + $0x90] sm:$0xff]  ;;  %v7853_v13 = vld [vmem:[%s11485_s11 + $0xa8] sm:$0xff] }
0x17b9   : > { %v7855_v50 = vld [vmem:[%s11485_s11 + $0xb8] sm:$0xff]  ;;  %v9522_v43 = vpack.c.bf16 %v7850_v17, %v7848_v54  ;;  %v7852_v0 = vld [vmem:[%s11485_s11 + $0xa0] sm:$0xff]  ;;  %v7854_v24 = vld [vmem:[%s11485_s11 + $0xb0] sm:$0xff] }
0x17ba   : > { %9511 = vmatpush1.bf16.msra.mxu1 %v9510_v45  ;;  %v9524_v61 = vpack.c.bf16 %v7855_v50, %v7853_v13  ;;  %v9526_v21 = vpack.c.bf16 %v7854_v24, %v7852_v0  ;;  %v7857_v15 = vld [vmem:[%s11485_s11 + $0xc8] sm:$0xff]  ;;  %v7859_v30 = vld [vmem:[%s11485_s11 + $0xd8] sm:$0xff]  ;;  %v7856_v1 = vld [vmem:[%s11485_s11 + $0xc0] sm:$0xff] }
0x17bb   : > { %9513 = vmatprep.subr.bf16.mxu1 %v9512_v29  ;;  %v9528_v38 = vpack.c.bf16 %v7859_v30, %v7857_v15  ;;  %v7858_v32 = vld [vmem:[%s11485_s11 + $0xd0] sm:$0xff]  ;;  %v7861_v16 = vld [vmem:[%s11485_s11 + $0xe8] sm:$0xff]  ;;  %v7863_v41 = vld [vmem:[%s11485_s11 + $0xf8] sm:$0xff] }
0x17bc   : > { %v9530_v46 = vpack.c.bf16 %v7858_v32, %v7856_v1  ;;  %v9532_v8 = vpack.c.bf16 %v7863_v41, %v7861_v16  ;;  %v7860_v42 = vld [vmem:[%s11485_s11 + $0xe0] sm:$0xff]  ;;  %v7862_v23 = vld [vmem:[%s11485_s11 + $0xf0] sm:$0xff] }
0x17bd   : > { %v9534_v62 = vpack.c.bf16 %v7862_v23, %v7860_v42 }
0x17be   : > { %9515 = vmatpush1.bf16.msra.mxu1 %v9514_v35 }
0x17bf   : > { %9517 = vmatprep.subr.bf16.mxu1 %v9516_v6 }
0x17c2   : > { %9519 = vmatpush1.bf16.msra.mxu1 %v9518_v59 }
0x17c3   : > { %9521 = vmatprep.subr.bf16.mxu1 %v9520_v28 }
0x17c6   : > { %9523 = vmatpush1.bf16.msra.mxu1 %v9522_v43 }
0x17c7   : > { %9525 = vmatprep.subr.bf16.mxu1 %v9524_v61 }
0x17ca   : > { %9527 = vmatpush1.bf16.msra.mxu1 %v9526_v21 }
0x17cb   : > { %9529 = vmatprep.subr.bf16.mxu1 %v9528_v38 }
0x17ce   : > { %9531 = vmatpush1.bf16.msra.mxu1 %v9530_v46 }
0x17cf   : > { %9533 = vmatprep.subr.bf16.mxu1 %v9532_v8  ;;  %v7864_v8 = vld [vmem:[%s11490_s2] sm:$0x3] }
0x17d0   : > { %v7873_v42 = vrot.slane %v7864_v8, %v10184_v58 }
0x17d2   : > { %9535 = vmatpush1.bf16.msra.mxu1 %v9534_v62 }
0x181e   : > { %v7717_v48 = vpop.permute.xlu0 %7716 }
0x181f   : > { %v7731_v18 = vsel %vm3023_vm6, %v7730_v14, %v7717_v48  ;;  %v7828_v14 = vld [vmem:[%s11488_s16] sm:$0xff]  ;;  %s984_s16 = scalar_lea.vmem %s10070_s27, %s8155_s15 }
0x1820   : > { %v7732_v9 = vsel %vm3025_vm7, %v7731_v18, %v7721_v10  ;;  %v7830_v10 = vld [vmem:[%s11489_s18] sm:$0xff] }
0x184b   : > { %v7695_v51 = vpop.f32.mrb[86].mxu0 }
0x184c   : > { %7724 = vrot.lane.b32.xlu0 %v7695_v51, %s9896_s10  ;;  %v9116_v34 = vpop.f32.mrb[87].mxu0  ;;  %s11486_s10 = sld [smem:[#allocation16_spill]] }
0x1852   : > { %v7965_v4 = vld [vmem:[%s11486_s10 + $0x80] sm:$0xff]  ;;  %v7966_v20 = vld [vmem:[%s11486_s10 + $0x88] sm:$0xff]  ;;  %v7967_v60 = vld [vmem:[%s11486_s10 + $0x90] sm:$0xff] }
0x1853   : > { %v7949_v12 = vld [vmem:[%s11486_s10] sm:$0xff]  ;;  %v9536_v2 = vpack.c.bf16 %v7966_v20, %v7965_v4  ;;  %v7950_v22 = vld [vmem:[%s11486_s10 + $0x8] sm:$0xff]  ;;  %v7968_v27 = vld [vmem:[%s11486_s10 + $0x98] sm:$0xff] }
0x1854   : > { %v9538_v31 = vpack.c.bf16 %v7950_v22, %v7949_v12  ;;  %v9540_v56 = vpack.c.bf16 %v7968_v27, %v7967_v60  ;;  %v7951_v52 = vld [vmem:[%s11486_s10 + $0x10] sm:$0xff]  ;;  %v7952_v45 = vld [vmem:[%s11486_s10 + $0x18] sm:$0xff]  ;;  %v7969_v29 = vld [vmem:[%s11486_s10 + $0xa0] sm:$0xff] }
0x1855   : > { %9537 = vmatprep.subr.bf16.mxu0 %v9536_v2  ;;  %v7970_v19 = vld [vmem:[%s11486_s10 + $0xa8] sm:$0xff]  ;;  %v9542_v63 = vpack.c.bf16 %v7952_v45, %v7951_v52  ;;  %v7953_v36 = vld [vmem:[%s11486_s10 + $0x20] sm:$0xff]  ;;  %v7971_v6 = vld [vmem:[%s11486_s10 + $0xb0] sm:$0xff] }
0x1856   : > { %v9544_v39 = vpack.c.bf16 %v7970_v19, %v7969_v29  ;;  %v7954_v35 = vld [vmem:[%s11486_s10 + $0x28] sm:$0xff]  ;;  %v7972_v40 = vld [vmem:[%s11486_s10 + $0xb8] sm:$0xff]  ;;  %v7955_v25 = vld [vmem:[%s11486_s10 + $0x30] sm:$0xff] }
0x1857   : > { %v9546_v33 = vpack.c.bf16 %v7954_v35, %v7953_v36  ;;  %v9548_v49 = vpack.c.bf16 %v7972_v40, %v7971_v6  ;;  %v7956_v51 = vld [vmem:[%s11486_s10 + $0x38] sm:$0xff]  ;;  %v7973_v34 = vld [vmem:[%s11486_s10 + $0xc0] sm:$0xff]  ;;  %v7974_v59 = vld [vmem:[%s11486_s10 + $0xc8] sm:$0xff] }
0x1858   : > { %v9550_v28 = vpack.c.bf16 %v7956_v51, %v7955_v25  ;;  %v9552_v54 = vpack.c.bf16 %v7974_v59, %v7973_v34  ;;  %v7957_v17 = vld [vmem:[%s11486_s10 + $0x40] sm:$0xff]  ;;  %v7958_v13 = vld [vmem:[%s11486_s10 + $0x48] sm:$0xff]  ;;  %v7975_v50 = vld [vmem:[%s11486_s10 + $0xd0] sm:$0xff] }
0x1859   : > { %v7976_v43 = vld [vmem:[%s11486_s10 + $0xd8] sm:$0xff]  ;;  %v9554_v61 = vpack.c.bf16 %v7958_v13, %v7957_v17  ;;  %v7959_v24 = vld [vmem:[%s11486_s10 + $0x50] sm:$0xff]  ;;  %v7977_v5 = vld [vmem:[%s11486_s10 + $0xe0] sm:$0xff] }
0x185a   : > { %v9556_v0 = vpack.c.bf16 %v7976_v43, %v7975_v50  ;;  %v7960_v21 = vld [vmem:[%s11486_s10 + $0x58] sm:$0xff]  ;;  %v7978_v44 = vld [vmem:[%s11486_s10 + $0xe8] sm:$0xff]  ;;  %v7979_v38 = vld [vmem:[%s11486_s10 + $0xf0] sm:$0xff] }
0x185b   : > { %v9558_v26 = vpack.c.bf16 %v7960_v21, %v7959_v24  ;;  %v9560_v57 = vpack.c.bf16 %v7978_v44, %v7977_v5  ;;  %v7962_v15 = vld [vmem:[%s11486_s10 + $0x68] sm:$0xff]  ;;  %v7980_v1 = vld [vmem:[%s11486_s10 + $0xf8] sm:$0xff]  ;;  %v7963_v46 = vld [vmem:[%s11486_s10 + $0x70] sm:$0xff] }
0x185c   : > { %v9564_v32 = vpack.c.bf16 %v7980_v1, %v7979_v38  ;;  %v7964_v16 = vld [vmem:[%s11486_s10 + $0x78] sm:$0xff]  ;;  %v8271_v60 = vld [vmem:[%s10055_s4] ss:$0 sm:$0xff] }
0x185d   : > { %v9566_v41 = vpack.c.bf16 %v7964_v16, %v7963_v46  ;;  %v8059_v52 = vld [vmem:[%s10060_s6] sm:$0xff] }
0x185e   : > { %v8061_v45 = vld [vmem:[%s10065_s20] sm:$0xff] }
0x18be   : > { %v7725_v11 = vpop.permute.xlu0 %7724 }
0x18bf   : > { %v7733_v53 = vsel %vm3027_vm8, %v7732_v9, %v7725_v11 }
0x18c0   : > { %9150 = vmatmul.mubr.f32.vlgmr.msra.gmra.mrb[88].mxu0 %v7733_v53  ;;  %v7961_v53 = vld [vmem:[%s11486_s10 + $0x60] sm:$0xff] }
0x18c1   : > { %9539 = vmatpush3.bf16.msra.mxu0 %v9538_v31  ;;  %v9562_v30 = vpack.c.bf16 %v7962_v15, %v7961_v53 }
0x18c2   : > { %9541 = vmatprep.subr.bf16.mxu0 %v9540_v56 }
0x18c5   : > { %9543 = vmatpush3.bf16.msra.mxu0 %v9542_v63 }
0x18c6   : > { %9545 = vmatprep.subr.bf16.mxu0 %v9544_v39 }
0x18c9   : > { %9547 = vmatpush3.bf16.msra.mxu0 %v9546_v33 }
0x18ca   : > { %9549 = vmatprep.subr.bf16.mxu0 %v9548_v49 }
0x18cd   : > { %9551 = vmatpush3.bf16.msra.mxu0 %v9550_v28 }
0x18ce   : > { %9553 = vmatprep.subr.bf16.mxu0 %v9552_v54 }
0x18d1   : > { %9555 = vmatpush3.bf16.msra.mxu0 %v9554_v61 }
0x18d2   : > { %9557 = vmatprep.subr.bf16.mxu0 %v9556_v0 }
0x18d5   : > { %9559 = vmatpush3.bf16.msra.mxu0 %v9558_v26 }
0x18d6   : > { %9561 = vmatprep.subr.bf16.mxu0 %v9560_v57 }
0x18d9   : > { %9563 = vmatpush3.bf16.msra.mxu0 %v9562_v30 }
0x18da   : > { %9565 = vmatprep.subr.bf16.mxu0 %v9564_v32 }
0x18dd   : > { %9567 = vmatpush3.bf16.msra.mxu0 %v9566_v41 }
0x1993   : > { %v7823_v7 = vpop.f32.mrb[88].mxu0 }
0x1994   : > { %v7824_v47 = vadd.f32 %v8270_v3, %v7823_v7  ;;  %v9151_v48 = vpop.f32.mrb[89].mxu0 }
0x1996   : > { %v7827_v18 = vadd.f32 %v7824_v47, %v11151_v37  ;;  %v7869_v37 = vrot.slane %v7864_v8, %v10179_v55 }
0x1998   : > { %v7829_v9 = vmul.f32 %v7828_v14, %v7827_v18 }
0x199a   : > { %v7831_v11 = vadd.f32 %v7830_v10, %v7829_v9 }
0x199c   : > { %7941 = vmatmul.mubr.f32.vlgmr.msra.gmra.mrb[100].mxu1 %v7831_v11 }
0x1a6f   : > { %v7942_v23 = vpop.f32.mrb[100].mxu1 }
0x1a70   : > { %v7943_v62 = vadd.f32 %v7942_v23, %v7869_v37  ;;  %v7944_v4 = vpop.f32.mrb[101].mxu1 }
0x1a71   : > { %v7945_v20 = vadd.f32 %v7944_v4, %v7873_v42 }
0x1a72   : > { %v7947_v2 = vmax.f32 %v7943_v62, 0.0 }
0x1a73   : > { %v7948_v12 = vmax.f32 %v7945_v20, 0.0 }
0x1a75   : > { %8052 = vmatprep.mubr.f32.mxu0 %v7948_v12 }
0x1a76   : > { %8053 = vmatmul.mubr.f32.vlgmr.msra.gmra.mrb[90].mxu0 %v7947_v2 }
0x1b49   : > { %v8645_v22 = vpop.f32.mrb[90].mxu0 }
0x1b4a   : > { %v8646_v27 = vpop.f32.mrb[91].mxu0 }
0x1b4b   : > { %v8647_v31 = vadd.f32 %v8646_v27, %v8645_v22 }
0x1b4d   : > { %v8055_v56 = vadd.f32 %v8647_v31, %v8271_v60 }
0x1b4f   : > { %v8058_v55 = vadd.f32 %v8055_v56, %v7831_v11 }
0x1b51   : > { %v8060_v58 = vmul.f32 %v8059_v52, %v8058_v55 }
0x1b53   : > { %v8062_v29 = vadd.f32 %v8061_v45, %v8060_v58 }
0x1b55   : > { %8063 = vst [vmem:[%s984_s16] sm:$0xff] %v8062_v29 }
0x1b56 PF: > { %s75_s28 = sadd.s32 1, %s9858_s28  }
0x1b57   : > { %p72_p4 = scmp.ge.s32.totalorder %s75_s28, 4  }
0x1b59   :  { %74 = sbr.rel (!%p72_p4) target bundleno = 53 (0x35), region = 210 }

</bundles_post_ra>
